<compile_context>
chip_gen: v6e
topology: v6e:2x2x1
jax: 0.10.0
libtpu: 0.0.40
codegen_flags: <defaults>
</compile_context>

<pallas_src>
import functools

import jax
import jax.numpy as jnp
from jax import lax
from jax.experimental import pallas as pl
from jax.experimental.pallas import tpu as pltpu


# ------------------------------ fused kernel -------------------------------- #

def _basic_block_kernel(*refs, k_size, stride, pad, pad_al, w_out, has_sc):
    """One B-block: conv1+bn1+relu -> (shortcut) -> conv2+bn2+add+relu."""
    if has_sc:
        (x_ref, w1_ref, w2_ref, wsc_ref, s1_ref, b1_ref, s2_ref, b2_ref,
         ssc_ref, bsc_ref, o_ref, h1_buf) = refs
    else:
        (x_ref, w1_ref, w2_ref, s1_ref, b1_ref, s2_ref, b2_ref,
         o_ref, h1_buf) = refs

    tb, _, cin = x_ref.shape
    planes = o_ref.shape[-1]
    rows = tb * w_out
    st = stride if stride > 1 else None   # pl.ds stride (None == contiguous)

    # ---- conv1 (1,K), stride s  +  folded BN1  +  ReLU ----------------------
    # im2col built in VMEM from K shifted (strided) slices of the padded block;
    # one MXU matmul with contraction K*Cin (k-major column order matches the
    # (K*Cin, P) weight layout built in the wrapper).
    taps1 = [x_ref[:, pl.ds(k, w_out, st), :] for k in range(k_size)]
    t1 = jnp.concatenate(taps1, axis=-1).reshape(rows, k_size * cin)
    acc1 = jnp.dot(t1, w1_ref[...], preferred_element_type=jnp.float32)
    h1 = jnp.maximum(acc1 * s1_ref[...] + b1_ref[...], 0.0)          # f32 epilogue

    # ---- shortcut branch ----------------------------------------------------
    if has_sc:
        xs = x_ref[:, pl.ds(pad, w_out, st), :].reshape(rows, cin)
        res = (jnp.dot(xs, wsc_ref[...], preferred_element_type=jnp.float32)
               * ssc_ref[...] + bsc_ref[...])
    else:
        res = x_ref[:, pl.ds(pad, w_out, st), :].reshape(rows, planes)
        res = res.astype(jnp.float32)

    # ---- conv2 (1,K), stride 1  +  folded BN2  +  residual  +  ReLU ---------
    # out1 never leaves VMEM: park it (with zero W-padding) in scratch at a
    # sublane-aligned offset, then re-slice the K taps for the second matmul.
    h1_buf[...] = jnp.zeros_like(h1_buf)
    h1_buf[:, pad_al:pad_al + w_out, :] = (
        h1.astype(h1_buf.dtype).reshape(tb, w_out, planes))
    rd0 = pad_al - pad
    taps2 = [h1_buf[:, rd0 + k:rd0 + k + w_out, :] for k in range(k_size)]
    t2 = jnp.concatenate(taps2, axis=-1).reshape(rows, k_size * planes)
    acc2 = jnp.dot(t2, w2_ref[...], preferred_element_type=jnp.float32)
    out = jnp.maximum(acc2 * s2_ref[...] + b2_ref[...] + res, 0.0)
    o_ref[...] = out.astype(o_ref.dtype)


# ------------------------------ glue / wrapper ------------------------------ #

def _fold_bn(gamma, beta, mean, var, eps=1e-5):
    # eval-mode BatchNorm folded to per-channel scale/bias, shaped (1, C), f32
    scale = gamma / jnp.sqrt(var + eps)
    bias = beta - mean * scale
    return (scale.reshape(1, -1).astype(jnp.float32),
            bias.reshape(1, -1).astype(jnp.float32))


def basic_block_forward(x, params, *, is_psd, stride,
                        compute_dtype=jnp.bfloat16, block_rows=512):
    """Pallas implementation of BasicBlock.forward.  x is NCHW float32."""
    n, cin, h, w = x.shape
    k_size = 7 if is_psd else 9
    pad = 3 if is_psd else 4
    planes = params["w1"].shape[0]
    w_out = (w + 2 * pad - k_size) // stride + 1
    b = n * h
    has_sc = (stride != 1) or (cin != planes)

    # ---- one-time XLA layout plumbing (no K-fold tap duplication) -----------
    x_bwc = jnp.transpose(x, (0, 2, 3, 1)).reshape(b, w, cin)
    x_pad = jnp.pad(x_bwc, ((0, 0), (pad, pad), (0, 0))).astype(compute_dtype)
    wp = w + 2 * pad

    def conv_w(wt):   # (O, I, 1, K) -> (K*I, O), k-major (matches tap concat)
        o = wt.shape[0]
        return (jnp.transpose(wt[:, :, 0, :], (2, 1, 0))
                .reshape(-1, o).astype(compute_dtype))

    w1 = conv_w(params["w1"])                       # (K*Cin, P)
    w2 = conv_w(params["w2"])                       # (K*P,   P)
    s1, b1 = _fold_bn(*params["bn1"])
    s2, b2 = _fold_bn(*params["bn2"])

    # ---- row blocking over B = N*H: target ~block_rows output rows / step ---
    tb = min(b, max(1, block_rows // max(w_out, 1)))
    while b % tb:                                    # keep the grid exact
        tb -= 1
    grid = (b // tb,)

    # sublane-aligned placement of out1 in the scratch (aligned stores)
    sub = max(8, 32 // jnp.dtype(compute_dtype).itemsize)
    pad_al = ((pad + sub - 1) // sub) * sub

    args = [x_pad, w1, w2]
    in_specs = [
        pl.BlockSpec((tb, wp, cin), lambda i: (i, 0, 0)),      # activation block
        pl.BlockSpec(w1.shape, lambda i: (0, 0)),              # weights resident
        pl.BlockSpec(w2.shape, lambda i: (0, 0)),
    ]
    if has_sc:
        wsc = (jnp.transpose(params["w_sc"][:, :, 0, :], (2, 1, 0))
               .reshape(cin, planes).astype(compute_dtype))
        ssc, bsc = _fold_bn(*params["bn_sc"])
        args.append(wsc)
        in_specs.append(pl.BlockSpec((cin, planes), lambda i: (0, 0)))
    args += [s1, b1, s2, b2]
    in_specs += [pl.BlockSpec((1, planes), lambda i: (0, 0)) for _ in range(4)]
    if has_sc:
        args += [ssc, bsc]
        in_specs += [pl.BlockSpec((1, planes), lambda i: (0, 0)) for _ in range(2)]

    kernel = functools.partial(
        _basic_block_kernel, k_size=k_size, stride=stride, pad=pad,
        pad_al=pad_al, w_out=w_out, has_sc=has_sc)

    out_flat = pl.pallas_call(
        kernel,
        out_shape=jax.ShapeDtypeStruct((b * w_out, planes), jnp.float32),
        grid=grid,
        in_specs=in_specs,
        out_specs=pl.BlockSpec((tb * w_out, planes), lambda i: (i, 0)),
        scratch_shapes=[pltpu.VMEM((tb, pad_al + w_out + pad, planes),
                                   compute_dtype)],
        compiler_params=pltpu.CompilerParams(
            dimension_semantics=("parallel",),        # pipelined; v7x 2-TC shard
            vmem_limit_bytes=48 * 1024 * 1024,        # headroom vs v7x 64 MiB
        ),
    )(*args)

    # (B*W_out, P) -> NCHW
    out = out_flat.reshape(n, h, w_out, planes)
    return jnp.transpose(out, (0, 3, 1, 2))


# ---------------------------- pure-JAX reference ----------------------------- #

def basic_block_ref(x, params, *, is_psd, stride):
    pad = 3 if is_psd else 4

    def bn(hh, p):
        gamma, beta, mean, var = p
        rs = lambda a: a.reshape(1, -1, 1, 1)
        return (hh - rs(mean)) / jnp.sqrt(rs(var) + 1e-5) * rs(gamma) + rs(beta)

    dn = ("NCHW", "OIHW", "NCHW")
    out = lax.conv_general_dilated(x, params["w1"], (1, stride),
                                   ((0, 0), (pad, pad)), dimension_numbers=dn)
    out = jax.nn.relu(bn(out, params["bn1"]))
    out = lax.conv_general_dilated(out, params["w2"], (1, 1),
                                   ((0, 0), (pad, pad)), dimension_numbers=dn)
    out = bn(out, params["bn2"])
    if "w_sc" in params:
        sc = lax.conv_general_dilated(x, params["w_sc"], (1, stride),
                                      ((0, 0), (0, 0)), dimension_numbers=dn)
        sc = bn(sc, params["bn_sc"])
    else:
        sc = x
    return jax.nn.relu(out + sc)


# ----------------------------------- main ------------------------------------ #

if __name__ == "__main__":
    key = jax.random.PRNGKey(0)
    keys = jax.random.split(key, 8)

    N, C_IN, H, W = 2, 4, 8, 16           # small NCHW input (B = N*H = 16)
    PLANES = 8
    IS_PSD = False                         # -> kernel (1, 9), padding (0, 4)
    STRIDE = 1                             # shortcut conv active: C_IN != PLANES
    K_SIZE = 7 if IS_PSD else 9

    x = jax.random.normal(keys[0], (N, C_IN, H, W), jnp.float32)

    def bn_params(k, c):
        k1, k2, k3, k4 = jax.random.split(k, 4)
        gamma = 1.0 + 0.1 * jax.random.normal(k1, (c,), jnp.float32)
        beta = 0.1 * jax.random.normal(k2, (c,), jnp.float32)
        mean = 0.1 * jax.random.normal(k3, (c,), jnp.float32)
        var = 0.5 + jnp.abs(jax.random.normal(k4, (c,), jnp.float32))
        return (gamma, beta, mean, var)

    params = {
        "w1": 0.1 * jax.random.normal(keys[1], (PLANES, C_IN, 1, K_SIZE), jnp.float32),
        "w2": 0.1 * jax.random.normal(keys[2], (PLANES, PLANES, 1, K_SIZE), jnp.float32),
        "bn1": bn_params(keys[3], PLANES),
        "bn2": bn_params(keys[4], PLANES),
    }
    if STRIDE != 1 or C_IN != PLANES:
        params["w_sc"] = 0.1 * jax.random.normal(keys[5], (PLANES, C_IN, 1, 1), jnp.float32)
        params["bn_sc"] = bn_params(keys[6], PLANES)

    # block_rows=128 -> tb=8, grid=(2,): exercises the pipelined multi-block path
    out = basic_block_forward(x, params, is_psd=IS_PSD, stride=STRIDE,
                              compute_dtype=jnp.bfloat16, block_rows=128)
    out = jax.block_until_ready(out)

    ref = basic_block_ref(x, params, is_psd=IS_PSD, stride=STRIDE)
    assert out.shape == ref.shape, (out.shape, ref.shape)
    err = float(jnp.max(jnp.abs(out - ref)))
    # bf16 MXU inputs with f32 accumulation / epilogue -> loose tolerance
    assert err < 1e-1, f"max abs error too large: {err}"

    print("KERNEL_OK")
</pallas_src>

<mosaic_0001>
module attributes {stable_mosaic.version = 11 : i64} {
  func.func @_basic_block_kernel(%arg0: i32, %arg1: memref<8x24x4xbf16, #tpu.memory_space<vmem>>, %arg2: memref<36x8xbf16, #tpu.memory_space<vmem>>, %arg3: memref<72x8xbf16, #tpu.memory_space<vmem>>, %arg4: memref<4x8xbf16, #tpu.memory_space<vmem>>, %arg5: memref<1x8xf32, #tpu.memory_space<vmem>>, %arg6: memref<1x8xf32, #tpu.memory_space<vmem>>, %arg7: memref<1x8xf32, #tpu.memory_space<vmem>>, %arg8: memref<1x8xf32, #tpu.memory_space<vmem>>, %arg9: memref<1x8xf32, #tpu.memory_space<vmem>>, %arg10: memref<1x8xf32, #tpu.memory_space<vmem>>, %arg11: memref<128x8xf32, #tpu.memory_space<vmem>>, %arg12: memref<8x36x8xbf16, #tpu.memory_space<vmem>>) attributes {dimension_semantics = [#tpu.dimension_semantics<parallel>], iteration_bounds = array<i64: 2>, scalar_prefetch = 0 : i64, scratch_operands = 1 : i64, tpu.core_type = #tpu.core_type<tc>, window_params = [{transform_indices = @transform_0, window_bounds = array<i64: 8, 24, 4>}, {pipeline_mode = #tpu.pipeline_mode<synchronous>, transform_indices = @transform_1, window_bounds = array<i64: 36, 8>}, {pipeline_mode = #tpu.pipeline_mode<synchronous>, transform_indices = @transform_2, window_bounds = array<i64: 72, 8>}, {pipeline_mode = #tpu.pipeline_mode<synchronous>, transform_indices = @transform_3, window_bounds = array<i64: 4, 8>}, {pipeline_mode = #tpu.pipeline_mode<synchronous>, transform_indices = @transform_4, window_bounds = array<i64: 1, 8>}, {pipeline_mode = #tpu.pipeline_mode<synchronous>, transform_indices = @transform_5, window_bounds = array<i64: 1, 8>}, {pipeline_mode = #tpu.pipeline_mode<synchronous>, transform_indices = @transform_6, window_bounds = array<i64: 1, 8>}, {pipeline_mode = #tpu.pipeline_mode<synchronous>, transform_indices = @transform_7, window_bounds = array<i64: 1, 8>}, {pipeline_mode = #tpu.pipeline_mode<synchronous>, transform_indices = @transform_8, window_bounds = array<i64: 1, 8>}, {pipeline_mode = #tpu.pipeline_mode<synchronous>, transform_indices = @transform_9, window_bounds = array<i64: 1, 8>}, {transform_indices = @transform_10, window_bounds = array<i64: 128, 8>}]} {
    %c0 = arith.constant 0 : index
    %c0_0 = arith.constant 0 : index
    %c0_1 = arith.constant 0 : index
    %0 = vector.load %arg1[%c0, %c0_0, %c0_1] : memref<8x24x4xbf16, #tpu.memory_space<vmem>>, vector<8x16x4xbf16>
    %c0_2 = arith.constant 0 : index
    %c1 = arith.constant 1 : index
    %c0_3 = arith.constant 0 : index
    %1 = vector.load %arg1[%c0_2, %c1, %c0_3] : memref<8x24x4xbf16, #tpu.memory_space<vmem>>, vector<8x16x4xbf16>
    %c0_4 = arith.constant 0 : index
    %c2 = arith.constant 2 : index
    %c0_5 = arith.constant 0 : index
    %2 = vector.load %arg1[%c0_4, %c2, %c0_5] : memref<8x24x4xbf16, #tpu.memory_space<vmem>>, vector<8x16x4xbf16>
    %c0_6 = arith.constant 0 : index
    %c3 = arith.constant 3 : index
    %c0_7 = arith.constant 0 : index
    %3 = vector.load %arg1[%c0_6, %c3, %c0_7] : memref<8x24x4xbf16, #tpu.memory_space<vmem>>, vector<8x16x4xbf16>
    %c0_8 = arith.constant 0 : index
    %c4 = arith.constant 4 : index
    %c0_9 = arith.constant 0 : index
    %4 = vector.load %arg1[%c0_8, %c4, %c0_9] : memref<8x24x4xbf16, #tpu.memory_space<vmem>>, vector<8x16x4xbf16>
    %c0_10 = arith.constant 0 : index
    %c5 = arith.constant 5 : index
    %c0_11 = arith.constant 0 : index
    %5 = vector.load %arg1[%c0_10, %c5, %c0_11] : memref<8x24x4xbf16, #tpu.memory_space<vmem>>, vector<8x16x4xbf16>
    %c0_12 = arith.constant 0 : index
    %c6 = arith.constant 6 : index
    %c0_13 = arith.constant 0 : index
    %6 = vector.load %arg1[%c0_12, %c6, %c0_13] : memref<8x24x4xbf16, #tpu.memory_space<vmem>>, vector<8x16x4xbf16>
    %c0_14 = arith.constant 0 : index
    %c7 = arith.constant 7 : index
    %c0_15 = arith.constant 0 : index
    %7 = vector.load %arg1[%c0_14, %c7, %c0_15] : memref<8x24x4xbf16, #tpu.memory_space<vmem>>, vector<8x16x4xbf16>
    %c0_16 = arith.constant 0 : index
    %c8 = arith.constant 8 : index
    %c0_17 = arith.constant 0 : index
    %8 = vector.load %arg1[%c0_16, %c8, %c0_17] : memref<8x24x4xbf16, #tpu.memory_space<vmem>>, vector<8x16x4xbf16>
    %9 = tpu.concatenate %0, %1, %2, %3, %4, %5, %6, %7, %8 in 2 : vector<8x16x4xbf16>, vector<8x16x4xbf16>, vector<8x16x4xbf16>, vector<8x16x4xbf16>, vector<8x16x4xbf16>, vector<8x16x4xbf16>, vector<8x16x4xbf16>, vector<8x16x4xbf16>, vector<8x16x4xbf16> -> vector<8x16x36xbf16>
    %10 = vector.shape_cast %9 : vector<8x16x36xbf16> to vector<128x36xbf16>
    %c0_18 = arith.constant 0 : index
    %c0_19 = arith.constant 0 : index
    %11 = vector.load %arg2[%c0_18, %c0_19] : memref<36x8xbf16, #tpu.memory_space<vmem>>, vector<36x8xbf16>
    %cst = arith.constant dense<0.000000e+00> : vector<128x8xf32>
    %12 = tpu.matmul %10, %11, %cst {dimension_numbers = #tpu.dot_dimension_numbers<[1], [0], [0], [1], [0, 0, 1, 1], [], []>} : vector<128x36xbf16>, vector<36x8xbf16>, vector<128x8xf32> -> vector<128x8xf32>
    %c0_20 = arith.constant 0 : index
    %c0_21 = arith.constant 0 : index
    %13 = vector.load %arg5[%c0_20, %c0_21] : memref<1x8xf32, #tpu.memory_space<vmem>>, vector<1x8xf32>
    %14 = vector.broadcast %13 : vector<1x8xf32> to vector<128x8xf32>
    %15 = arith.mulf %12, %14 : vector<128x8xf32>
    %c0_22 = arith.constant 0 : index
    %c0_23 = arith.constant 0 : index
    %16 = vector.load %arg6[%c0_22, %c0_23] : memref<1x8xf32, #tpu.memory_space<vmem>>, vector<1x8xf32>
    %17 = vector.broadcast %16 : vector<1x8xf32> to vector<128x8xf32>
    %18 = arith.addf %15, %17 : vector<128x8xf32>
    %cst_24 = arith.constant 0.000000e+00 : f32
    %19 = vector.broadcast %cst_24 : f32 to vector<128x8xf32>
    %20 = arith.maximumf %18, %19 : vector<128x8xf32>
    %c0_25 = arith.constant 0 : index
    %c4_26 = arith.constant 4 : index
    %c0_27 = arith.constant 0 : index
    %21 = vector.load %arg1[%c0_25, %c4_26, %c0_27] : memref<8x24x4xbf16, #tpu.memory_space<vmem>>, vector<8x16x4xbf16>
    %22 = vector.shape_cast %21 : vector<8x16x4xbf16> to vector<128x4xbf16>
    %c0_28 = arith.constant 0 : index
    %c0_29 = arith.constant 0 : index
    %23 = vector.load %arg4[%c0_28, %c0_29] : memref<4x8xbf16, #tpu.memory_space<vmem>>, vector<4x8xbf16>
    %cst_30 = arith.constant dense<0.000000e+00> : vector<128x8xf32>
    %24 = tpu.matmul %22, %23, %cst_30 {dimension_numbers = #tpu.dot_dimension_numbers<[1], [0], [0], [1], [0, 0, 1, 1], [], []>} : vector<128x4xbf16>, vector<4x8xbf16>, vector<128x8xf32> -> vector<128x8xf32>
    %c0_31 = arith.constant 0 : index
    %c0_32 = arith.constant 0 : index
    %25 = vector.load %arg9[%c0_31, %c0_32] : memref<1x8xf32, #tpu.memory_space<vmem>>, vector<1x8xf32>
    %26 = vector.broadcast %25 : vector<1x8xf32> to vector<128x8xf32>
    %27 = arith.mulf %24, %26 : vector<128x8xf32>
    %c0_33 = arith.constant 0 : index
    %c0_34 = arith.constant 0 : index
    %28 = vector.load %arg10[%c0_33, %c0_34] : memref<1x8xf32, #tpu.memory_space<vmem>>, vector<1x8xf32>
    %29 = vector.broadcast %28 : vector<1x8xf32> to vector<128x8xf32>
    %30 = arith.addf %27, %29 : vector<128x8xf32>
    %cst_35 = arith.constant 0.000000e+00 : bf16
    %31 = vector.broadcast %cst_35 : bf16 to vector<8x36x8xbf16>
    %c0_36 = arith.constant 0 : index
    %c0_37 = arith.constant 0 : index
    %c0_38 = arith.constant 0 : index
    %32 = vector.load %arg12[%c0_36, %c0_37, %c0_38] : memref<8x36x8xbf16, #tpu.memory_space<vmem>>, vector<8x36x8xbf16>
    tpu.vector_store %arg12[%c0_36, %c0_37, %c0_38], %31 {strides = array<i32>} : memref<8x36x8xbf16, #tpu.memory_space<vmem>>, vector<8x36x8xbf16>,
    %33 = arith.truncf %20 : vector<128x8xf32> to vector<128x8xbf16>
    %34 = vector.shape_cast %33 : vector<128x8xbf16> to vector<8x16x8xbf16>
    %c0_39 = arith.constant 0 : index
    %c16 = arith.constant 16 : index
    %c0_40 = arith.constant 0 : index
    %35 = vector.load %arg12[%c0_39, %c16, %c0_40] : memref<8x36x8xbf16, #tpu.memory_space<vmem>>, vector<8x16x8xbf16>
    tpu.vector_store %arg12[%c0_39, %c16, %c0_40], %34 {strides = array<i32>} : memref<8x36x8xbf16, #tpu.memory_space<vmem>>, vector<8x16x8xbf16>,
    %c0_41 = arith.constant 0 : index
    %c12 = arith.constant 12 : index
    %c0_42 = arith.constant 0 : index
    %36 = vector.load %arg12[%c0_41, %c12, %c0_42] : memref<8x36x8xbf16, #tpu.memory_space<vmem>>, vector<8x16x8xbf16>
    %c0_43 = arith.constant 0 : index
    %c13 = arith.constant 13 : index
    %c0_44 = arith.constant 0 : index
    %37 = vector.load %arg12[%c0_43, %c13, %c0_44] : memref<8x36x8xbf16, #tpu.memory_space<vmem>>, vector<8x16x8xbf16>
    %c0_45 = arith.constant 0 : index
    %c14 = arith.constant 14 : index
    %c0_46 = arith.constant 0 : index
    %38 = vector.load %arg12[%c0_45, %c14, %c0_46] : memref<8x36x8xbf16, #tpu.memory_space<vmem>>, vector<8x16x8xbf16>
    %c0_47 = arith.constant 0 : index
    %c15 = arith.constant 15 : index
    %c0_48 = arith.constant 0 : index
    %39 = vector.load %arg12[%c0_47, %c15, %c0_48] : memref<8x36x8xbf16, #tpu.memory_space<vmem>>, vector<8x16x8xbf16>
    %c0_49 = arith.constant 0 : index
    %c16_50 = arith.constant 16 : index
    %c0_51 = arith.constant 0 : index
    %40 = vector.load %arg12[%c0_49, %c16_50, %c0_51] : memref<8x36x8xbf16, #tpu.memory_space<vmem>>, vector<8x16x8xbf16>
    %c0_52 = arith.constant 0 : index
    %c17 = arith.constant 17 : index
    %c0_53 = arith.constant 0 : index
    %41 = vector.load %arg12[%c0_52, %c17, %c0_53] : memref<8x36x8xbf16, #tpu.memory_space<vmem>>, vector<8x16x8xbf16>
    %c0_54 = arith.constant 0 : index
    %c18 = arith.constant 18 : index
    %c0_55 = arith.constant 0 : index
    %42 = vector.load %arg12[%c0_54, %c18, %c0_55] : memref<8x36x8xbf16, #tpu.memory_space<vmem>>, vector<8x16x8xbf16>
    %c0_56 = arith.constant 0 : index
    %c19 = arith.constant 19 : index
    %c0_57 = arith.constant 0 : index
    %43 = vector.load %arg12[%c0_56, %c19, %c0_57] : memref<8x36x8xbf16, #tpu.memory_space<vmem>>, vector<8x16x8xbf16>
    %c0_58 = arith.constant 0 : index
    %c20 = arith.constant 20 : index
    %c0_59 = arith.constant 0 : index
    %44 = vector.load %arg12[%c0_58, %c20, %c0_59] : memref<8x36x8xbf16, #tpu.memory_space<vmem>>, vector<8x16x8xbf16>
    %45 = tpu.concatenate %36, %37, %38, %39, %40, %41, %42, %43, %44 in 2 : vector<8x16x8xbf16>, vector<8x16x8xbf16>, vector<8x16x8xbf16>, vector<8x16x8xbf16>, vector<8x16x8xbf16>, vector<8x16x8xbf16>, vector<8x16x8xbf16>, vector<8x16x8xbf16>, vector<8x16x8xbf16> -> vector<8x16x72xbf16>
    %46 = vector.shape_cast %45 : vector<8x16x72xbf16> to vector<128x72xbf16>
    %c0_60 = arith.constant 0 : index
    %c0_61 = arith.constant 0 : index
    %47 = vector.load %arg3[%c0_60, %c0_61] : memref<72x8xbf16, #tpu.memory_space<vmem>>, vector<72x8xbf16>
    %cst_62 = arith.constant dense<0.000000e+00> : vector<128x8xf32>
    %48 = tpu.matmul %46, %47, %cst_62 {dimension_numbers = #tpu.dot_dimension_numbers<[1], [0], [0], [1], [0, 0, 1, 1], [], []>} : vector<128x72xbf16>, vector<72x8xbf16>, vector<128x8xf32> -> vector<128x8xf32>
    %c0_63 = arith.constant 0 : index
    %c0_64 = arith.constant 0 : index
    %49 = vector.load %arg7[%c0_63, %c0_64] : memref<1x8xf32, #tpu.memory_space<vmem>>, vector<1x8xf32>
    %50 = vector.broadcast %49 : vector<1x8xf32> to vector<128x8xf32>
    %51 = arith.mulf %48, %50 : vector<128x8xf32>
    %c0_65 = arith.constant 0 : index
    %c0_66 = arith.constant 0 : index
    %52 = vector.load %arg8[%c0_65, %c0_66] : memref<1x8xf32, #tpu.memory_space<vmem>>, vector<1x8xf32>
    %53 = vector.broadcast %52 : vector<1x8xf32> to vector<128x8xf32>
    %54 = arith.addf %51, %53 : vector<128x8xf32>
    %55 = arith.addf %54, %30 : vector<128x8xf32>
    %cst_67 = arith.constant 0.000000e+00 : f32
    %56 = vector.broadcast %cst_67 : f32 to vector<128x8xf32>
    %57 = arith.maximumf %55, %56 : vector<128x8xf32>
    %c0_68 = arith.constant 0 : index
    %c0_69 = arith.constant 0 : index
    %58 = vector.load %arg11[%c0_68, %c0_69] : memref<128x8xf32, #tpu.memory_space<vmem>>, vector<128x8xf32>
    tpu.vector_store %arg11[%c0_68, %c0_69], %57 {strides = array<i32>} : memref<128x8xf32, #tpu.memory_space<vmem>>, vector<128x8xf32>,
    return
  }
  func.func @transform_0(%arg0: i32) -> (i32, i32, i32) {
    %c0_i32 = arith.constant 0 : i32
    %c0_i32_0 = arith.constant 0 : i32
    %c0_i32_1 = arith.constant 0 : i32
    return %arg0, %c0_i32, %c0_i32_0 : i32, i32, i32
  }
  func.func @transform_1(%arg0: i32) -> (i32, i32) {
    %c0_i32 = arith.constant 0 : i32
    %c0_i32_0 = arith.constant 0 : i32
    %c0_i32_1 = arith.constant 0 : i32
    return %c0_i32, %c0_i32_0 : i32, i32
  }
  func.func @transform_2(%arg0: i32) -> (i32, i32) {
    %c0_i32 = arith.constant 0 : i32
    %c0_i32_0 = arith.constant 0 : i32
    %c0_i32_1 = arith.constant 0 : i32
    return %c0_i32, %c0_i32_0 : i32, i32
  }
  func.func @transform_3(%arg0: i32) -> (i32, i32) {
    %c0_i32 = arith.constant 0 : i32
    %c0_i32_0 = arith.constant 0 : i32
    %c0_i32_1 = arith.constant 0 : i32
    return %c0_i32, %c0_i32_0 : i32, i32
  }
  func.func @transform_4(%arg0: i32) -> (i32, i32) {
    %c0_i32 = arith.constant 0 : i32
    %c0_i32_0 = arith.constant 0 : i32
    %c0_i32_1 = arith.constant 0 : i32
    return %c0_i32, %c0_i32_0 : i32, i32
  }
  func.func @transform_5(%arg0: i32) -> (i32, i32) {
    %c0_i32 = arith.constant 0 : i32
    %c0_i32_0 = arith.constant 0 : i32
    %c0_i32_1 = arith.constant 0 : i32
    return %c0_i32, %c0_i32_0 : i32, i32
  }
  func.func @transform_6(%arg0: i32) -> (i32, i32) {
    %c0_i32 = arith.constant 0 : i32
    %c0_i32_0 = arith.constant 0 : i32
    %c0_i32_1 = arith.constant 0 : i32
    return %c0_i32, %c0_i32_0 : i32, i32
  }
  func.func @transform_7(%arg0: i32) -> (i32, i32) {
    %c0_i32 = arith.constant 0 : i32
    %c0_i32_0 = arith.constant 0 : i32
    %c0_i32_1 = arith.constant 0 : i32
    return %c0_i32, %c0_i32_0 : i32, i32
  }
  func.func @transform_8(%arg0: i32) -> (i32, i32) {
    %c0_i32 = arith.constant 0 : i32
    %c0_i32_0 = arith.constant 0 : i32
    %c0_i32_1 = arith.constant 0 : i32
    return %c0_i32, %c0_i32_0 : i32, i32
  }
  func.func @transform_9(%arg0: i32) -> (i32, i32) {
    %c0_i32 = arith.constant 0 : i32
    %c0_i32_0 = arith.constant 0 : i32
    %c0_i32_1 = arith.constant 0 : i32
    return %c0_i32, %c0_i32_0 : i32, i32
  }
  func.func @transform_10(%arg0: i32) -> (i32, i32) {
    %c0_i32 = arith.constant 0 : i32
    %c0_i32_0 = arith.constant 0 : i32
    return %arg0, %c0_i32 : i32, i32
  }
}

</mosaic_0001>

<bundles_post_ra>
// kernel: tpu_custom_call.1
= control target key start
LH: loop header
LB: loop body
LE: loop exit
PB: predicated region body
PF: predicated region fallthrough
CT: control target
= control target key end

     0   :  { %s4409_s13 = smov 0   ;;  %s6252_s0 = inlined_call_operand.vmem [shape: bf16[16,24,4], index: 0, kind: input, shape index: {}]   ;;  %s6253_s1 = inlined_call_operand.vmem [shape: bf16[36,8], index: 1, kind: input, shape index: {}]   ;;  %s6254_s2 = inlined_call_operand.vmem [shape: bf16[72,8], index: 2, kind: input, shape index: {}]   ;;  %s6255_s3 = inlined_call_operand.vmem [shape: bf16[4,8], index: 3, kind: input, shape index: {}]   ;;  %s6256_s4 = inlined_call_operand.vmem [shape: f32[1,8], index: 4, kind: input, shape index: {}]   ;;  %s6257_s5 = inlined_call_operand.vmem [shape: f32[1,8], index: 5, kind: input, shape index: {}]   ;;  %s6258_s6 = inlined_call_operand.vmem [shape: f32[1,8], index: 6, kind: input, shape index: {}]   ;;  %s6259_s7 = inlined_call_operand.vmem [shape: f32[1,8], index: 7, kind: input, shape index: {}]   ;;  %s6260_s8 = inlined_call_operand.vmem [shape: f32[1,8], index: 8, kind: input, shape index: {}]   ;;  %s6261_s9 = inlined_call_operand.vmem [shape: f32[1,8], index: 9, kind: input, shape index: {}]   ;;  %s6262_s10 = inlined_call_operand.vmem [shape: f32[256,8], index: 10, kind: output, shape index: {}]  }
   0x1 LB: > { %s3789_s14 = sadd.s32 4294967295, %s4339_s13   ;;  %p3793_p0 = scmp.ge.s32.totalorder %s4339_s13, 1  ;;  %s4339_s13 = sphi %s4409_s13, %s20_s13  }
   0x2   : > { %p314_p1 = scmp.lt.s32.totalorder %s4339_s13, 3 }
   0x4   : > { %p315_p2 = pnand %p3793_p0, %p314_p1 }
   0x5   : > { %s3794_s15 = sshll.u32 (!%p315_p2), %s3789_s14, 3  ;;  %s4341_s20 = smov (!%p315_p2), 16  }
   0x6   : > { %318 = sbr.rel (%p315_p2) target bundleno = 951 (0x3b7), region = 60  ;;  %p354_p3 = scmp.lt.s32.totalorder (!%p315_p2), %s3794_s15, 15 }
   0x7   : > { %s4342_s21 = smov (!%p315_p2), 8   ;;  %s4343_s22 = smov (!%p315_p2), 4  }
   0x8   : > { %s4344_s23 = smov (!%p315_p2), 12   ;;  %s4345_s24 = smov (!%p315_p2), 20  }
   0x9   : > { %s4346_s25 = smov (!%p315_p2), 24   ;;  %s4347_s26 = smov (!%p315_p2), 28  }
   0xa   : > { %s4348_s27 = smov (!%p315_p2), 32   ;;  %s4353_s28 = smov (!%p315_p2), 40  }
   0xb   : > { %s6266_s15 = smov (!%p354_p3, %s3794_s15), 15  ;;  %vm882_vm0 = vcmask 1045504   ;;  %vm640_vm1 = vcmask 1046528   ;;  %vm503_vm2 = vsmask.f32 7424  ;;  %vm1124_vm5 = vcmask 1044480  }
   0xc   : > { %s4143_s16 = smul.u32 12, %s6266_s15  ;;  %vm705_vm3 = vsmask.f32 6400  ;;  %vm947_vm4 = vsmask.f32 5376  ;;  %vm1539_vm7 = vcmask 1041408  }
   0xd   : > { %vm1189_vm6 = vsmask.f32 4352  ;;  %vm1366_vm8 = vcmask 31744   ;;  %vm1383_vm9 = vcmask 64512   ;;  %vm1400_vm10 = vcmask 97280  }
   0xe   : > { %s4422_s19 = scalar_lea.vmem %s6252_s0, %s4143_s16  ;;  %vm1417_vm11 = vcmask 130048   ;;  %vm1434_vm12 = vcmask 162816   ;;  %vm1451_vm13 = vcmask 195584   ;;  %vm1468_vm14 = vcmask 228352   ;;  %s4350_s16 = smov 64  }
   0xf   : > { %v4425_v0 = vld [vmem:[%s4422_s19 + $0x4] sm:$0xf]  ;;  %v399_v1 = vld [vmem:[%s4422_s19 + $0x8] sm:$0x3]  ;;  %v407_v2 = vld [vmem:[%s4422_s19] sm:$0xc] }
  0x10   : > { %v4429_v3 = vcombine.low %v399_v1, %v399_v1  ;;  %v4432_v4 = vcombine.low %v407_v2, %v4425_v0  ;;  %v391_v5 = vld [vmem:[%s4422_s19] sm:$0xe]  ;;  %v4167_v6 = vld [vmem:[%s4422_s19 + $0x8] ss:$0 sps:$4 sm:$0x11]   ;;  %vm1485_vm15 = vcmask 261120  }
  0x11   : > { %v4437_v7 = vcombine.low %v391_v5, %v4425_v0  ;;  %v4440_v8 = vld [vmem:[%s4422_s19 + $0x10] sm:$0xf]  ;;  %v392_v11 = vld [vmem:[%s4422_s19 + $0xc] sm:$0xe]  ;;  %v642_v13 = vrot.slane %v4167_v6, 1  ;;  %v512_v16 = vshll.u32 %v4167_v6, 16 }
  0x12   : > { %v883_v9 = vrot.slane %v4432_v4, 2  ;;  %v884_v10 = vrot.slane %v4429_v3, 2  ;;  %v4169_v14 = vld [vmem:[%s4422_s19 + $0x14] ss:$0 sps:$4 sm:$0x11]   ;;  %v3815_v15 = vcombine.low %v392_v11, %v4440_v8  ;;  %v715_v55 = vshrl.u32 %v4429_v3, 16 }
  0x13   : > { %v641_v12 = vrot.slane %v4437_v7, 1  ;;  %v367_v18 = vld [vmem:[%s4422_s19] sm:$0xf]  ;;  %v400_v19 = vld [vmem:[%s4422_s19 + $0x14] sm:$0x3]  ;;  %v645_v23 = vrot.slane %v4169_v14, 1 }
  0x14   : > { %v885_v17 = vsel %vm882_vm0, %v883_v9, %v884_v10  ;;  %v408_v20 = vld [vmem:[%s4422_s19 + $0xc] sm:$0xc]  ;;  %v644_v22 = vrot.slane %v3815_v15, 1  ;;  %v4455_v24 = vcombine.low %v367_v18, %v4425_v0  ;;  %v3823_v26 = vcombine.low %v400_v19, %v400_v19  ;;  %v4471_v48 = vld [vmem:[%s4422_s19 + $0x14] ss:$0 sps:$4 sm:$0x77]  }
  0x15   : > { %907 = vrot.lane.b32.xlu0 %v885_v17, %s4341_s20  ;;  %v643_v21 = vsel %vm640_vm1, %v641_v12, %v642_v13  ;;  %v369_v25 = vld [vmem:[%s4422_s19 + $0xc] sm:$0xf]  ;;  %v3831_v27 = vcombine.low %v408_v20, %v4440_v8  ;;  %v514_v31 = vrot.slane %v512_v16, 1  ;;  %v524_v35 = vshll.u32 %v4169_v14, 16  ;;  %v423_v14 = vld [vmem:[%s4422_s19] sm:$0x8] }
  0x16   : > { %665 = vrot.lane.b32.xlu1 %v643_v21, %s4342_s21  ;;  %v646_v28 = vsel %vm640_vm1, %v644_v22, %v645_v23  ;;  %v505_v29 = vshrl.u32 %v4455_v24, 16  ;;  %v507_v30 = vshll.u32 %v4455_v24, 16  ;;  %v887_v33 = vrot.slane %v3823_v26, 2  ;;  %v4479_v57 = vld [vmem:[%s4422_s19 + $0x8] ss:$0 sps:$4 sm:$0x77]  }
  0x17   : > { %v886_v32 = vrot.slane %v3831_v27, 2  ;;  %v4464_v34 = vcombine.low %v369_v25, %v4440_v8  ;;  %v724_v37 = vshrl.u32 %v3815_v15, 16  ;;  %v727_v38 = vshll.u32 %v3815_v15, 16  ;;  %v424_v9 = vld [vmem:[%s4422_s19 + $0xc] sm:$0x8] }
  0x18   : > { %v509_v36 = vrot.slane %v507_v30, 1  ;;  %v732_v39 = vshrl.u32 %v3823_v26, 16  ;;  %v526_v43 = vrot.slane %v524_v35, 1  ;;  %v735_v50 = vshll.u32 %v3823_v26, 16 }
  0x19   : > { %v888_v40 = vsel %vm882_vm0, %v886_v32, %v887_v33  ;;  %v517_v41 = vshrl.u32 %v4464_v34, 16  ;;  %v519_v42 = vshll.u32 %v4464_v34, 16  ;;  %v726_v45 = vrot.slane %v724_v37, 1  ;;  %v4503_v32 = vld [vmem:[%s4422_s19 + $0x8] sm:$0xf] }
  0x1a   : > { %667 = vrot.lane.b32.xlu1 %v646_v28, %s4342_s21  ;;  %v510_v44 = vor.u32 %v509_v36, %v505_v29  ;;  %v729_v46 = vrot.slane %v727_v38, 2  ;;  %v734_v47 = vrot.slane %v732_v39, 1  ;;  %v707_v51 = vshrl.u32 %v4437_v7, 16  ;;  %v4498_v28 = vld [vmem:[%s4422_s19 + $0x14] sm:$0xf] }
  0x1b   : > { %v521_v49 = vrot.slane %v519_v42, 1  ;;  %v710_v52 = vshll.u32 %v4437_v7, 16  ;;  %v718_v56 = vshll.u32 %v4429_v3, 16  ;;  %v737_v59 = vrot.slane %v735_v50, 2  ;;  %v4516_v50 = vld [vmem:[%s4422_s19 + $0x1c] sm:$0xf] }
  0x1c   : > { %v515_v53 = vsel %vm503_vm2, %v510_v44, %v514_v31  ;;  %v730_v54 = vor.u32 %v729_v46, %v726_v45  ;;  %v709_v60 = vrot.slane %v707_v51, 1  ;;  %v717_v62 = vrot.slane %v715_v55, 1  ;;  %v4520_v55 = vld [vmem:[%s4422_s19 + $0x20] ss:$0 sps:$4 sm:$0x11]  }
  0x1d   : > { %600 = vrot.lane.b32.xlu0 %v515_v53, %s4343_s22  ;;  %v522_v58 = vor.u32 %v521_v49, %v517_v41  ;;  %v712_v61 = vrot.slane %v710_v52, 2  ;;  %v720_v63 = vrot.slane %v718_v56, 2  ;;  %v966_v1 = vshrl.u32 %v3831_v27, 16  ;;  %v371_v49 = vld [vmem:[%s4422_s19 + $0x18] sm:$0xf] }
  0x1e   : > { %909 = vrot.lane.b32.xlu1 %v888_v40, %s4341_s20  ;;  %v969_v2 = vshll.u32 %v3831_v27, 16  ;;  %v738_v5 = vor.u32 %v737_v59, %v734_v47  ;;  %v974_v7 = vshrl.u32 %v4471_v48, 16  ;;  %v977_v13 = vshll.u32 %v4471_v48, 16 }
  0x1f   : > { %v527_v3 = vsel %vm503_vm2, %v522_v58, %v526_v43  ;;  %v713_v6 = vor.u32 %v712_v61, %v709_v60  ;;  %v721_v10 = vor.u32 %v720_v63, %v717_v62  ;;  %v968_v11 = vrot.slane %v966_v1, 2  ;;  %v393_v60 = vld [vmem:[%s4422_s19 + $0x18] sm:$0xe] }
  0x20   : > { %v971_v12 = vrot.slane %v969_v2, 3  ;;  %v739_v15 = vsel %vm705_vm3, %v730_v54, %v738_v5  ;;  %v976_v16 = vrot.slane %v974_v7, 2  ;;  %v949_v17 = vshrl.u32 %v4432_v4, 16  ;;  %v373_v2 = vld [vmem:[%s4422_s19 + $0x24] sm:$0xf] }
  0x21   : > { %602 = vrot.lane.b32.xlu0 %v527_v3, %s4343_s22  ;;  %v952_v18 = vshll.u32 %v4432_v4, 16  ;;  %v722_v19 = vsel %vm705_vm3, %v713_v6, %v721_v10  ;;  %v979_v21 = vrot.slane %v977_v13, 3  ;;  %v957_v22 = vshrl.u32 %v4479_v57, 16  ;;  %v4528_v3 = vld [vmem:[%s4422_s19 + $0x28] sm:$0xf] }
  0x22   : > { %844 = vrot.lane.b32.xlu1 %v739_v15, %s4344_s23  ;;  %v972_v20 = vor.u32 %v971_v12, %v968_v11  ;;  %v951_v23 = vrot.slane %v949_v17, 2  ;;  %v960_v26 = vshll.u32 %v4479_v57, 16  ;;  %v3847_v27 = vcombine.low %v424_v9, %v4440_v8  ;;  %v4187_v9 = vld [vmem:[%s4422_s19 + $0x2c] ss:$0 sps:$4 sm:$0x11]  }
  0x23   : > { %v954_v25 = vrot.slane %v952_v18, 3  ;;  %v980_v29 = vor.u32 %v979_v21, %v976_v16  ;;  %v959_v4 = vrot.slane %v957_v22, 2  ;;  %v1129_v30 = vrot.slane %v4471_v48, 3  ;;  %v401_v17 = vld [vmem:[%s4422_s19 + $0x20] sm:$0x3] }
  0x24   : > { %v3846_v31 = vcombine.low %v423_v14, %v4425_v0  ;;  %v962_v35 = vrot.slane %v960_v26, 3  ;;  %v1128_v36 = vrot.slane %v3847_v27, 3  ;;  %v1126_v38 = vrot.slane %v4479_v57, 3  ;;  %v394_v22 = vld [vmem:[%s4422_s19 + $0x24] sm:$0xe] }
  0x25   : > { %842 = vrot.lane.b32.xlu0 %v722_v19, %s4344_s23  ;;  %v955_v33 = vor.u32 %v954_v25, %v951_v23  ;;  %v981_v37 = vsel %vm947_vm4, %v972_v20, %v980_v29  ;;  %v3855_v39 = vcombine.low %v4498_v28, %v4498_v28  ;;  %v1208_v40 = vshrl.u32 %v3847_v27, 16 }
  0x26   : > { %1086 = vrot.lane.b32.xlu1 %v981_v37, %s4345_s24  ;;  %v963_v41 = vor.u32 %v962_v35, %v959_v4  ;;  %v1125_v42 = vrot.slane %v3846_v31, 3  ;;  %v1211_v43 = vshll.u32 %v3847_v27, 16  ;;  %v3854_v44 = vcombine.low %v4503_v32, %v4503_v32 }
  0x27   : > { %v1130_v45 = vsel %vm1124_vm5, %v1128_v36, %v1129_v30  ;;  %v1210_v46 = vrot.slane %v1208_v40, 3  ;;  %v1216_v47 = vshrl.u32 %v3855_v39, 16  ;;  %v1219_v48 = vshll.u32 %v3855_v39, 16  ;;  %v409_v36 = vld [vmem:[%s4422_s19 + $0x18] sm:$0xc] }
  0x28   : > { %v964_v51 = vsel %vm947_vm4, %v955_v33, %v963_v41  ;;  %v1213_v52 = vrot.slane %v1211_v43, 4  ;;  %v1191_v53 = vshrl.u32 %v3846_v31, 16  ;;  %v1194_v54 = vshll.u32 %v3846_v31, 16  ;;  %v402_v41 = vld [vmem:[%s4422_s19 + $0x2c] sm:$0x3] }
  0x29   : > { %1084 = vrot.lane.b32.xlu0 %v964_v51, %s4345_s24  ;;  %v1218_v56 = vrot.slane %v1216_v47, 3  ;;  %v1221_v57 = vrot.slane %v1219_v48, 4  ;;  %v1199_v58 = vshrl.u32 %v3854_v44, 16  ;;  %v1202_v59 = vshll.u32 %v3854_v44, 16 }
  0x2a   : > { %1151 = vrot.lane.b32.xlu1 %v1130_v45, %s4346_s25  ;;  %v1127_v61 = vsel %vm1124_vm5, %v1125_v42, %v1126_v38  ;;  %v1214_v62 = vor.u32 %v1213_v52, %v1210_v46  ;;  %v1193_v63 = vrot.slane %v1191_v53, 3  ;;  %v1196_v1 = vrot.slane %v1194_v54, 4  ;;  %v4561_v45 = vld [vmem:[%s4422_s19 + $0x20] ss:$0 sps:$4 sm:$0x77]  }
  0x2b   : > { %v1222_v5 = vor.u32 %v1221_v57, %v1218_v56  ;;  %v1201_v6 = vrot.slane %v1199_v58, 3  ;;  %v1204_v7 = vrot.slane %v1202_v59, 4  ;;  %v4532_v11 = vcombine.low %v371_v49, %v4516_v50 }
  0x2c   : > { %v1197_v10 = vor.u32 %v1196_v1, %v1193_v63  ;;  %v536_v12 = vshll.u32 %v4520_v55, 16  ;;  %v3816_v13 = vcombine.low %v393_v60, %v4516_v50  ;;  %v4539_v16 = vcombine.low %v373_v2, %v4528_v3 }
  0x2d   : > { %1149 = vrot.lane.b32.xlu0 %v1127_v61, %s4346_s25  ;;  %v1223_v14 = vsel %vm1189_vm6, %v1214_v62, %v1222_v5  ;;  %v1205_v15 = vor.u32 %v1204_v7, %v1201_v6  ;;  %v3862_v18 = vcombine.low %v4425_v0, %v4503_v32  ;;  %v529_v19 = vshrl.u32 %v4532_v11, 16  ;;  %v410_v62 = vld [vmem:[%s4422_s19 + $0x24] sm:$0xc] }
  0x2e   : > { %1328 = vrot.lane.b32.xlu1 %v1223_v14, %s4347_s26  ;;  %v531_v20 = vshll.u32 %v4532_v11, 16  ;;  %v648_v21 = vrot.slane %v4520_v55, 1  ;;  %v541_v25 = vshrl.u32 %v4539_v16, 16  ;;  %v543_v26 = vshll.u32 %v4539_v16, 16 }
  0x2f   : > { %v1206_v23 = vsel %vm1189_vm6, %v1197_v10, %v1205_v15  ;;  %v548_v27 = vshll.u32 %v4187_v9, 16  ;;  %v538_v4 = vrot.slane %v536_v12, 1  ;;  %v4552_v30 = vcombine.low %v401_v17, %v401_v17  ;;  %v4581_v15 = vld [vmem:[%s4422_s19 + $0x2c] ss:$0 sps:$4 sm:$0x77]  }
  0x30   : > { %v533_v29 = vrot.slane %v531_v20, 1  ;;  %v741_v0 = vshrl.u32 %v3816_v13, 16  ;;  %v647_v31 = vrot.slane %v3816_v13, 1  ;;  %v545_v32 = vrot.slane %v543_v26, 1 }
  0x31   : > { %1326 = vrot.lane.b32.xlu0 %v1206_v23, %s4347_s26  ;;  %v744_v33 = vshll.u32 %v3816_v13, 16  ;;  %v3817_v35 = vcombine.low %v394_v22, %v4528_v3  ;;  %v550_v38 = vrot.slane %v548_v27, 1  ;;  %v749_v39 = vshrl.u32 %v4552_v30, 16 }
  0x32   : > { %v534_v37 = vor.u32 %v533_v29, %v529_v19  ;;  %v752_v40 = vshll.u32 %v4552_v30, 16  ;;  %v546_v42 = vor.u32 %v545_v32, %v541_v25  ;;  %v743_v43 = vrot.slane %v741_v0, 1 }
  0x33   : > { %v746_v44 = vrot.slane %v744_v33, 2  ;;  %v650_v47 = vrot.slane %v3817_v35, 1  ;;  %v651_v48 = vrot.slane %v4187_v9, 1  ;;  %v3832_v49 = vcombine.low %v409_v36, %v4516_v50  ;;  %v425_v9 = vld [vmem:[%s4422_s19 + $0x18] sm:$0x8] }
  0x34   : > { %v539_v46 = vsel %vm503_vm2, %v534_v37, %v538_v4  ;;  %v3863_v51 = vcombine.low %v4440_v8, %v4498_v28  ;;  %v751_v52 = vrot.slane %v749_v39, 1  ;;  %v754_v53 = vrot.slane %v752_v40, 2 }
  0x35   : > { %1350 = vrot.lane.b32.xlu0 %v3862_v18, %s4348_s27  ;;  %604 = vrot.lane.b32.xlu1 %v539_v46, %s4343_s22  ;;  %v649_v54 = vsel %vm640_vm1, %v647_v31, %v648_v21  ;;  %v551_v55 = vsel %vm503_vm2, %v546_v42, %v550_v38  ;;  %v3825_v56 = vcombine.low %v402_v41, %v402_v41  ;;  %v758_v57 = vshrl.u32 %v3817_v35, 16  ;;  %v426_v38 = vld [vmem:[%s4422_s19 + $0x24] sm:$0x8] }
  0x36   : > { %v747_v58 = vor.u32 %v746_v44, %v743_v43  ;;  %v761_v59 = vshll.u32 %v3817_v35, 16  ;;  %v983_v60 = vshrl.u32 %v3832_v49, 16  ;;  %v986_v61 = vshll.u32 %v3832_v49, 16 }
  0x37   : > { %v652_v63 = vsel %vm640_vm1, %v650_v47, %v651_v48  ;;  %v760_v8 = vrot.slane %v758_v57, 1  ;;  %v766_v28 = vshrl.u32 %v3825_v56, 16  ;;  %v991_v1 = vshrl.u32 %v4561_v45, 16  ;;  %v4601_v48 = vld [vmem:[%s4422_s19 + $0x2c] sm:$0xf] }
  0x38   : > { %v755_v2 = vor.u32 %v754_v53, %v751_v52  ;;  %v890_v5 = vrot.slane %v4552_v30, 2  ;;  %v763_v6 = vrot.slane %v761_v59, 2  ;;  %v769_v7 = vshll.u32 %v3825_v56, 16  ;;  %v4587_v30 = vld [vmem:[%s4422_s19 + $0x20] sm:$0xf] }
  0x39   : > { %1352 = vrot.lane.b32.xlu0 %v3863_v51, %s4348_s27  ;;  %606 = vrot.lane.b32.xlu1 %v551_v55, %s4343_s22  ;;  %v889_v10 = vrot.slane %v3832_v49, 2  ;;  %v768_v12 = vrot.slane %v766_v28, 1  ;;  %v994_v13 = vshll.u32 %v4561_v45, 16  ;;  %v3833_v14 = vcombine.low %v410_v62, %v4528_v3  ;;  %v4607_v59 = vld [vmem:[%s4422_s19 + $0x34] sm:$0xf] }
  0x3a   : > { %v764_v17 = vor.u32 %v763_v6, %v760_v8  ;;  %v771_v18 = vrot.slane %v769_v7, 2  ;;  %v985_v19 = vrot.slane %v983_v60, 2  ;;  %v988_v20 = vrot.slane %v986_v61, 3  ;;  %v4612_v8 = vld [vmem:[%s4422_s19 + $0x38] ss:$0 sps:$4 sm:$0x11]  }
  0x3b   : > { %v993_v21 = vrot.slane %v991_v1, 2  ;;  %v996_v22 = vrot.slane %v994_v13, 3  ;;  %v892_v23 = vrot.slane %v3833_v14, 2  ;;  %v893_v25 = vrot.slane %v3825_v56, 2 }
  0x3c   : > { %v772_v26 = vor.u32 %v771_v18, %v768_v12  ;;  %v3848_v27 = vcombine.low %v425_v9, %v4516_v50  ;;  %v1000_v29 = vshrl.u32 %v3833_v14, 16  ;;  %v1003_v4 = vshll.u32 %v3833_v14, 16  ;;  %v377_v18 = vld [vmem:[%s4422_s19 + $0x3c] sm:$0xf] }
  0x3d   : > { %669 = vrot.lane.b32.xlu0 %v649_v54, %s4342_s21  ;;  %671 = vrot.lane.b32.xlu1 %v652_v63, %s4342_s21  ;;  %v756_v0 = vsel %vm705_vm3, %v747_v58, %v755_v2  ;;  %v891_v31 = vsel %vm882_vm0, %v889_v10, %v890_v5  ;;  %v1008_v32 = vshrl.u32 %v4581_v15, 16  ;;  %v1011_v37 = vshll.u32 %v4581_v15, 16  ;;  %v375_v54 = vld [vmem:[%s4422_s19 + $0x30] sm:$0xf] }
  0x3e   : > { %v773_v33 = vsel %vm705_vm3, %v764_v17, %v772_v26  ;;  %v1002_v35 = vrot.slane %v1000_v29, 2  ;;  %v1005_v36 = vrot.slane %v1003_v4, 3  ;;  %v989_v39 = vor.u32 %v988_v20, %v985_v19  ;;  %v395_v5 = vld [vmem:[%s4422_s19 + $0x30] sm:$0xe]  ;;  %v403_v4 = vld [vmem:[%s4422_s19 + $0x38] sm:$0x3] }
  0x3f   : > { %v997_v40 = vor.u32 %v996_v22, %v993_v21  ;;  %v1010_v41 = vrot.slane %v1008_v32, 2  ;;  %v3856_v42 = vcombine.low %v4587_v30, %v4587_v30  ;;  %v894_v43 = vsel %vm882_vm0, %v892_v23, %v893_v25  ;;  %v4629_v23 = vld [vmem:[%s4422_s19 + $0x44] ss:$0 sps:$4 sm:$0x11]  }
  0x40   : > { %v1013_v44 = vrot.slane %v1011_v37, 3  ;;  %v1225_v46 = vshrl.u32 %v3848_v27, 16  ;;  %v1228_v47 = vshll.u32 %v3848_v27, 16  ;;  %v1006_v49 = vor.u32 %v1005_v36, %v1002_v35 }
  0x41   : > { %846 = vrot.lane.b32.xlu0 %v756_v0, %s4344_s23  ;;  %848 = vrot.lane.b32.xlu1 %v773_v33, %s4344_s23  ;;  %v1233_v51 = vshrl.u32 %v3856_v42, 16  ;;  %v1236_v52 = vshll.u32 %v3856_v42, 16  ;;  %v3849_v53 = vcombine.low %v426_v38, %v4528_v3  ;;  %v1131_v55 = vrot.slane %v3848_v27, 3  ;;  %v396_v38 = vld [vmem:[%s4422_s19 + $0x3c] sm:$0xe] }
  0x42   : > { %v1132_v56 = vrot.slane %v4561_v45, 3  ;;  %v1014_v57 = vor.u32 %v1013_v44, %v1010_v41  ;;  %v1227_v58 = vrot.slane %v1225_v46, 3  ;;  %v1230_v60 = vrot.slane %v1228_v47, 4 }
  0x43   : > { %v1235_v61 = vrot.slane %v1233_v51, 3  ;;  %v1238_v62 = vrot.slane %v1236_v52, 4  ;;  %v3857_v63 = vcombine.low %v4601_v48, %v4601_v48  ;;  %v1134_v28 = vrot.slane %v3849_v53, 3 }
  0x44   : > { %v1135_v45 = vrot.slane %v4581_v15, 3  ;;  %v1242_v1 = vshrl.u32 %v3849_v53, 16  ;;  %v1245_v2 = vshll.u32 %v3849_v53, 16  ;;  %v998_v6 = vsel %vm947_vm4, %v989_v39, %v997_v40  ;;  %v4626_v15 = vld [vmem:[%s4422_s19 + $0x40] sm:$0xf] }
  0x45   : > { %911 = vrot.lane.b32.xlu0 %v891_v31, %s4341_s20  ;;  %913 = vrot.lane.b32.xlu1 %v894_v43, %s4341_s20  ;;  %v1015_v7 = vsel %vm947_vm4, %v1006_v49, %v1014_v57  ;;  %v1250_v9 = vshrl.u32 %v3857_v63, 16  ;;  %v1253_v10 = vshll.u32 %v3857_v63, 16  ;;  %v1133_v12 = vsel %vm1124_vm5, %v1131_v55, %v1132_v56  ;;  %v411_v49 = vld [vmem:[%s4422_s19 + $0x30] sm:$0xc]  ;;  %v404_v53 = vld [vmem:[%s4422_s19 + $0x44] sm:$0x3] }
  0x46   : > { %v1244_v13 = vrot.slane %v1242_v1, 3  ;;  %v1247_v14 = vrot.slane %v1245_v2, 4  ;;  %v4622_v17 = vcombine.low %v375_v54, %v4607_v59  ;;  %v1231_v19 = vor.u32 %v1230_v60, %v1227_v58  ;;  %v4671_v63 = vld [vmem:[%s4422_s19 + $0x38] ss:$0 sps:$4 sm:$0x77]  }
  0x47   : > { %v1239_v20 = vor.u32 %v1238_v62, %v1235_v61  ;;  %v1252_v21 = vrot.slane %v1250_v9, 3  ;;  %v1255_v22 = vrot.slane %v1253_v10, 4  ;;  %v1136_v25 = vsel %vm1124_vm5, %v1134_v28, %v1135_v45  ;;  %v412_v9 = vld [vmem:[%s4422_s19 + $0x3c] sm:$0xc] }
  0x48   : > { %v1248_v26 = vor.u32 %v1247_v14, %v1244_v13  ;;  %v555_v27 = vshll.u32 %v4622_v17, 16  ;;  %v560_v29 = vshll.u32 %v4612_v8, 16  ;;  %v553_v31 = vshrl.u32 %v4622_v17, 16 }
  0x49   : > { %1088 = vrot.lane.b32.xlu0 %v998_v6, %s4345_s24  ;;  %1090 = vrot.lane.b32.xlu1 %v1015_v7, %s4345_s24  ;;  %v1256_v0 = vor.u32 %v1255_v22, %v1252_v21  ;;  %v3818_v32 = vcombine.low %v395_v5, %v4607_v59  ;;  %v4640_v33 = vcombine.low %v377_v18, %v4626_v15  ;;  %v572_v42 = vshll.u32 %v4629_v23, 16 }
  0x4a   : > { %v557_v35 = vrot.slane %v555_v27, 1  ;;  %v4643_v37 = vcombine.low %v403_v4, %v403_v4  ;;  %v1240_v39 = vsel %vm1189_vm6, %v1231_v19, %v1239_v20  ;;  %v562_v41 = vrot.slane %v560_v29, 1 }
  0x4b   : > { %v567_v36 = vshll.u32 %v4640_v33, 16  ;;  %v1257_v40 = vsel %vm1189_vm6, %v1248_v26, %v1256_v0  ;;  %v565_v44 = vshrl.u32 %v4640_v33, 16  ;;  %v775_v47 = vshrl.u32 %v3818_v32, 16  ;;  %v4686_v26 = vld [vmem:[%s4422_s19 + $0x44] ss:$0 sps:$4 sm:$0x77]  }
  0x4c   : > { %v558_v43 = vor.u32 %v557_v35, %v553_v31  ;;  %v778_v51 = vshll.u32 %v3818_v32, 16  ;;  %v3819_v52 = vcombine.low %v396_v38, %v4626_v15  ;;  %v3864_v54 = vcombine.low %v4516_v50, %v4587_v30  ;;  %v427_v35 = vld [vmem:[%s4422_s19 + $0x30] sm:$0x8] }
  0x4d   : > { %1153 = vrot.lane.b32.xlu0 %v1133_v12, %s4346_s25  ;;  %1155 = vrot.lane.b32.xlu1 %v1136_v25, %s4346_s25  ;;  %v569_v46 = vrot.slane %v567_v36, 1  ;;  %v3865_v55 = vcombine.low %v4528_v3, %v4601_v48  ;;  %v783_v56 = vshrl.u32 %v4643_v37, 16  ;;  %v786_v57 = vshll.u32 %v4643_v37, 16  ;;  %v4694_v36 = vld [vmem:[%s4422_s19 + $0x38] sm:$0xf] }
  0x4e   : > { %v653_v58 = vrot.slane %v3818_v32, 1  ;;  %v654_v60 = vrot.slane %v4612_v8, 1  ;;  %v574_v61 = vrot.slane %v572_v42, 1  ;;  %v4665_v62 = vcombine.low %v411_v49, %v4607_v59 }
  0x4f   : > { %v563_v50 = vsel %vm503_vm2, %v558_v43, %v562_v41  ;;  %v570_v30 = vor.u32 %v569_v46, %v565_v44  ;;  %v777_v3 = vrot.slane %v775_v47, 1  ;;  %v4668_v48 = vcombine.low %v404_v53, %v404_v53  ;;  %v428_v53 = vld [vmem:[%s4422_s19 + $0x3c] sm:$0x8] }
  0x50   : > { %v780_v28 = vrot.slane %v778_v51, 2  ;;  %v657_v45 = vrot.slane %v4629_v23, 1  ;;  %v792_v1 = vshrl.u32 %v3819_v52, 16  ;;  %v795_v2 = vshll.u32 %v3819_v52, 16 }
  0x51   : > { %1330 = vrot.lane.b32.xlu0 %v1240_v39, %s4347_s26  ;;  %1332 = vrot.lane.b32.xlu1 %v1257_v40, %s4347_s26  ;;  %v785_v5 = vrot.slane %v783_v56, 1  ;;  %v788_v8 = vrot.slane %v786_v57, 2  ;;  %v800_v6 = vshrl.u32 %v4668_v48, 16  ;;  %v803_v7 = vshll.u32 %v4668_v48, 16 }
  0x52   : > { %v656_v10 = vrot.slane %v3819_v52, 1  ;;  %v794_v12 = vrot.slane %v792_v1, 1  ;;  %v797_v13 = vrot.slane %v795_v2, 2  ;;  %v1017_v14 = vshrl.u32 %v4665_v62, 16 }
  0x53   : > { %v575_v18 = vsel %vm503_vm2, %v570_v30, %v574_v61  ;;  %v802_v19 = vrot.slane %v800_v6, 1  ;;  %v805_v20 = vrot.slane %v803_v7, 2  ;;  %v1020_v21 = vshll.u32 %v4665_v62, 16  ;;  %v4710_v30 = vld [vmem:[%s4422_s19 + $0x44] sm:$0xf] }
  0x54   : > { %v1025_v22 = vshrl.u32 %v4671_v63, 16  ;;  %v1028_v23 = vshll.u32 %v4671_v63, 16  ;;  %v3835_v25 = vcombine.low %v412_v9, %v4626_v15  ;;  %v655_v27 = vsel %vm640_vm1, %v653_v58, %v654_v60 }
  0x55   : > { %1354 = vrot.lane.b32.xlu0 %v3864_v54, %s4348_s27  ;;  %608 = vrot.lane.b32.xlu1 %v563_v50, %s4343_s22  ;;  %v781_v29 = vor.u32 %v780_v28, %v777_v3  ;;  %v789_v4 = vor.u32 %v788_v8, %v785_v5  ;;  %v658_v0 = vsel %vm640_vm1, %v656_v10, %v657_v45  ;;  %v1019_v32 = vrot.slane %v1017_v14, 2 }
  0x56   : > { %v798_v31 = vor.u32 %v797_v13, %v794_v12  ;;  %v806_v38 = vor.u32 %v805_v20, %v802_v19  ;;  %v1022_v39 = vrot.slane %v1020_v21, 3  ;;  %v1034_v40 = vshrl.u32 %v3835_v25, 16  ;;  %v4219_v13 = vld [vmem:[%s6253_s1 + $0x10] ss:$0 sps:$4 sm:$0x33]  }
  0x57   : > { %v1037_v41 = vshll.u32 %v3835_v25, 16  ;;  %v1027_v42 = vrot.slane %v1025_v22, 2  ;;  %v1030_v43 = vrot.slane %v1028_v23, 3  ;;  %v1042_v44 = vshrl.u32 %v4686_v26, 16  ;;  %v379_v21 = vld [vmem:[%s4422_s19 + $0x48] sm:$0xf]  ;;  %4139 = vmatprep.subr.msk.bf16.mxu0 %vm1539_vm7, %v4219_v13 }
  0x58   : > { %v1045_v46 = vshll.u32 %v4686_v26, 16  ;;  %v3850_v47 = vcombine.low %v427_v35, %v4607_v59  ;;  %v1036_v49 = vrot.slane %v1034_v40, 2  ;;  %v3858_v52 = vcombine.low %v4694_v36, %v4694_v36  ;;  %v4726_v22 = vld [vmem:[%s4422_s19 + $0x4c] sm:$0xf] }
  0x59   : > { %1356 = vrot.lane.b32.xlu0 %v3865_v55, %s4348_s27  ;;  %610 = vrot.lane.b32.xlu1 %v575_v18, %s4343_s22  ;;  %v1039_v51 = vrot.slane %v1037_v41, 3  ;;  %v895_v54 = vrot.slane %v4665_v62, 2  ;;  %v896_v55 = vrot.slane %v4643_v37, 2  ;;  %v1044_v56 = vrot.slane %v1042_v44, 2 }
  0x5a   : > { %v1047_v57 = vrot.slane %v1045_v46, 3  ;;  %v790_v58 = vsel %vm705_vm3, %v781_v29, %v789_v4  ;;  %v807_v60 = vsel %vm705_vm3, %v798_v31, %v806_v38  ;;  %v898_v61 = vrot.slane %v3835_v25, 2  ;;  %v4729_v23 = vld [vmem:[%s4422_s19 + $0x50] ss:$0 sps:$4 sm:$0x11]  }
  0x5b   : > { %v899_v50 = vrot.slane %v4668_v48, 2  ;;  %v1023_v3 = vor.u32 %v1022_v39, %v1019_v32  ;;  %v1031_v28 = vor.u32 %v1030_v43, %v1027_v42  ;;  %v3851_v45 = vcombine.low %v428_v53, %v4626_v15  ;;  %v381_v4 = vld [vmem:[%s4422_s19 + $0x54] sm:$0xf]  ;;  %v4737_v38 = vld [vmem:[%s4422_s19 + $0x58] sm:$0xf] }
  0x5c   : > { %v1040_v1 = vor.u32 %v1039_v51, %v1036_v49  ;;  %v1259_v2 = vshrl.u32 %v3850_v47, 16  ;;  %v1262_v62 = vshll.u32 %v3850_v47, 16  ;;  %v1267_v5 = vshrl.u32 %v3858_v52, 16 }
  0x5d   : > { %673 = vrot.lane.b32.xlu0 %v655_v27, %s4342_s21  ;;  %675 = vrot.lane.b32.xlu1 %v658_v0, %s4342_s21  ;;  %v1048_v37 = vor.u32 %v1047_v57, %v1044_v56  ;;  %v1270_v8 = vshll.u32 %v3858_v52, 16  ;;  %v3859_v48 = vcombine.low %v4710_v30, %v4710_v30  ;;  %v1276_v6 = vshrl.u32 %v3851_v45, 16  ;;  %v4221_v57 = vld [vmem:[%s6253_s1] sm:$0xff]  }
  0x5e   : > { %v897_v7 = vsel %vm882_vm0, %v895_v54, %v896_v55  ;;  %v900_v9 = vsel %vm882_vm0, %v898_v61, %v899_v50  ;;  %v1138_v10 = vrot.slane %v4671_v63, 3  ;;  %v1279_v12 = vshll.u32 %v3851_v45, 16  ;;  %v397_v54 = vld [vmem:[%s4422_s19 + $0x48] sm:$0xe]  ;;  %v405_v61 = vld [vmem:[%s4422_s19 + $0x50] sm:$0x3] }
  0x5f   : > { %v1032_v14 = vsel %vm947_vm4, %v1023_v3, %v1031_v28  ;;  %v1137_v18 = vrot.slane %v3850_v47, 3  ;;  %v1284_v19 = vshrl.u32 %v3859_v48, 16  ;;  %v1287_v20 = vshll.u32 %v3859_v48, 16  ;;  %v4752_v47 = vld [vmem:[%s4422_s19 + $0x5c] ss:$0 sps:$4 sm:$0x11]  }
  0x60   : > { %v1261_v25 = vrot.slane %v1259_v2, 3  ;;  %v1264_v27 = vrot.slane %v1262_v62, 4  ;;  %v1269_v29 = vrot.slane %v1267_v5, 3  ;;  %v1141_v63 = vrot.slane %v4686_v26, 3  ;;  %v4220_v26 = vld [vmem:[%s6253_s1 + $0x8] sm:$0xff]  }
  0x61   : > { %850 = vrot.lane.b32.xlu0 %v790_v58, %s4344_s23  ;;  %852 = vrot.lane.b32.xlu1 %v807_v60, %s4344_s23  ;;  %v1049_v0 = vsel %vm947_vm4, %v1040_v1, %v1048_v37  ;;  %v1272_v31 = vrot.slane %v1270_v8, 4  ;;  %v1140_v32 = vrot.slane %v3851_v45, 3  ;;  %v1278_v35 = vrot.slane %v1276_v6, 3  ;;  %v398_v3 = vld [vmem:[%s4422_s19 + $0x54] sm:$0xe] }
  0x62   : > { %v1281_v39 = vrot.slane %v1279_v12, 4  ;;  %v1286_v40 = vrot.slane %v1284_v19, 3  ;;  %v1289_v41 = vrot.slane %v1287_v20, 4  ;;  %v1541_v42 = vsel %vm1539_vm7, %v4219_v13, 0  ;;  %v406_v2 = vld [vmem:[%s4422_s19 + $0x5c] sm:$0x3] }
  0x63   : > { %v1139_v43 = vsel %vm1124_vm5, %v1137_v18, %v1138_v10  ;;  %4072 = vmatpush3.bf16.msra.mxu0 %v1541_v42  ;;  %v4746_v44 = vcombine.low %v379_v21, %v4726_v22  ;;  %v4749_v46 = vcombine.low %v381_v4, %v4737_v38  ;;  %v1265_v49 = vor.u32 %v1264_v27, %v1261_v25  ;;  %v413_v21 = vld [vmem:[%s4422_s19 + $0x48] sm:$0xc] }
  0x64   : > { %v1273_v51 = vor.u32 %v1272_v31, %v1269_v29  ;;  %v1142_v52 = vsel %vm1124_vm5, %v1140_v32, %v1141_v63  ;;  %v584_v53 = vshll.u32 %v4729_v23, 16  ;;  %v1282_v55 = vor.u32 %v1281_v39, %v1278_v35  ;;  %4073 = vmatprep.subr.bf16.mxu0 %v4220_v26  ;;  %v4795_v39 = vld [vmem:[%s4422_s19 + $0x50] ss:$0 sps:$4 sm:$0x77]  }
  0x65   : > { %915 = vrot.lane.b32.xlu0 %v897_v7, %s4341_s20  ;;  %917 = vrot.lane.b32.xlu1 %v900_v9, %s4341_s20  ;;  %v1290_v56 = vor.u32 %v1289_v41, %v1286_v40  ;;  %v577_v58 = vshrl.u32 %v4746_v44, 16  ;;  %v579_v60 = vshll.u32 %v4746_v44, 16  ;;  %v591_v50 = vshll.u32 %v4749_v46, 16 }
  0x66   : > { %v596_v45 = vshll.u32 %v4752_v47, 16  ;;  %v3820_v1 = vcombine.low %v397_v54, %v4726_v22  ;;  %v586_v62 = vrot.slane %v584_v53, 1  ;;  %v589_v5 = vshrl.u32 %v4749_v46, 16 }
  0x67   : > { %4074 = vmatpush3.bf16.msra.mxu0 %v4220_v26  ;;  %v581_v28 = vrot.slane %v579_v60, 1  ;;  %v593_v37 = vrot.slane %v591_v50, 1  ;;  %v4773_v8 = vcombine.low %v405_v61, %v405_v61  ;;  %v1274_v48 = vsel %vm1189_vm6, %v1265_v49, %v1273_v51 }
  0x68   : > { %v1291_v6 = vsel %vm1189_vm6, %v1282_v55, %v1290_v56  ;;  %4075 = vmatprep.subr.bf16.mxu0 %v4221_v57  ;;  %v3821_v9 = vcombine.low %v398_v3, %v4737_v38  ;;  %v3866_v10 = vcombine.low %v4607_v59, %v4694_v36  ;;  %v660_v12 = vrot.slane %v4729_v23, 1  ;;  %v414_v23 = vld [vmem:[%s4422_s19 + $0x54] sm:$0xc] }
  0x69   : > { %1092 = vrot.lane.b32.xlu0 %v1032_v14, %s4345_s24  ;;  %1094 = vrot.lane.b32.xlu1 %v1049_v0, %s4345_s24  ;;  %v582_v7 = vor.u32 %v581_v28, %v577_v58  ;;  %v4781_v13 = vcombine.low %v406_v2, %v406_v2  ;;  %v598_v14 = vrot.slane %v596_v45, 1  ;;  %v659_v18 = vrot.slane %v3820_v1, 1 }
  0x6a   : > { %v809_v19 = vshrl.u32 %v3820_v1, 16  ;;  %v812_v20 = vshll.u32 %v3820_v1, 16  ;;  %v594_v27 = vor.u32 %v593_v37, %v589_v5  ;;  %v817_v59 = vshrl.u32 %v4773_v8, 16 }
  0x6b   : > { %4076 = vmatpush3.bf16.msra.mxu0 %v4221_v57  ;;  %v587_v25 = vsel %vm503_vm2, %v582_v7, %v586_v62  ;;  %v820_v36 = vshll.u32 %v4773_v8, 16  ;;  %v826_v29 = vshrl.u32 %v3821_v9, 16  ;;  %v829_v63 = vshll.u32 %v3821_v9, 16  ;;  %v429_v62 = vld [vmem:[%s4422_s19 + $0x48] sm:$0x8] }
  0x6c   : > { %v834_v4 = vshrl.u32 %v4781_v13, 16  ;;  %v837_v0 = vshll.u32 %v4781_v13, 16  ;;  %v662_v31 = vrot.slane %v3821_v9, 1  ;;  %v663_v32 = vrot.slane %v4752_v47, 1  ;;  %v430_v7 = vld [vmem:[%s4422_s19 + $0x54] sm:$0x8] }
  0x6d   : > { %1157 = vrot.lane.b32.xlu0 %v1139_v43, %s4346_s25  ;;  %1159 = vrot.lane.b32.xlu1 %v1142_v52, %s4346_s25  ;;  %v3836_v35 = vcombine.low %v413_v21, %v4726_v22  ;;  %v3867_v40 = vcombine.low %v4626_v15, %v4710_v30  ;;  %v811_v41 = vrot.slane %v809_v19, 1  ;;  %v814_v26 = vrot.slane %v812_v20, 2  ;;  %v4805_v52 = vld [vmem:[%s4422_s19 + $0x5c] ss:$0 sps:$4 sm:$0x77]  }
  0x6e   : > { %v3837_v42 = vcombine.low %v414_v23, %v4737_v38  ;;  %v599_v43 = vsel %vm503_vm2, %v594_v27, %v598_v14  ;;  %v661_v49 = vsel %vm640_vm1, %v659_v18, %v660_v12  ;;  %v819_v47 = vrot.slane %v817_v59, 1  ;;  %v4819_v9 = vld [vmem:[%s4422_s19 + $0x50] sm:$0xf]  ;;  %v4822_v19 = vld [vmem:[%s4422_s19 + $0x5c] sm:$0xf] }
  0x6f   : > { %v822_v51 = vrot.slane %v820_v36, 2  ;;  %v828_v53 = vrot.slane %v826_v29, 1  ;;  %v831_v54 = vrot.slane %v829_v63, 2  ;;  %v836_v55 = vrot.slane %v834_v4, 1 }
  0x70   : > { %v839_v15 = vrot.slane %v837_v0, 2  ;;  %v664_v30 = vsel %vm640_vm1, %v662_v31, %v663_v32  ;;  %v1051_v56 = vshrl.u32 %v3836_v35, 16  ;;  %v1054_v57 = vshll.u32 %v3836_v35, 16 }
  0x71   : > { %1334 = vrot.lane.b32.xlu0 %v1274_v48, %s4347_s26  ;;  %1336 = vrot.lane.b32.xlu1 %v1291_v6, %s4347_s26  ;;  %v1059_v58 = vshrl.u32 %v4795_v39, 16  ;;  %v815_v60 = vor.u32 %v814_v26, %v811_v41  ;;  %v1062_v61 = vshll.u32 %v4795_v39, 16  ;;  %v1068_v50 = vshrl.u32 %v3837_v42, 16 }
  0x72   : > { %v1071_v3 = vshll.u32 %v3837_v42, 16  ;;  %v823_v28 = vor.u32 %v822_v51, %v819_v47  ;;  %v901_v45 = vrot.slane %v3836_v35, 2  ;;  %v902_v1 = vrot.slane %v4773_v8, 2 }
  0x73   : > { %v1076_v2 = vshrl.u32 %v4805_v52, 16  ;;  %v832_v5 = vor.u32 %v831_v54, %v828_v53  ;;  %v840_v37 = vor.u32 %v839_v15, %v836_v55  ;;  %v905_v48 = vrot.slane %v4781_v13, 2 }
  0x74   : > { %v1079_v6 = vshll.u32 %v4805_v52, 16  ;;  %v1053_v12 = vrot.slane %v1051_v56, 2  ;;  %v1056_v14 = vrot.slane %v1054_v57, 3  ;;  %v1061_v18 = vrot.slane %v1059_v58, 2 }
  0x75   : > { %1358 = vrot.lane.b32.xlu0 %v3866_v10, %s4348_s27  ;;  %612 = vrot.lane.b32.xlu1 %v587_v25, %s4343_s22  ;;  %v904_v10 = vrot.slane %v3837_v42, 2  ;;  %v1064_v20 = vrot.slane %v1062_v61, 3  ;;  %v1070_v8 = vrot.slane %v1068_v50, 2  ;;  %v1073_v21 = vrot.slane %v1071_v3, 3 }
  0x76   : > { %v3852_v25 = vcombine.low %v429_v62, %v4726_v22  ;;  %v1078_v13 = vrot.slane %v1076_v2, 2  ;;  %v1081_v27 = vrot.slane %v1079_v6, 3  ;;  %v3860_v59 = vcombine.low %v4819_v9, %v4819_v9 }
  0x77   : > { %v824_v36 = vsel %vm705_vm3, %v815_v60, %v823_v28  ;;  %v841_v23 = vsel %vm705_vm3, %v832_v5, %v840_v37  ;;  %v3853_v29 = vcombine.low %v430_v7, %v4737_v38  ;;  %v3861_v63 = vcombine.low %v4822_v19, %v4822_v19 }
  0x78   : > { %v903_v4 = vsel %vm882_vm0, %v901_v45, %v902_v1  ;;  %v906_v0 = vsel %vm882_vm0, %v904_v10, %v905_v48  ;;  %v1057_v31 = vor.u32 %v1056_v14, %v1053_v12  ;;  %v1065_v32 = vor.u32 %v1064_v20, %v1061_v18 }
  0x79   : > { %1360 = vrot.lane.b32.xlu0 %v3867_v40, %s4348_s27  ;;  %614 = vrot.lane.b32.xlu1 %v599_v43, %s4343_s22  ;;  %v1074_v35 = vor.u32 %v1073_v21, %v1070_v8  ;;  %v1293_v40 = vshrl.u32 %v3852_v25, 16  ;;  %v1082_v41 = vor.u32 %v1081_v27, %v1078_v13  ;;  %v1296_v26 = vshll.u32 %v3852_v25, 16 }
  0x7a   : > { %v1301_v42 = vshrl.u32 %v3860_v59, 16  ;;  %v1304_v43 = vshll.u32 %v3860_v59, 16  ;;  %v1313_v47 = vshll.u32 %v3853_v29, 16  ;;  %v1318_v51 = vshrl.u32 %v3861_v63, 16 }
  0x7b   : > { %v1321_v53 = vshll.u32 %v3861_v63, 16  ;;  %v1143_v54 = vrot.slane %v3852_v25, 3  ;;  %v1144_v55 = vrot.slane %v4795_v39, 3  ;;  %v1066_v15 = vsel %vm947_vm4, %v1057_v31, %v1065_v32 }
  0x7c   : > { %v1147_v56 = vrot.slane %v4805_v52, 3  ;;  %v1295_v57 = vrot.slane %v1293_v40, 3  ;;  %v1083_v58 = vsel %vm947_vm4, %v1074_v35, %v1082_v41  ;;  %v1298_v60 = vrot.slane %v1296_v26, 4 }
  0x7d   : > { %677 = vrot.lane.b32.xlu0 %v661_v49, %s4342_s21  ;;  %679 = vrot.lane.b32.xlu1 %v664_v30, %s4342_s21  ;;  %v1310_v49 = vshrl.u32 %v3853_v29, 16  ;;  %v1146_v30 = vrot.slane %v3853_v29, 3  ;;  %v1303_v61 = vrot.slane %v1301_v42, 3  ;;  %v1306_v50 = vrot.slane %v1304_v43, 4 }
  0x7e   : > { %v1315_v45 = vrot.slane %v1313_v47, 4  ;;  %v1320_v1 = vrot.slane %v1318_v51, 3  ;;  %v1323_v39 = vrot.slane %v1321_v53, 4  ;;  %v1145_v52 = vsel %vm1124_vm5, %v1143_v54, %v1144_v55 }
  0x7f   : > { %v1312_v28 = vrot.slane %v1310_v49, 3  ;;  %v1148_v62 = vsel %vm1124_vm5, %v1146_v30, %v1147_v56  ;;  %v1299_v37 = vor.u32 %v1298_v60, %v1295_v57  ;;  %v1307_v48 = vor.u32 %v1306_v50, %v1303_v61 }
  0x80   : > { %v1324_v7 = vor.u32 %v1323_v39, %v1320_v1  ;;  %v3868_v20 = vcombine.low %v4726_v22, %v4819_v9  ;;  %v3869_v8 = vcombine.low %v4737_v38, %v4822_v19  ;;  %vm1522_vm4 = vcmask 293888  }
  0x81   : > { %854 = vrot.lane.b32.xlu0 %v824_v36, %s4344_s23  ;;  %856 = vrot.lane.b32.xlu1 %v841_v23, %s4344_s23  ;;  %v1316_v6 = vor.u32 %v1315_v45, %v1312_v28  ;;  %v1308_v14 = vsel %vm1189_vm6, %v1299_v37, %v1307_v48  ;;  %vm1961_vm5 = vcmask 58368  }
  0x83   : > { %v1325_v18 = vsel %vm1189_vm6, %v1316_v6, %v1324_v7  ;;  %vm1956_vm6 = vcmask 60416  }
  0x85   : > { %919 = vrot.lane.b32.xlu0 %v903_v4, %s4341_s20  ;;  %921 = vrot.lane.b32.xlu1 %v906_v0, %s4341_s20 }
  0x87   : > { %v908_v2 = vpop.permute.xlu0 %907 }
  0x88   : > { %v666_v3 = vpop.permute.xlu1 %665 }
  0x89   : > { %1096 = vrot.lane.b32.xlu0 %v1066_v15, %s4345_s24  ;;  %1098 = vrot.lane.b32.xlu1 %v1083_v58, %s4345_s24  ;;  %s4351_s24 = smov 48  }
  0x8c   : > { %v668_v5 = vpop.permute.xlu1 %667 }
  0x8d   : > { %1161 = vrot.lane.b32.xlu0 %v1145_v52, %s4346_s25  ;;  %1163 = vrot.lane.b32.xlu1 %v1148_v62, %s4346_s25 }
  0x8f   : > { %v601_v10 = vpop.permute.xlu0 %600 }
  0x90   : > { %v910_v12 = vpop.permute.xlu1 %909  ;;  %v1368_v36 = vsel %vm1366_vm8, %v4455_v24, %v601_v10 }
  0x91   : > { %1338 = vrot.lane.b32.xlu0 %v1308_v14, %s4347_s26  ;;  %1340 = vrot.lane.b32.xlu1 %v1325_v18, %s4347_s26  ;;  %v1385_v9 = vsel %vm1383_vm9, %v1368_v36, %v666_v3  ;;  %s4352_s26 = smov 56  }
  0x93   : > { %v603_v21 = vpop.permute.xlu0 %602 }
  0x94   : > { %v845_v25 = vpop.permute.xlu1 %844  ;;  %v1370_v38 = vsel %vm1366_vm8, %v4464_v34, %v603_v21 }
  0x95   : > { %1362 = vrot.lane.b32.xlu0 %v3868_v20, %s4348_s27  ;;  %1364 = vrot.lane.b32.xlu1 %v3869_v8, %s4348_s27  ;;  %v1387_v4 = vsel %vm1383_vm9, %v1370_v38, %v668_v5 }
  0x96   : > { %v1404_v0 = vsel %vm1400_vm10, %v1387_v4, %v845_v25 }
  0x97   : > { %v843_v13 = vpop.permute.xlu0 %842  ;;  %v1421_v41 = vsel %vm1417_vm11, %v1404_v0, %v910_v12 }
  0x98   : > { %v1087_v27 = vpop.permute.xlu1 %1086  ;;  %v1402_v19 = vsel %vm1400_vm10, %v1385_v9, %v843_v13 }
  0x99   : > { %v1419_v24 = vsel %vm1417_vm11, %v1402_v19, %v908_v2  ;;  %v1438_v42 = vsel %vm1434_vm12, %v1421_v41, %v1087_v27 }
  0x9b   : > { %v1085_v59 = vpop.permute.xlu0 %1084 }
  0x9c   : > { %v1152_v23 = vpop.permute.xlu1 %1151  ;;  %v1436_v31 = vsel %vm1434_vm12, %v1419_v24, %v1085_v59 }
  0x9d   : > { %v1455_v43 = vsel %vm1451_vm13, %v1438_v42, %v1152_v23 }
  0x9f   : > { %v1150_v22 = vpop.permute.xlu0 %1149 }
  0xa0   : > { %v1329_v29 = vpop.permute.xlu1 %1328  ;;  %v1453_v32 = vsel %vm1451_vm13, %v1436_v31, %v1150_v22 }
  0xa1   : > { %v1472_v49 = vsel %vm1468_vm14, %v1455_v43, %v1329_v29 }
  0xa3   : > { %v1327_v63 = vpop.permute.xlu0 %1326 }
  0xa4   : > { %v1470_v34 = vsel %vm1468_vm14, %v1453_v32, %v1327_v63 }
  0xa7   : > { %v1351_v35 = vpop.permute.xlu0 %1350  ;;  %v605_v40 = vpop.permute.xlu1 %604 }
  0xa8   : > { %v1487_v26 = vsel %vm1485_vm15, %v1470_v34, %v1351_v35  ;;  %v1372_v15 = vsel %vm1366_vm8, %v4532_v11, %v605_v40 }
  0xa9   : > { %4077 = vmatprep.mubr.msk.bf16.mxu0 %vm1522_vm4, %v1487_v26  ;;  %v4349_v26 = vmov 0  }
  0xaa   : > { %1962 = vst.msk [vmem:[#allocation2 + $0x10] sm:$0x3] %vm1961_vm5, %v4349_v26  ;;  %1967 = vst.msk [vmem:[#allocation2 + $0x24] sm:$0x3] %vm1961_vm5, %v4349_v26 }
  0xab   : > { %v1353_v47 = vpop.permute.xlu0 %1352  ;;  %v607_v51 = vpop.permute.xlu1 %606  ;;  %1972 = vst.msk [vmem:[#allocation2 + $0x38] sm:$0x3] %vm1961_vm5, %v4349_v26  ;;  %1977 = vst.msk [vmem:[#allocation2 + $0x4c] sm:$0x3] %vm1961_vm5, %v4349_v26 }
  0xac   : > { %v1489_v53 = vsel %vm1485_vm15, %v1472_v49, %v1353_v47  ;;  %v1374_v58 = vsel %vm1366_vm8, %v4539_v16, %v607_v51  ;;  %1982 = vst.msk [vmem:[#allocation2 + $0x60] sm:$0x3] %vm1961_vm5, %v4349_v26  ;;  %1987 = vst.msk [vmem:[#allocation2 + $0x74] sm:$0x3] %vm1961_vm5, %v4349_v26 }
  0xad   : > { %4078 = vmatmul.mubr.msk.bf16.vlgmr.msra.gmra.mxu0 %vm1522_vm4, %v1489_v53  ;;  %1992 = vst.msk [vmem:[#allocation2 + $0x88] sm:$0x3] %vm1961_vm5, %v4349_v26  ;;  %1997 = vst.msk [vmem:[#allocation2 + $0x9c] sm:$0x3] %vm1961_vm5, %v4349_v26 }
  0xae   : > { %1965 = vst.msk [vmem:[#allocation2 + $0x1c] sm:$0xf] %vm1956_vm6, %v4349_v26  ;;  %1958 = vst.msk [vmem:[#allocation2 + $0x4] sm:$0xf] %vm1956_vm6, %v4349_v26 }
  0xaf   : > { %v670_v54 = vpop.permute.xlu0 %669  ;;  %v672_v55 = vpop.permute.xlu1 %671  ;;  %1959 = vst.msk [vmem:[#allocation2 + $0x8] sm:$0xf] %vm1956_vm6, %v4349_v26  ;;  %1960 = vst.msk [vmem:[#allocation2 + $0xc] sm:$0xf] %vm1956_vm6, %v4349_v26 }
  0xb0   : > { %v1389_v57 = vsel %vm1383_vm9, %v1372_v15, %v670_v54  ;;  %v1391_v3 = vsel %vm1383_vm9, %v1374_v58, %v672_v55  ;;  %1964 = vst.msk [vmem:[#allocation2 + $0x18] sm:$0xf] %vm1956_vm6, %v4349_v26  ;;  %1966 = vst.msk [vmem:[#allocation2 + $0x20] sm:$0xf] %vm1956_vm6, %v4349_v26 }
  0xb1   : > { %v4918_v15 = vld [vmem:[#allocation2 + $0x10] ss:$0 sps:$4 sm:$0x33]   ;;  %v4924_v58 = vld [vmem:[#allocation2 + $0x24] ss:$0 sps:$4 sm:$0x33]  }
  0xb2   : > { %3147 = vrot.lane.b32.xlu1 %v4918_v15, %s4350_s16  ;;  %1969 = vst.msk [vmem:[#allocation2 + $0x2c] sm:$0xf] %vm1956_vm6, %v4349_v26  ;;  %1970 = vst.msk [vmem:[#allocation2 + $0x30] sm:$0xf] %vm1956_vm6, %v4349_v26 }
  0xb3   : > { %v847_v30 = vpop.permute.xlu0 %846  ;;  %v849_v56 = vpop.permute.xlu1 %848  ;;  %1971 = vst.msk [vmem:[#allocation2 + $0x34] sm:$0xf] %vm1956_vm6, %v4349_v26  ;;  %1974 = vst.msk [vmem:[#allocation2 + $0x40] sm:$0xf] %vm1956_vm6, %v4349_v26 }
  0xb4   : > { %v1406_v50 = vsel %vm1400_vm10, %v1389_v57, %v847_v30  ;;  %v1408_v39 = vsel %vm1400_vm10, %v1391_v3, %v849_v56  ;;  %1975 = vst.msk [vmem:[#allocation2 + $0x44] sm:$0xf] %vm1956_vm6, %v4349_v26  ;;  %1976 = vst.msk [vmem:[#allocation2 + $0x48] sm:$0xf] %vm1956_vm6, %v4349_v26 }
  0xb5   : > { %1979 = vst.msk [vmem:[#allocation2 + $0x54] sm:$0xf] %vm1956_vm6, %v4349_v26  ;;  %1980 = vst.msk [vmem:[#allocation2 + $0x58] sm:$0xf] %vm1956_vm6, %v4349_v26 }
  0xb6   : > { %3151 = vrot.lane.b32.xlu1 %v4924_v58, %s4350_s16  ;;  %1981 = vst.msk [vmem:[#allocation2 + $0x5c] sm:$0xf] %vm1956_vm6, %v4349_v26  ;;  %1984 = vst.msk [vmem:[#allocation2 + $0x68] sm:$0xf] %vm1956_vm6, %v4349_v26 }
  0xb7   : > { %v912_v60 = vpop.permute.xlu0 %911  ;;  %v914_v61 = vpop.permute.xlu1 %913  ;;  %1985 = vst.msk [vmem:[#allocation2 + $0x6c] sm:$0xf] %vm1956_vm6, %v4349_v26  ;;  %1986 = vst.msk [vmem:[#allocation2 + $0x70] sm:$0xf] %vm1956_vm6, %v4349_v26 }
  0xb8   : > { %v1423_v1 = vsel %vm1417_vm11, %v1406_v50, %v912_v60  ;;  %v1425_v62 = vsel %vm1417_vm11, %v1408_v39, %v914_v61  ;;  %1989 = vst.msk [vmem:[#allocation2 + $0x7c] sm:$0xf] %vm1956_vm6, %v4349_v26  ;;  %1990 = vst.msk [vmem:[#allocation2 + $0x80] sm:$0xf] %vm1956_vm6, %v4349_v26 }
  0xb9   : > { %1991 = vst.msk [vmem:[#allocation2 + $0x84] sm:$0xf] %vm1956_vm6, %v4349_v26  ;;  %1994 = vst.msk [vmem:[#allocation2 + $0x90] sm:$0xf] %vm1956_vm6, %v4349_v26 }
  0xba   : > { %1995 = vst.msk [vmem:[#allocation2 + $0x94] sm:$0xf] %vm1956_vm6, %v4349_v26  ;;  %1996 = vst.msk [vmem:[#allocation2 + $0x98] sm:$0xf] %vm1956_vm6, %v4349_v26 }
  0xbb   : > { %v1089_v28 = vpop.permute.xlu0 %1088  ;;  %v1091_v45 = vpop.permute.xlu1 %1090  ;;  %v4962_v39 = vld [vmem:[#allocation2 + $0x4c] ss:$0 sps:$4 sm:$0x33]  }
  0xbc   : > { %v1440_v11 = vsel %vm1434_vm12, %v1423_v1, %v1089_v28  ;;  %v1442_v5 = vsel %vm1434_vm12, %v1425_v62, %v1091_v45 }
  0xbf   : > { %v1154_v2 = vpop.permute.xlu0 %1153  ;;  %v1156_v52 = vpop.permute.xlu1 %1155 }
  0xc0   : > { %v1457_v16 = vsel %vm1451_vm13, %v1440_v11, %v1154_v2  ;;  %v1459_v7 = vsel %vm1451_vm13, %v1442_v5, %v1156_v52 }
  0xc3   : > { %v1331_v37 = vpop.permute.xlu0 %1330  ;;  %v1333_v48 = vpop.permute.xlu1 %1332 }
  0xc4   : > { %v1474_v6 = vsel %vm1468_vm14, %v1457_v16, %v1331_v37  ;;  %v1476_v18 = vsel %vm1468_vm14, %v1459_v7, %v1333_v48  ;;  %v4244_v16 = vld [vmem:[#allocation2 + $0x60] ss:$0 sps:$4 sm:$0x33]   ;;  %v4245_v48 = vld [vmem:[#allocation2 + $0x74] ss:$0 sps:$4 sm:$0x33]  }
  0xc7   : > { %v1355_v10 = vpop.permute.xlu0 %1354  ;;  %v609_v12 = vpop.permute.xlu1 %608 }
  0xc8   : > { %v1491_v14 = vsel %vm1485_vm15, %v1474_v6, %v1355_v10  ;;  %v1376_v27 = vsel %vm1366_vm8, %v4622_v17, %v609_v12 }
  0xc9   : > { %4081 = vmatprep.mubr.msk.bf16.mxu0 %vm1522_vm4, %v1491_v14 }
  0xcb   : > { %v1357_v20 = vpop.permute.xlu0 %1356  ;;  %v611_v8 = vpop.permute.xlu1 %610 }
  0xcc   : > { %v1493_v21 = vsel %vm1485_vm15, %v1476_v18, %v1357_v20  ;;  %v1378_v22 = vsel %vm1366_vm8, %v4640_v33, %v611_v8 }
  0xcd   : > { %4082 = vmatmul.mubr.msk.bf16.gmra.mxu0 %vm1522_vm4, %v1493_v21 }
  0xcf   : > { %v674_v25 = vpop.permute.xlu0 %673  ;;  %v676_v13 = vpop.permute.xlu1 %675 }
  0xd0   : > { %v1393_v23 = vsel %vm1383_vm9, %v1376_v27, %v674_v25  ;;  %v1395_v29 = vsel %vm1383_vm9, %v1378_v22, %v676_v13 }
  0xd3   : > { %v851_v59 = vpop.permute.xlu0 %850  ;;  %v853_v36 = vpop.permute.xlu1 %852 }
  0xd4   : > { %v1410_v19 = vsel %vm1400_vm10, %v1393_v23, %v851_v59  ;;  %v1412_v0 = vsel %vm1400_vm10, %v1395_v29, %v853_v36  ;;  %v4985_v23 = vld [vmem:[%s6256_s4] ss:$0 sm:$0xff] }
  0xd7   : > { %v916_v9 = vpop.permute.xlu0 %915  ;;  %v918_v38 = vpop.permute.xlu1 %917 }
  0xd8   : > { %v1427_v24 = vsel %vm1417_vm11, %v1410_v19, %v916_v9  ;;  %v1429_v34 = vsel %vm1417_vm11, %v1412_v0, %v918_v38  ;;  %v4990_v9 = vld [vmem:[%s6257_s5] ss:$0 sm:$0xff] }
  0xdb   : > { %v1093_v63 = vpop.permute.xlu0 %1092  ;;  %v1095_v4 = vpop.permute.xlu1 %1094 }
  0xdc   : > { %v1444_v17 = vsel %vm1434_vm12, %v1427_v24, %v1093_v63  ;;  %v1446_v35 = vsel %vm1434_vm12, %v1429_v34, %v1095_v4 }
  0xdf   : > { %v1158_v31 = vpop.permute.xlu0 %1157  ;;  %v1160_v32 = vpop.permute.xlu1 %1159 }
  0xe0   : > { %v1461_v33 = vsel %vm1451_vm13, %v1444_v17, %v1158_v31  ;;  %v1463_v43 = vsel %vm1451_vm13, %v1446_v35, %v1160_v32 }
  0xe3   : > { %v1335_v40 = vpop.permute.xlu0 %1334  ;;  %v1337_v41 = vpop.permute.xlu1 %1336 }
  0xe4   : > { %v1478_v42 = vsel %vm1468_vm14, %v1461_v33, %v1335_v40  ;;  %v1480_v53 = vsel %vm1468_vm14, %v1463_v43, %v1337_v41 }
  0xe7   : > { %v1359_v49 = vpop.permute.xlu0 %1358  ;;  %v613_v47 = vpop.permute.xlu1 %612 }
  0xe8   : > { %v1495_v51 = vsel %vm1485_vm15, %v1478_v42, %v1359_v49  ;;  %v1380_v60 = vsel %vm1366_vm8, %v4746_v44, %v613_v47  ;;  %v4956_v44 = vld [vmem:[#allocation2 + $0x38] ss:$0 sps:$4 sm:$0x33]  }
  0xe9   : > { %4085 = vmatprep.mubr.msk.bf16.mxu0 %vm1522_vm4, %v1495_v51  ;;  %3155 = vrot.lane.b32.xlu1 %v4956_v44, %s4350_s16 }
  0xeb   : > { %v1361_v54 = vpop.permute.xlu0 %1360  ;;  %v615_v55 = vpop.permute.xlu1 %614 }
  0xec   : > { %v1497_v30 = vsel %vm1485_vm15, %v1480_v53, %v1361_v54  ;;  %v1382_v61 = vsel %vm1366_vm8, %v4749_v46, %v615_v55 }
  0xed   : > { %4086 = vmatmul.mubr.msk.bf16.gmra.mxu0 %vm1522_vm4, %v1497_v30  ;;  %3159 = vrot.lane.b32.xlu1 %v4962_v39, %s4350_s16 }
  0xef   : > { %v678_v56 = vpop.permute.xlu0 %677  ;;  %v680_v57 = vpop.permute.xlu1 %679 }
  0xf0   : > { %v1397_v46 = vsel %vm1383_vm9, %v1380_v60, %v678_v56  ;;  %v1399_v28 = vsel %vm1383_vm9, %v1382_v61, %v680_v57  ;;  %v5012_v61 = vld [vmem:[#allocation2 + $0x24] ss:$0 sps:$4 sm:$0x11]  }
  0xf1   : > { %3163 = vrot.lane.b32.xlu1 %v4244_v16, %s4350_s16  ;;  %v2992_v16 = vshrl.u32 %v4924_v58, 16 }
  0xf3   : > { %v855_v50 = vpop.permute.xlu0 %854  ;;  %v857_v3 = vpop.permute.xlu1 %856 }
  0xf4   : > { %v1414_v11 = vsel %vm1400_vm10, %v1397_v46, %v855_v50  ;;  %v1416_v2 = vsel %vm1400_vm10, %v1399_v28, %v857_v3  ;;  %v2111_v3 = vld [vmem:[#allocation2 + $0x18] sm:$0x8]  ;;  %vm2887_vm10 = vcmask 1040384  }
  0xf5   : > { %3167 = vrot.lane.b32.xlu1 %v4245_v48, %s4350_s16 }
  0xf7   : > { %v920_v45 = vpop.permute.xlu0 %919  ;;  %v922_v1 = vpop.permute.xlu1 %921 }
  0xf8   : > { %v1431_v5 = vsel %vm1417_vm11, %v1414_v11, %v920_v45  ;;  %v1433_v37 = vsel %vm1417_vm11, %v1416_v2, %v922_v1  ;;  %v2081_v45 = vld [vmem:[#allocation2 + $0x18] sm:$0xc]  ;;  %v2892_v11 = vrot.slane %v5012_v61, 7 }
  0xfb   : > { %v1097_v52 = vpop.permute.xlu0 %1096  ;;  %v1099_v62 = vpop.permute.xlu1 %1098 }
  0xfc   : > { %v1448_v6 = vsel %vm1434_vm12, %v1431_v5, %v1097_v52  ;;  %v1450_v7 = vsel %vm1434_vm12, %v1433_v37, %v1099_v62  ;;  %vm2968_vm12 = vsmask.f32 256 }
  0xff   : > { %v1162_v10 = vpop.permute.xlu0 %1161  ;;  %v1164_v12 = vpop.permute.xlu1 %1163 }
 0x100   : > { %v1465_v14 = vsel %vm1451_vm13, %v1448_v6, %v1162_v10  ;;  %v1467_v18 = vsel %vm1451_vm13, %v1450_v7, %v1164_v12  ;;  %v5035_v12 = vld [vmem:[#allocation2 + $0x10] ss:$0 sps:$4 sm:$0x11]  }
 0x103   : > { %v1339_v20 = vpop.permute.xlu0 %1338  ;;  %v1341_v8 = vpop.permute.xlu1 %1340 }
 0x104   : > { %v1482_v21 = vsel %vm1468_vm14, %v1465_v14, %v1339_v20  ;;  %v1484_v25 = vsel %vm1468_vm14, %v1467_v18, %v1341_v8  ;;  %vm2726_vm14 = vsmask.f32 1280 }
 0x107   : > { %v1363_v13 = vpop.permute.xlu0 %1362  ;;  %v1365_v27 = vpop.permute.xlu1 %1364 }
 0x108   : > { %v1499_v59 = vsel %vm1485_vm15, %v1482_v21, %v1363_v13  ;;  %v1501_v36 = vsel %vm1485_vm15, %v1484_v25, %v1365_v27 }
 0x109   : > { %4089 = vmatprep.mubr.msk.bf16.mxu0 %vm1522_vm4, %v1499_v59 }
 0x10a   : > { %4090 = vmatmul.mubr.msk.bf16.gmra.mxu0 %vm1522_vm4, %v1501_v36  ;;  %v2994_v36 = vrot.slane %v2992_v16, 7  ;;  %vm1703_vm4 = vcmask 1045508  }
 0x10b   : > { %vm5169_vm5 = vmor %vm1539_vm7, %vm1703_vm4  ;;  %vm3371_vm4 = vcmask 457728  }
 0x16d   : > { %v4079_v22 = vpop.f32.mrf.mxu0 }
 0x16e   : > { %v1649_v38 = vmul.f32 %v4079_v22, %v4985_v23 }
 0x16f   : > { %v1577_v19 = vpop.f32.mrf.mxu0 }
 0x170   : > { %v1672_v29 = vadd.f32 %v4990_v9, %v1649_v38  ;;  %v1647_v63 = vmul.f32 %v4985_v23, %v1577_v19  ;;  %v2889_v19 = vrot.slane %v5035_v12, 7 }
 0x171   : > { %v4080_v4 = vpop.f32.mrf.mxu0 }
 0x172   : > { %v1688_v24 = vmax.f32 %v1672_v29, 0.0  ;;  %v1670_v0 = vadd.f32 %v4990_v9, %v1647_v63  ;;  %v1650_v17 = vmul.f32 %v4080_v4, %v4985_v23  ;;  %v2995_v63 = vshll.u32 %v4924_v58, 16 }
 0x173   : > { %v1580_v31 = vpop.f32.mrf.mxu0 }
 0x174   : > { %v4024_v32 = vpack.c.bf16 %v1688_v24, %v1688_v24  ;;  %v1686_v34 = vmax.f32 %v1670_v0, 0.0  ;;  %v1673_v33 = vadd.f32 %v4990_v9, %v1650_v17  ;;  %v1648_v35 = vmul.f32 %v4985_v23, %v1580_v31 }
 0x176   : > { %2064 = vst.msk [vmem:[#allocation2 + $0x1c] sm:$0xf] %vm1956_vm6, %v4024_v32  ;;  %v4022_v40 = vpack.c.bf16 %v1686_v34, %v1686_v34  ;;  %v1689_v41 = vmax.f32 %v1673_v33, 0.0  ;;  %v1671_v26 = vadd.f32 %v4990_v9, %v1648_v35 }
 0x178   : > { %2062 = vst.msk [vmem:[#allocation2 + $0x8] sm:$0xf] %vm1956_vm6, %v4022_v40  ;;  %v4025_v42 = vpack.c.bf16 %v1689_v41, %v1689_v41  ;;  %v1687_v43 = vmax.f32 %v1671_v26, 0.0 }
 0x17a   : > { %2065 = vst.msk [vmem:[#allocation2 + $0x20] sm:$0xf] %vm1956_vm6, %v4025_v42  ;;  %v4023_v49 = vpack.c.bf16 %v1687_v43, %v1687_v43  ;;  %v2997_v43 = vor.u32 %v2995_v63, %v2994_v36 }
 0x17c   : > { %2063 = vst.msk [vmem:[#allocation2 + $0xc] sm:$0xf] %vm1956_vm6, %v4023_v49 }
 0x17d   : > { %v2151_v47 = vld [vmem:[#allocation2 + $0x1c] sm:$0xc] }
 0x17e   : > { %v2135_v53 = vld [vmem:[#allocation2 + $0x1c] sm:$0xe] }
 0x17f   : > { %v2082_v56 = vld [vmem:[#allocation2 + $0x1c] sm:$0xf]  ;;  %v2150_v1 = vld [vmem:[#allocation2 + $0x8] sm:$0xc] }
 0x180   : > { %v5021_v2 = vcombine.low %v2111_v3, %v2082_v56  ;;  %v5025_v62 = vcombine.low %v2081_v45, %v2082_v56  ;;  %v2134_v37 = vld [vmem:[#allocation2 + $0x8] sm:$0xe] }
 0x181   : > { %v2119_v51 = vld [vmem:[#allocation2 + $0x20] sm:$0xf]  ;;  %v5033_v10 = vld [vmem:[#allocation2 + $0x8] sm:$0xf] }
 0x182   : > { %v3998_v54 = vcombine.low %v2151_v47, %v2119_v51  ;;  %v5004_v55 = vld [vmem:[#allocation2 + $0x20] ss:$0 sps:$4 sm:$0x77]   ;;  %v5006_v30 = vcombine.low %v2135_v53, %v2119_v51  ;;  %v5010_v60 = vcombine.low %v2082_v56, %v2119_v51  ;;  %v2425_v7 = vrot.slane %v5021_v2, 1 }
 0x183   : > { %v2426_v57 = vrot.slane %v5004_v55, 1  ;;  %v5016_v46 = vld [vmem:[#allocation2 + $0xc] sm:$0xf]  ;;  %v2264_v25 = vshll.u32 %v5025_v62, 16  ;;  %v2269_v34 = vshll.u32 %v5004_v55, 16  ;;  %v3958_v33 = vcombine.low %v2119_v51, %v2119_v51 }
 0x184   : > { %3149 = vrot.lane.b32.xlu0 %v3998_v54, %s4350_s16  ;;  %v2891_v50 = vrot.slane %v5006_v30, 7  ;;  %v2679_v28 = vrot.slane %v5010_v60, 6  ;;  %v3997_v52 = vcombine.low %v2150_v1, %v5016_v46  ;;  %v5029_v5 = vld [vmem:[#allocation2 + $0xc] ss:$0 sps:$4 sm:$0x77]   ;;  %v5038_v14 = vcombine.low %v2134_v37, %v5016_v46 }
 0x185   : > { %2452 = vrot.lane.b32.xlu1 %v2426_v57, %s4341_s20  ;;  %v5044_v20 = vcombine.low %v5033_v10, %v5016_v46  ;;  %v2427_v21 = vsel %vm640_vm1, %v2425_v7, %v2426_v57  ;;  %v2423_v59 = vrot.slane %v5029_v5, 1  ;;  %v2985_v29 = vshrl.u32 %v5006_v30, 16  ;;  %v2110_v54 = vld [vmem:[#allocation2 + $0x4] sm:$0x8] }
 0x186   : > { %v2893_v6 = vsel %vm2887_vm10, %v2891_v50, %v2892_v11  ;;  %v2888_v38 = vrot.slane %v5038_v14, 7  ;;  %v2266_v32 = vrot.slane %v2264_v25, 1  ;;  %v2262_v49 = vshrl.u32 %v5025_v62, 16  ;;  %v2078_v1 = vld [vmem:[#allocation2 + $0x4] sm:$0xc] }
 0x187   : > { %v2678_v17 = vrot.slane %v5044_v20, 6  ;;  %v5067_v42 = vrot.slane %v2985_v29, 7  ;;  %v2271_v57 = vrot.slane %v2269_v34, 1  ;;  %v2531_v45 = vshll.u32 %v3958_v33, 16 }
 0x188   : > { %2916 = vrot.lane.b32.xlu0 %v2891_v50, %s4351_s24  ;;  %v2890_v26 = vsel %vm2887_vm10, %v2888_v38, %v2889_v19  ;;  %v2267_v56 = vor.u32 %v2266_v32, %v2262_v49  ;;  %v2741_v16 = vshrl.u32 %v5010_v60, 16  ;;  %v2744_v37 = vshll.u32 %v5010_v60, 16  ;;  %v5112_v32 = vld [vmem:[%s6255_s3] sm:$0x3] }
 0x189   : > { %2688 = vrot.lane.b32.xlu1 %v2679_v28, %s4348_s27  ;;  %v2528_v28 = vshrl.u32 %v3958_v33, 16  ;;  %v2998_v11 = vsel %vm2968_vm12, %v5067_v42, %v2997_v43  ;;  %v2533_v25 = vrot.slane %v2531_v45, 2  ;;  %v2980_v29 = vshll.u32 %v4918_v15, 16  ;;  %4141 = vmatprep.subr.msk.bf16.mxu1 %vm1539_vm7, %v5112_v32 }
 0x18a   : > { %v2272_v7 = vsel %vm503_vm2, %v2267_v56, %v2271_v57  ;;  %v2746_v36 = vrot.slane %v2744_v37, 7  ;;  %4140 = vmatprep.subr.msk.bf16.mxu0 %vm1539_vm7, %v5112_v32  ;;  %v2736_v45 = vshll.u32 %v5035_v12, 16 }
 0x18c   : > { %3145 = vrot.lane.b32.xlu0 %v3997_v52, %s4350_s16  ;;  %v5078_v52 = vcombine.low %v2110_v54, %v5033_v10 }
 0x18d   : > { %v4083_v48 = vpop.f32.mrf.mxu0  ;;  %2918 = vrot.lane.b32.xlu1 %v2893_v6, %s4351_s24  ;;  %v2273_v6 = vshrl.u32 %v5004_v55, 16  ;;  %v2749_v55 = vshll.u32 %v5012_v61, 16 }
 0x18e   : > { %v1653_v18 = vmul.f32 %v4083_v48, %v4985_v23  ;;  %v2503_v12 = vshrl.u32 %v5078_v52, 16 }
 0x18f   : > { %v1593_v8 = vpop.f32.mrf.mxu0  ;;  %v2275_v60 = vor.u32 %v2273_v6, %v2271_v57 }
 0x190   : > { %v1676_v13 = vadd.f32 %v4990_v9, %v1653_v18  ;;  %v1651_v27 = vmul.f32 %v4985_v23, %v1593_v8  ;;  %2450 = vrot.lane.b32.xlu0 %v2427_v21, %s4341_s20  ;;  %v5087_v18 = vcombine.low %v2078_v1, %v5033_v10  ;;  %v2977_v8 = vshrl.u32 %v4918_v15, 16 }
 0x191   : > { %v4084_v22 = vpop.f32.mrf.mxu0  ;;  %2448 = vrot.lane.b32.xlu1 %v2423_v59, %s4341_s20  ;;  %v2530_v21 = vrot.slane %v2528_v28, 1  ;;  %v3957_v15 = vcombine.low %v5016_v46, %v5016_v46 }
 0x192   : > { %v1692_v4 = vmax.f32 %v1676_v13, 0.0  ;;  %v1674_v24 = vadd.f32 %v4990_v9, %v1651_v27  ;;  %v1654_v0 = vmul.f32 %v4084_v22, %v4985_v23  ;;  %v2422_v13 = vrot.slane %v5078_v52, 1 }
 0x193   : > { %v1596_v31 = vpop.f32.mrf.mxu0  ;;  %v2743_v27 = vrot.slane %v2741_v16, 6  ;;  %v2249_v22 = vshll.u32 %v5087_v18, 16  ;;  %v2979_v19 = vrot.slane %v2977_v8, 7  ;;  %v2514_v43 = vshll.u32 %v3957_v15, 16 }
 0x194   : > { %v4028_v35 = vpack.c.bf16 %v1692_v4, %v1692_v4  ;;  %v1690_v40 = vmax.f32 %v1674_v24, 0.0  ;;  %v1677_v58 = vadd.f32 %v4990_v9, %v1654_v0  ;;  %v1652_v41 = vmul.f32 %v4985_v23, %v1596_v31  ;;  %2686 = vrot.lane.b32.xlu0 %v2678_v17, %s4348_s27 }
 0x195   : > { %2914 = vrot.lane.b32.xlu1 %v2890_v26, %s4351_s24  ;;  %v2424_v10 = vsel %vm640_vm1, %v2422_v13, %v2423_v59  ;;  %v2747_v63 = vor.u32 %v2746_v36, %v2743_v27  ;;  %v2751_v4 = vrot.slane %v2749_v55, 7  ;;  %v2970_v24 = vshrl.u32 %v5038_v14, 16  ;;  %v4307_v27 = vld [vmem:[%s4422_s19 + $0x24] sm:$0xc] }
 0x196   : > { %2068 = vst.msk [vmem:[#allocation2 + $0x44] sm:$0xf] %vm1956_vm6, %v4028_v35  ;;  %v4026_v47 = vpack.c.bf16 %v1690_v40, %v1690_v40  ;;  %v1693_v53 = vmax.f32 %v1677_v58, 0.0  ;;  %v1675_v51 = vadd.f32 %v4990_v9, %v1652_v41  ;;  %v2251_v61 = vrot.slane %v2249_v22, 1 }
 0x197   : > { %v2254_v0 = vshll.u32 %v5029_v5, 16  ;;  %v2988_v59 = vshll.u32 %v5006_v30, 16  ;;  %v2982_v17 = vor.u32 %v2980_v29, %v2979_v19  ;;  %v2520_v31 = vshrl.u32 %v5021_v2, 16 }
 0x198   : > { %2066 = vst.msk [vmem:[#allocation2 + $0x30] sm:$0xf] %vm1956_vm6, %v4026_v47  ;;  %v4029_v50 = vpack.c.bf16 %v1693_v53, %v1693_v53  ;;  %v1691_v3 = vmax.f32 %v1675_v51, 0.0  ;;  %2912 = vrot.lane.b32.xlu0 %v2888_v38, %s4351_s24  ;;  %v2534_v38 = vor.u32 %v2533_v25, %v2530_v21  ;;  %v2752_v34 = vsel %vm2726_vm14, %v2747_v63, %v2751_v4 }
 0x199   : > { %3095 = vrot.lane.b32.xlu1 %v2998_v11, %s4352_s26  ;;  %v2972_v33 = vrot.slane %v2970_v24, 7  ;;  %v2247_v35 = vshrl.u32 %v5087_v18, 16  ;;  %v2523_v40 = vshll.u32 %v5021_v2, 16  ;;  %v2990_v30 = vor.u32 %v2988_v59, %v5067_v42 }
 0x19a   : > { %2069 = vst.msk [vmem:[#allocation2 + $0x48] sm:$0xf] %vm1956_vm6, %v4029_v50  ;;  %v4027_v48 = vpack.c.bf16 %v1691_v3, %v1691_v3  ;;  %v2256_v58 = vrot.slane %v2254_v0, 1  ;;  %v2522_v41 = vrot.slane %v2520_v31, 1  ;;  %v2511_v26 = vshrl.u32 %v3957_v15, 16 }
 0x19b   : > { %v2252_v46 = vor.u32 %v2251_v61, %v2247_v35  ;;  %v2983_v49 = vsel %vm2968_vm12, %v2972_v33, %v2982_v17  ;;  %v2525_v2 = vrot.slane %v2523_v40, 2  ;;  %v2728_v47 = vshrl.u32 %v5044_v20, 16  ;;  %v4280_v40 = vld [vmem:[%s6254_s2 + $0x20] ss:$0 sps:$4 sm:$0xff]  }
 0x19c   : > { %2067 = vst.msk [vmem:[#allocation2 + $0x34] sm:$0xf] %vm1956_vm6, %v4027_v48  ;;  %2370 = vrot.lane.b32.xlu0 %v2272_v7, %s4342_s21  ;;  %v2731_v53 = vshll.u32 %v5044_v20, 16  ;;  %v2258_v51 = vshrl.u32 %v5029_v5, 16  ;;  %v2513_v56 = vrot.slane %v2511_v26, 1  ;;  %v2516_v57 = vrot.slane %v2514_v43, 2 }
 0x19d   : > { %2372 = vrot.lane.b32.xlu1 %v2275_v60, %s4342_s21  ;;  %v2257_v42 = vsel %vm503_vm2, %v2252_v46, %v2256_v58  ;;  %v2526_v50 = vor.u32 %v2525_v2, %v2522_v41  ;;  %v2730_v3 = vrot.slane %v2728_v47, 6  ;;  %v2738_v7 = vrot.slane %v2736_v45, 7  ;;  %v2137_v24 = vld [vmem:[#allocation2 + $0x44] sm:$0xe]  ;;  %v4308_v26 = vld [vmem:[%s4422_s19 + $0x18] sm:$0xc] }
 0x19e   : > { %v2260_v54 = vor.u32 %v2258_v51, %v2256_v58  ;;  %v2733_v28 = vrot.slane %v2731_v53, 7  ;;  %v5136_v16 = vor.u32 %v2516_v57, %v2513_v56  ;;  %v2506_v60 = vshll.u32 %v5078_v52, 16  ;;  %v2153_v0 = vld [vmem:[#allocation2 + $0x44] sm:$0xc]  ;;  %v4309_v2 = vld [vmem:[%s4422_s19 + $0x1c] sm:$0xf] }
 0x19f   : > { %v2535_v5 = vsel %vm705_vm3, %v2526_v50, %v2534_v38  ;;  %v3886_v36 = vrot.slane %v4307_v27, 10  ;;  %v2973_v55 = vshll.u32 %v5038_v14, 16  ;;  %v2505_v61 = vrot.slane %v2503_v12, 1  ;;  %v5155_v14 = vld [vmem:[#allocation2 + $0x44] sm:$0xf]  ;;  %v4283_v27 = vld [vmem:[%s6254_s2 + $0x18] sm:$0xff]  }
 0x1a0   : > { %2446 = vrot.lane.b32.xlu0 %v2424_v10, %s4341_s20  ;;  %v2734_v6 = vor.u32 %v2733_v28, %v2730_v3  ;;  %v2508_v59 = vrot.slane %v2506_v60, 2  ;;  %v1811_v35 = vsel %vm1539_vm7, %v5112_v32, 0  ;;  %v5178_v58 = vld [vmem:[#allocation2 + $0x4c] ss:$0 sps:$4 sm:$0x11]   ;;  %v3885_v43 = vrot.slane %v4308_v26, 10 }
 0x1a1   : > { %2644 = vrot.lane.b32.xlu1 %v2534_v38, %s4346_s25  ;;  %v5152_v4 = vld [vmem:[#allocation2 + $0x48] ss:$0 sps:$4 sm:$0x77]   ;;  %4138 = vmatpush3.bf16.msra.mxu1 %v1811_v35  ;;  %v1721_v47 = vrot.slane %v4309_v2, 6  ;;  %v4310_v53 = vld [vmem:[%s4422_s19 + $0x20] sm:$0x3] }
 0x1a2   : > { %v2739_v52 = vsel %vm2726_vm14, %v2734_v6, %v2738_v7  ;;  %v1724_v51 = vrot.slane %v4310_v53, 6  ;;  %4094 = vmatpush3.bf16.msra.mxu0 %v1811_v35  ;;  %v4312_v50 = vld [vmem:[%s4422_s19 + $0x2c] sm:$0x3]  ;;  %vm3538_vm7 = vcmask 1043456   ;;  %v2299_v35 = vshll.u32 %v5152_v4, 16 }
 0x1a3   : > { %v1731_v3 = vrot.slane %v4312_v50, 6  ;;  %v1722_v28 = vsel %vm5169_vm5, %v3885_v43, %v1721_v47  ;;  %v1723_v45 = vrot.slane %v1721_v47, 4  ;;  %4142 = vmatprep.subr.msk.bf16.mxu1 %vm3538_vm7, %v4280_v40  ;;  %v5209_v12 = vld [vmem:[#allocation2 + $0x34] sm:$0xf]  ;;  %v4288_v26 = vld [vmem:[%s6254_s2 + $0x8] sm:$0xff]  }
 0x1a4   : > { %2835 = vrot.lane.b32.xlu0 %v2747_v63, %s4353_s28  ;;  %v2975_v63 = vor.u32 %v2973_v55, %v2972_v33  ;;  %v5160_v33 = vld [vmem:[#allocation2 + $0x48] sm:$0xf]  ;;  %v2113_v55 = vld [vmem:[#allocation2 + $0x40] sm:$0x8]  ;;  %v5258_v43 = vld [vmem:[%s4422_s19 + $0x30] sm:$0xc] }
 0x1a5   : > { %2837 = vrot.lane.b32.xlu1 %v2752_v34, %s4353_s28  ;;  %v2432_v34 = vrot.slane %v5152_v4, 1  ;;  %v5176_v46 = vcombine.low %v5155_v14, %v5160_v33  ;;  %v5190_v56 = vcombine.low %v2137_v24, %v5160_v33  ;;  %v3007_v24 = vshrl.u32 %v4956_v44, 16  ;;  %v5262_v2 = vld [vmem:[%s4422_s19 + $0x3c] sm:$0xc]  ;;  %v5266_v47 = vld [vmem:[%s4422_s19 + $0x48] sm:$0xc] }
 0x1a6   : > { %v3889_v53 = vrot.slane %v5266_v47, 10 }
 0x1a8   : > { %3093 = vrot.lane.b32.xlu0 %v2990_v30, %s4352_s26 }
 0x1a9   : > { %3091 = vrot.lane.b32.xlu1 %v2983_v49, %s4352_s26  ;;  %v4000_v49 = vcombine.low %v2153_v0, %v5160_v33 }
 0x1ac   : > { %2366 = vrot.lane.b32.xlu0 %v2257_v42, %s4342_s21  ;;  %v4311_v42 = vld [vmem:[%s4422_s19 + $0x28] sm:$0xf] }
 0x1ad   : > { %v4087_v1 = vpop.f32.mrf.mxu0  ;;  %2368 = vrot.lane.b32.xlu1 %v2260_v54, %s4342_s21  ;;  %v1728_v54 = vrot.slane %v4311_v42, 6 }
 0x1ae   : > { %v1657_v20 = vmul.f32 %v4087_v1, %v4985_v23 }
 0x1af   : > { %v1609_v11 = vpop.f32.mrf.mxu0  ;;  %v1729_v1 = vsel %vm5169_vm5, %v3886_v36, %v1728_v54  ;;  %v5218_v36 = vld [vmem:[#allocation2 + $0x34] ss:$0 sps:$4 sm:$0x77]  }
 0x1b0   : > { %2642 = vrot.lane.b32.xlu0 %v2535_v5, %s4346_s25  ;;  %v1680_v37 = vadd.f32 %v4990_v9, %v1657_v20  ;;  %v1655_v48 = vmul.f32 %v4985_v23, %v1609_v11  ;;  %v1730_v20 = vrot.slane %v1728_v54, 4  ;;  %v2681_v5 = vrot.slane %v5176_v46, 6 }
 0x1b1   : > { %v4088_v8 = vpop.f32.mrf.mxu0  ;;  %2640 = vrot.lane.b32.xlu1 %v5136_v16, %s4346_s25  ;;  %v2898_v11 = vrot.slane %v5178_v58, 7  ;;  %v2288_v47 = vshrl.u32 %v5218_v36, 16 }
 0x1b2   : > { %v1696_v21 = vmax.f32 %v1680_v37, 0.0  ;;  %v1678_v25 = vadd.f32 %v4990_v9, %v1655_v48  ;;  %v1658_v13 = vmul.f32 %v4088_v8, %v4985_v23  ;;  %v2509_v37 = vor.u32 %v2508_v59, %v2505_v61  ;;  %v2136_v8 = vld [vmem:[#allocation2 + $0x30] sm:$0xe] }
 0x1b3   : > { %v1612_v10 = vpop.f32.mrf.mxu0  ;;  %v2897_v48 = vrot.slane %v5190_v56, 7  ;;  %v1732_v7 = vsel %vm5169_vm5, %v1730_v20, %v1731_v3  ;;  %v2429_v61 = vrot.slane %v5218_v36, 1  ;;  %v3025_v59 = vshll.u32 %v4962_v39, 16 }
 0x1b4   : > { %2831 = vrot.lane.b32.xlu0 %v2734_v6, %s4353_s28  ;;  %v4032_v22 = vpack.c.bf16 %v1696_v21, %v1696_v21  ;;  %v1694_v38 = vmax.f32 %v1678_v25, 0.0  ;;  %v1681_v19 = vadd.f32 %v4990_v9, %v1658_v13  ;;  %v1656_v29 = vmul.f32 %v4985_v23, %v1612_v10 }
 0x1b5   : > { %2833 = vrot.lane.b32.xlu1 %v2739_v52, %s4353_s28  ;;  %v1725_v6 = vsel %vm5169_vm5, %v1723_v45, %v1724_v51  ;;  %v3894_v21 = vcombine.low %v1729_v1, %v1732_v7  ;;  %v2518_v25 = vsel %vm705_vm3, %v2509_v37, %v5136_v16  ;;  %v3540_v13 = vsel %vm3538_vm7, %v4280_v40, 0 }
 0x1b6   : > { %2072 = vst.msk [vmem:[#allocation2 + $0x6c] sm:$0xf] %vm1956_vm6, %v4032_v22  ;;  %v4030_v17 = vpack.c.bf16 %v1694_v38, %v1694_v38  ;;  %v1697_v31 = vmax.f32 %v1681_v19, 0.0  ;;  %v1679_v15 = vadd.f32 %v4990_v9, %v1656_v29  ;;  %v3893_v60 = vcombine.low %v1722_v28, %v1725_v6  ;;  %v5223_v38 = vld [vmem:[#allocation2 + $0x38] ss:$0 sps:$4 sm:$0x11]  }
 0x1b7   : > { %v3022_v10 = vshrl.u32 %v4962_v39, 16  ;;  %v2899_v22 = vsel %vm2887_vm10, %v2897_v48, %v2898_v11  ;;  %v5226_v16 = vcombine.low %v2136_v8, %v5209_v12  ;;  %v2087_v19 = vld [vmem:[#allocation2 + $0x40] sm:$0xc]  ;;  %v2152_v29 = vld [vmem:[#allocation2 + $0x30] sm:$0xc]  ;;  %v5231_v52 = vcombine.low %v2113_v55, %v5155_v14 }
 0x1b8   : > { %3089 = vrot.lane.b32.xlu0 %v2975_v63, %s4352_s26  ;;  %2070 = vst.msk [vmem:[#allocation2 + $0x58] sm:$0xf] %vm1956_vm6, %v4030_v17  ;;  %v4033_v32 = vpack.c.bf16 %v1697_v31, %v1697_v31  ;;  %v1695_v41 = vmax.f32 %v1679_v15, 0.0  ;;  %4099 = vmatprep.mubr.msk.bf16.mxu1 %vm1366_vm8, %v3893_v60  ;;  %v4285_v63 = vld [vmem:[%s6254_s2 + $0x10] sm:$0xff]   ;;  %v2895_v31 = vrot.slane %v5223_v38, 7  ;;  %v3999_v15 = vcombine.low %v2152_v29, %v5209_v12 }
 0x1b9   : > { %2460 = vrot.lane.b32.xlu1 %v2432_v34, %s4341_s20  ;;  %4100 = vmatmul.mubr.msk.bf16.vlgmr.msra.gmra.mxu1 %vm1366_vm8, %v3894_v21  ;;  %v3024_v0 = vrot.slane %v3022_v10, 7  ;;  %v2894_v17 = vrot.slane %v5226_v16, 7  ;;  %v5248_v40 = vcombine.low %v2087_v19, %v5155_v14  ;;  %v3015_v39 = vshrl.u32 %v5190_v56, 16  ;;  %v2112_v11 = vld [vmem:[#allocation2 + $0x2c] sm:$0x8] }
 0x1ba   : > { %2073 = vst.msk [vmem:[#allocation2 + $0x70] sm:$0xf] %vm1956_vm6, %v4033_v32  ;;  %v4031_v57 = vpack.c.bf16 %v1695_v41, %v1695_v41  ;;  %4112 = vmatpush3.bf16.msra.mxu1 %v3540_v13  ;;  %v2431_v32 = vrot.slane %v5231_v52, 1  ;;  %v3960_v41 = vcombine.low %v5160_v33, %v5160_v33  ;;  %v3888_v14 = vrot.slane %v5262_v2, 10  ;;  %v2084_v19 = vld [vmem:[#allocation2 + $0x2c] sm:$0xc] }
 0x1bb   : > { %4113 = vmatprep.subr.bf16.mxu1 %v4283_v27  ;;  %v3009_v33 = vrot.slane %v3007_v24, 7  ;;  %v3010_v51 = vshll.u32 %v4956_v44, 16  ;;  %v2896_v42 = vsel %vm2887_vm10, %v2894_v17, %v2895_v31  ;;  %v3027_v54 = vor.u32 %v3025_v59, %v3024_v0 }
 0x1bc   : > { %3157 = vrot.lane.b32.xlu0 %v4000_v49, %s4350_s16  ;;  %2071 = vst.msk [vmem:[#allocation2 + $0x5c] sm:$0xf] %vm1956_vm6, %v4031_v57  ;;  %v3887_v49 = vrot.slane %v5258_v43, 10  ;;  %v2085_v57 = vld [vmem:[#allocation2 + $0x30] sm:$0xf]  ;;  %v5278_v3 = vrot.slane %v2299_v35, 1  ;;  %v2433_v44 = vsel %vm640_vm1, %v2431_v32, %v2432_v34 }
 0x1bd   : > { %2692 = vrot.lane.b32.xlu1 %v2681_v5, %s4348_s27  ;;  %v5276_v50 = vcombine.low %v2085_v57, %v5209_v12  ;;  %v2303_v28 = vshrl.u32 %v5152_v4, 16  ;;  %v2294_v45 = vshll.u32 %v5248_v40, 16  ;;  %v5285_v20 = vrot.slane %v3015_v39, 7  ;;  %v4316_v35 = vld [vmem:[%s4422_s19 + $0x34] sm:$0xf] }
 0x1be   : > { %4114 = vmatpush3.bf16.msra.mxu1 %v4283_v27  ;;  %v2562_v5 = vshrl.u32 %v3960_v41, 16  ;;  %v2565_v6 = vshll.u32 %v3960_v41, 16  ;;  %v2767_v7 = vshrl.u32 %v5176_v46, 16  ;;  %v2770_v4 = vshll.u32 %v5176_v46, 16 }
 0x1bf   : > { %4115 = vmatprep.subr.bf16.mxu1 %v4285_v63  ;;  %v2775_v34 = vshll.u32 %v5178_v58, 16  ;;  %v3028_v60 = vsel %vm2968_vm12, %v5285_v20, %v3027_v54  ;;  %v2292_v21 = vshrl.u32 %v5248_v40, 16  ;;  %v2680_v27 = vrot.slane %v5276_v50, 6  ;;  %v5312_v54 = vld [vmem:[%s4422_s19 + $0x54] sm:$0xc] }
 0x1c0   : > { %2638 = vrot.lane.b32.xlu0 %v2518_v25, %s4346_s25  ;;  %v2305_v55 = vor.u32 %v2303_v28, %v5278_v3  ;;  %v2296_v46 = vrot.slane %v2294_v45, 1  ;;  %v5303_v10 = vcombine.low %v2112_v11, %v2085_v57  ;;  %v2567_v0 = vrot.slane %v2565_v6, 2 }
 0x1c1   : > { %2926 = vrot.lane.b32.xlu1 %v2899_v22, %s4351_s24  ;;  %v2564_v22 = vrot.slane %v2562_v5, 1  ;;  %v2769_v59 = vrot.slane %v2767_v7, 6  ;;  %v2772_v31 = vrot.slane %v2770_v4, 7  ;;  %v1735_v32 = vrot.slane %v4316_v35, 6 }
 0x1c2   : > { %4116 = vmatpush3.bf16.msra.mxu1 %v4285_v63  ;;  %v3890_v28 = vrot.slane %v5312_v54, 10  ;;  %v2777_v45 = vrot.slane %v2775_v34, 7  ;;  %v2297_v5 = vor.u32 %v2296_v46, %v2292_v21  ;;  %v3000_v4 = vshrl.u32 %v5226_v16, 16 }
 0x1c3   : > { %4117 = vmatprep.subr.bf16.mxu1 %v4288_v26  ;;  %v5325_v6 = vor.u32 %v2567_v0, %v2564_v22  ;;  %v5331_v7 = vor.u32 %v2772_v31, %v2769_v59  ;;  %v2557_v43 = vshll.u32 %v5231_v52, 16  ;;  %v4321_v59 = vld [vmem:[%s4422_s19 + $0x4c] sm:$0xf] }
 0x1c4   : > { %2924 = vrot.lane.b32.xlu0 %v2897_v48, %s4351_s24  ;;  %v4290_v48 = vld [vmem:[%s6254_s2] sm:$0xff]   ;;  %v1749_v31 = vrot.slane %v4321_v59, 6 }
 0x1c5   : > { %2456 = vrot.lane.b32.xlu1 %v2429_v61, %s4341_s20 }
 0x1c6   : > { %4118 = vmatpush3.bf16.msra.mxu1 %v4288_v26 }
 0x1c7   : > { %4119 = vmatprep.subr.bf16.mxu1 %v4290_v48 }
 0x1c8   : > { %3153 = vrot.lane.b32.xlu0 %v3999_v15, %s4350_s16 }
 0x1c9   : > { %2922 = vrot.lane.b32.xlu1 %v2896_v42, %s4351_s24 }
 0x1ca   : > { %v4091_v1 = vpop.f32.mrf.mxu0  ;;  %4120 = vmatpush3.bf16.msra.mxu1 %v4290_v48  ;;  %v1737_v48 = vrot.slane %v1735_v32, 4 }
 0x1cb   : > { %v1661_v37 = vmul.f32 %v4091_v1, %v4985_v23  ;;  %v5316_v1 = vor.u32 %v3010_v51, %v3009_v33  ;;  %v2428_v33 = vrot.slane %v5303_v10, 1  ;;  %v5328_v51 = vpop.permute.xlu1 %3147 }
 0x1cc   : > { %2458 = vrot.lane.b32.xlu0 %v2433_v44, %s4341_s20  ;;  %v1625_v8 = vpop.f32.mrf.mxu0  ;;  %v5318_v44 = vcombine.low %v2084_v19, %v2085_v57  ;;  %v2554_v57 = vshrl.u32 %v5231_v52, 16  ;;  %v2778_v19 = vsel %vm2726_vm14, %v5331_v7, %v2777_v45  ;;  %v1750_v45 = vsel %vm5169_vm5, %v3889_v53, %v1749_v31 }
 0x1cd   : > { %v1684_v25 = vadd.f32 %v4990_v9, %v1661_v37  ;;  %v1659_v13 = vmul.f32 %v4985_v23, %v1625_v8  ;;  %3103 = vrot.lane.b32.xlu1 %v3028_v60, %s4352_s26  ;;  %v1736_v8 = vsel %vm5169_vm5, %v3887_v49, %v1735_v32  ;;  %v4318_v60 = vld [vmem:[%s4422_s19 + $0x38] sm:$0x3]  ;;  %v3018_v53 = vshll.u32 %v5190_v56, 16 }
 0x1ce   : > { %v4092_v58 = vpop.f32.mrf.mxu0  ;;  %v1738_v21 = vrot.slane %v4318_v60, 6  ;;  %v2279_v32 = vshll.u32 %v5318_v44, 16 }
 0x1cf   : > { %v1700_v29 = vmax.f32 %v1684_v25, 0.0  ;;  %v1682_v63 = vadd.f32 %v4990_v9, %v1659_v13  ;;  %v1662_v24 = vmul.f32 %v4092_v58, %v4985_v23  ;;  %v4319_v25 = vld [vmem:[%s4422_s19 + $0x40] sm:$0xf]  ;;  %v4320_v58 = vld [vmem:[%s4422_s19 + $0x44] sm:$0x3]  ;;  %v5369_v0 = vpop.permute.xlu1 %3151 }
 0x1d0   : > { %2690 = vrot.lane.b32.xlu0 %v2680_v27, %s4348_s27  ;;  %v1628_v15 = vpop.f32.mrf.mxu0  ;;  %v1742_v13 = vrot.slane %v4319_v25, 6  ;;  %v2302_v27 = vsel %vm503_vm2, %v2297_v5, %v5278_v3  ;;  %v1745_v22 = vrot.slane %v4320_v58, 6  ;;  %v1739_v49 = vsel %vm5169_vm5, %v1737_v48, %v1738_v21 }
 0x1d1   : > { %v4036_v39 = vpack.c.bf16 %v1700_v29, %v1700_v29  ;;  %v1698_v41 = vmax.f32 %v1682_v63, 0.0  ;;  %v1685_v26 = vadd.f32 %v4990_v9, %v1662_v24  ;;  %v1660_v42 = vmul.f32 %v4985_v23, %v1628_v15  ;;  %2380 = vrot.lane.b32.xlu1 %v2305_v55, %s4342_s21  ;;  %v4322_v15 = vld [vmem:[%s4422_s19 + $0x50] sm:$0x3] }
 0x1d2   : > { %v3959_v55 = vcombine.low %v5209_v12, %v5209_v12  ;;  %v1743_v3 = vsel %vm5169_vm5, %v3888_v14, %v1742_v13  ;;  %v1744_v12 = vrot.slane %v1742_v13, 4  ;;  %v2430_v29 = vsel %vm640_vm1, %v2428_v33, %v2429_v61 }
 0x1d3   : > { %2076 = vst.msk [vmem:[#allocation2 + $0x94] sm:$0xf] %vm1956_vm6, %v4036_v39  ;;  %v4034_v11 = vpack.c.bf16 %v1698_v41, %v1698_v41  ;;  %v1701_v37 = vmax.f32 %v1685_v26, 0.0  ;;  %v1683_v23 = vadd.f32 %v4990_v9, %v1660_v42  ;;  %v5363_v63 = vrot.slane %v3000_v4, 7  ;;  %v4323_v41 = vld [vmem:[%s4422_s19 + $0x58] sm:$0xf] }
 0x1d4   : > { %2920 = vrot.lane.b32.xlu0 %v2894_v17, %s4351_s24  ;;  %v2284_v17 = vshll.u32 %v5218_v36, 16  ;;  %v3895_v24 = vcombine.low %v1736_v8, %v1739_v49  ;;  %v1746_v14 = vsel %vm5169_vm5, %v1744_v12, %v1745_v22  ;;  %v1752_v61 = vrot.slane %v4322_v15, 6  ;;  %v4325_v36 = vld [vmem:[%s4422_s19] sm:$0xc]  ;;  %v4327_v22 = vld [vmem:[%s4422_s19 + $0xc] sm:$0xc] }
 0x1d5   : > { %2074 = vst.msk [vmem:[#allocation2 + $0x80] sm:$0xf] %vm1956_vm6, %v4034_v11  ;;  %v4037_v9 = vpack.c.bf16 %v1701_v37, %v1701_v37  ;;  %v1699_v34 = vmax.f32 %v1683_v23, 0.0  ;;  %2652 = vrot.lane.b32.xlu1 %v5325_v6, %s4346_s25  ;;  %v2545_v35 = vshrl.u32 %v3959_v55, 16  ;;  %v3896_v39 = vcombine.low %v1743_v3, %v1746_v14  ;;  %v4324_v11 = vld [vmem:[%s4422_s19 + $0x5c] sm:$0x3] }
 0x1d6   : > { %v5367_v2 = vrot.slane %v2284_v17, 1  ;;  %4103 = vmatprep.mubr.msk.bf16.mxu1 %vm1366_vm8, %v3895_v24  ;;  %v1756_v26 = vrot.slane %v4323_v41, 6  ;;  %v2548_v42 = vshll.u32 %v3959_v55, 16  ;;  %v1751_v5 = vrot.slane %v1749_v31, 4  ;;  %v4330_v31 = vld [vmem:[%s4422_s19 + $0x10] sm:$0xf] }
 0x1d7   : > { %2077 = vst.msk [vmem:[#allocation2 + $0x98] sm:$0xf] %vm1956_vm6, %v4037_v9  ;;  %v4035_v46 = vpack.c.bf16 %v1699_v34, %v1699_v34  ;;  %v1759_v37 = vrot.slane %v4324_v11, 6  ;;  %v3013_v23 = vsel %vm2968_vm12, %v5363_v63, %v5316_v1  ;;  %v2754_v33 = vshrl.u32 %v5276_v50, 16  ;;  %4104 = vmatmul.mubr.msk.bf16.gmra.mxu1 %vm1366_vm8, %v3896_v39 }
 0x1d8   : > { %2378 = vrot.lane.b32.xlu0 %v2302_v27, %s4342_s21  ;;  %v2757_v48 = vshll.u32 %v5276_v50, 16  ;;  %v1758_v4 = vrot.slane %v1756_v26, 4  ;;  %v1753_v9 = vsel %vm5169_vm5, %v1751_v5, %v1752_v61  ;;  %v1757_v1 = vsel %vm5169_vm5, %v3890_v28, %v1756_v26  ;;  %v5406_v28 = vpop.permute.xlu1 %3155 }
 0x1d9   : > { %2075 = vst.msk [vmem:[#allocation2 + $0x84] sm:$0xf] %vm1956_vm6, %v4035_v46  ;;  %2845 = vrot.lane.b32.xlu1 %v2778_v19, %s4353_s28  ;;  %v2277_v34 = vshrl.u32 %v5318_v44, 16  ;;  %v2281_v50 = vrot.slane %v2279_v32, 1  ;;  %v3897_v17 = vcombine.low %v1750_v45, %v1753_v9  ;;  %v3883_v60 = vrot.slane %v4325_v36, 10 }
 0x1da   : > { %v1760_v8 = vsel %vm5169_vm5, %v1758_v4, %v1759_v37  ;;  %v2290_v56 = vor.u32 %v2288_v47, %v5367_v2  ;;  %v2547_v54 = vrot.slane %v2545_v35, 1  ;;  %v2550_v21 = vrot.slane %v2548_v42, 2  ;;  %v4326_v46 = vld [vmem:[%s4422_s19 + $0x8] sm:$0x3]  ;;  %v2139_v47 = vld [vmem:[#allocation2 + $0x6c] sm:$0xe] }
 0x1db   : > { %v2756_v25 = vrot.slane %v2754_v33, 6  ;;  %v2759_v13 = vrot.slane %v2757_v48, 7  ;;  %v2762_v27 = vshll.u32 %v5223_v38, 16  ;;  %4107 = vmatprep.mubr.msk.bf16.mxu1 %vm1366_vm8, %v3897_v17  ;;  %v3898_v55 = vcombine.low %v1757_v1, %v1760_v8  ;;  %v4329_v38 = vld [vmem:[%s4422_s19 + $0x14] sm:$0x3] }
 0x1dc   : > { %2454 = vrot.lane.b32.xlu0 %v2430_v29, %s4341_s20  ;;  %v1710_v58 = vrot.slane %v4326_v46, 6  ;;  %v3020_v49 = vor.u32 %v3018_v53, %v5285_v20  ;;  %v2282_v3 = vor.u32 %v2281_v50, %v2277_v34  ;;  %v2556_v12 = vrot.slane %v2554_v57, 1  ;;  %v4328_v29 = vld [vmem:[%s4422_s19 + $0x4] sm:$0xf]  ;;  %v5427_v57 = vpop.permute.xlu1 %3159  ;;  %v2123_v33 = vld [vmem:[#allocation2 + $0x70] sm:$0xf] }
 0x1dd   : > { %3099 = vrot.lane.b32.xlu1 %v3013_v23, %s4352_s26  ;;  %v2559_v19 = vrot.slane %v2557_v43, 2  ;;  %v1707_v24 = vrot.slane %v4328_v29, 6  ;;  %v1717_v14 = vrot.slane %v4329_v38, 6  ;;  %v5419_v59 = vor.u32 %v2550_v21, %v2547_v54  ;;  %v5440_v37 = vld [vmem:[#allocation2 + $0x70] ss:$0 sps:$4 sm:$0x77]  }
 0x1de   : > { %v1714_v15 = vrot.slane %v4330_v31, 6  ;;  %v2760_v61 = vor.u32 %v2759_v13, %v2756_v25  ;;  %v2764_v35 = vrot.slane %v2762_v27, 7  ;;  %v2287_v39 = vsel %vm503_vm2, %v2282_v3, %v5367_v2  ;;  %v5445_v23 = vld [vmem:[#allocation2 + $0x6c] sm:$0xf]  ;;  %v2138_v25 = vld [vmem:[#allocation2 + $0x58] sm:$0xe] }
 0x1df   : > { %4108 = vmatmul.mubr.msk.bf16.gmra.mxu1 %vm1366_vm8, %v3898_v55  ;;  %v1708_v20 = vsel %vm5169_vm5, %v3883_v60, %v1707_v24  ;;  %v1709_v52 = vrot.slane %v1707_v24, 4  ;;  %v2560_v41 = vor.u32 %v2559_v19, %v2556_v12  ;;  %v2438_v30 = vrot.slane %v5440_v37, 1  ;;  %v5455_v53 = vld [vmem:[#allocation2 + $0x74] ss:$0 sps:$4 sm:$0x11]  }
 0x1e0   : > { %2843 = vrot.lane.b32.xlu0 %v5331_v7, %s4353_s28  ;;  %v3884_v7 = vrot.slane %v4327_v22, 10  ;;  %v1716_v32 = vrot.slane %v1714_v15, 4  ;;  %v2765_v5 = vsel %vm2726_vm14, %v2760_v61, %v2764_v35  ;;  %v5450_v48 = vpop.permute.xlu1 %3163  ;;  %v5453_v4 = vcombine.low %v5445_v23, %v2123_v33  ;;  %v4331_v13 = vld [vmem:[#allocation2 + $0x74] ss:$0 sps:$4 sm:$0x33]  }
 0x1e1   : > { %2376 = vrot.lane.b32.xlu1 %v2290_v56, %s4342_s21  ;;  %v1711_v26 = vsel %vm5169_vm5, %v1709_v52, %v1710_v58  ;;  %v2569_v2 = vsel %vm705_vm3, %v2560_v41, %v5325_v6  ;;  %v5460_v6 = vcombine.low %v2139_v47, %v2123_v33  ;;  %v2537_v9 = vshrl.u32 %v5303_v10, 16  ;;  %v2155_v56 = vld [vmem:[#allocation2 + $0x6c] sm:$0xc]  ;;  %v5477_v55 = vld [vmem:[#allocation2 + $0x60] ss:$0 sps:$4 sm:$0x11]  }
 0x1e2   : > { %v1715_v43 = vsel %vm5169_vm5, %v3884_v7, %v1714_v15  ;;  %v3891_v42 = vcombine.low %v1708_v20, %v1711_v26  ;;  %v1718_v45 = vsel %vm5169_vm5, %v1716_v32, %v1717_v14  ;;  %v2540_v1 = vshll.u32 %v5303_v10, 16  ;;  %v5474_v10 = vld [vmem:[#allocation2 + $0x5c] sm:$0xf]  ;;  %v2115_v35 = vld [vmem:[#allocation2 + $0x68] sm:$0x8] }
 0x1e3   : > { %v3892_v11 = vcombine.low %v1715_v43, %v1718_v45  ;;  %v2683_v34 = vrot.slane %v5453_v4, 6  ;;  %v3003_v50 = vshll.u32 %v5226_v16, 16  ;;  %v2903_v17 = vrot.slane %v5460_v6, 7 }
 0x1e4   : > { %3101 = vrot.lane.b32.xlu0 %v3020_v49, %s4352_s26  ;;  %4095 = vmatprep.mubr.msk.bf16.mxu0 %vm1366_vm8, %v3891_v42  ;;  %v2904_v8 = vrot.slane %v5455_v53, 7  ;;  %v5470_v36 = vpop.permute.xlu1 %3167  ;;  %v2539_v54 = vrot.slane %v2537_v9, 1  ;;  %v2542_v21 = vrot.slane %v2540_v1, 2  ;;  %v3052_v16 = vshrl.u32 %v4331_v13, 16 }
 0x1e5   : > { %2648 = vrot.lane.b32.xlu1 %v5419_v59, %s4346_s25  ;;  %4096 = vmatmul.mubr.msk.bf16.vlgmr.msra.gmra.mxu0 %vm1366_vm8, %v3892_v11  ;;  %v3005_v60 = vor.u32 %v3003_v50, %v5363_v63  ;;  %v4002_v58 = vcombine.low %v2155_v56, %v2123_v33  ;;  %v5482_v63 = vld [vmem:[#allocation2 + $0x5c] ss:$0 sps:$4 sm:$0x77]   ;;  %v5485_v7 = vcombine.low %v2138_v25, %v5474_v10  ;;  %v3055_v19 = vshll.u32 %v4331_v13, 16  ;;  %v2091_v25 = vld [vmem:[#allocation2 + $0x58] sm:$0xf] }
 0x1e6   : > { %v2905_v27 = vsel %vm2887_vm10, %v2903_v17, %v2904_v8  ;;  %v2543_v22 = vor.u32 %v2542_v21, %v2539_v54  ;;  %v2435_v3 = vrot.slane %v5482_v63, 1  ;;  %v3054_v12 = vrot.slane %v3052_v16, 7 }
 0x1e7   : > { %v2900_v29 = vrot.slane %v5485_v7, 7  ;;  %v2901_v24 = vrot.slane %v5477_v55, 7  ;;  %v3045_v31 = vshrl.u32 %v5460_v6, 16  ;;  %v3962_v20 = vcombine.low %v2123_v33, %v2123_v33 }
 0x1e8   : > { %2374 = vrot.lane.b32.xlu0 %v2287_v39, %s4342_s21  ;;  %v2552_v14 = vsel %vm705_vm3, %v2543_v22, %v5419_v59  ;;  %v3057_v43 = vor.u32 %v3055_v19, %v3054_v12  ;;  %v2154_v39 = vld [vmem:[#allocation2 + $0x58] sm:$0xc]  ;;  %v5514_v41 = vcombine.low %v2115_v35, %v5445_v23  ;;  %v2333_v45 = vshrl.u32 %v5440_v37, 16 }
 0x1e9   : > { %2841 = vrot.lane.b32.xlu1 %v2765_v5, %s4353_s28  ;;  %v2902_v52 = vsel %vm2887_vm10, %v2900_v29, %v2901_v24  ;;  %v5511_v59 = vrot.slane %v3045_v31, 7  ;;  %v2596_v5 = vshrl.u32 %v3962_v20, 16  ;;  %v2599_v11 = vshll.u32 %v3962_v20, 16 }
 0x1ea   : > { %v2793_v47 = vshrl.u32 %v5453_v4, 16  ;;  %v2796_v9 = vshll.u32 %v5453_v4, 16  ;;  %v2437_v50 = vrot.slane %v5514_v41, 1  ;;  %v4332_v4 = vld [vmem:[#allocation2 + $0x60] ss:$0 sps:$4 sm:$0x33]  }
 0x1eb   : > { %v3058_v33 = vsel %vm2968_vm12, %v5511_v59, %v3057_v43  ;;  %v2598_v56 = vrot.slane %v2596_v5, 1  ;;  %v2601_v54 = vrot.slane %v2599_v11, 2  ;;  %v3037_v21 = vshrl.u32 %v4332_v4, 16 }
 0x1ec   : > { %2650 = vrot.lane.b32.xlu0 %v2569_v2, %s4346_s25  ;;  %v2093_v2 = vld [vmem:[#allocation2 + $0x68] sm:$0xc]  ;;  %v2795_v13 = vrot.slane %v2793_v47, 6  ;;  %v2798_v16 = vrot.slane %v2796_v9, 7  ;;  %v2439_v22 = vsel %vm640_vm1, %v2437_v50, %v2438_v30  ;;  %v3961_v5 = vcombine.low %v5474_v10, %v5474_v10 }
 0x1ed   : > { %2468 = vrot.lane.b32.xlu1 %v2438_v30, %s4341_s20  ;;  %v5550_v24 = vor.u32 %v2601_v54, %v2598_v56  ;;  %v3030_v30 = vshrl.u32 %v5485_v7, 16  ;;  %vm3305_vm8 = vcmask 326656   ;;  %vm3338_vm6 = vcmask 392192  }
 0x1ee   : > { %v2799_v31 = vor.u32 %v2798_v16, %v2795_v13  ;;  %v2579_v56 = vshrl.u32 %v3961_v5, 16  ;;  %v2582_v54 = vshll.u32 %v3961_v5, 16  ;;  %vm3404_vm5 = vcmask 523264  }
 0x1ef   : > { %v5566_v47 = vrot.slane %v3030_v30, 7 }
 0x1f0   : > { %2839 = vrot.lane.b32.xlu0 %v2760_v61, %s4353_s28  ;;  %v2329_v61 = vshll.u32 %v5440_v37, 16 }
 0x1f1   : > { %2696 = vrot.lane.b32.xlu1 %v2683_v34, %s4348_s27  ;;  %v4001_v34 = vcombine.low %v2154_v39, %v5474_v10  ;;  %v2314_v39 = vshll.u32 %v5482_v63, 16 }
 0x1f2   : > { %v5519_v42 = vrot.slane %v2329_v61, 1 }
 0x1f4   : > { %3097 = vrot.lane.b32.xlu0 %v3005_v60, %s4352_s26  ;;  %v2335_v60 = vor.u32 %v2333_v45, %v5519_v42  ;;  %v2114_v45 = vld [vmem:[#allocation2 + $0x54] sm:$0x8] }
 0x1f5   : > { %2934 = vrot.lane.b32.xlu1 %v2905_v27, %s4351_s24  ;;  %v2801_v27 = vshll.u32 %v5455_v53, 16  ;;  %v3040_v53 = vshll.u32 %v4332_v4, 16  ;;  %v2090_v4 = vld [vmem:[#allocation2 + $0x54] sm:$0xc] }
 0x1f6   : > { %v5480_v46 = vpop.permute.xlu0 %3149 }
 0x1f7   : > { %v5487_v49 = vpop.permute.xlu1 %2452  ;;  %v2803_v61 = vrot.slane %v2801_v27, 7 }
 0x1f8   : > { %3165 = vrot.lane.b32.xlu0 %v4002_v58, %s4350_s16 }
 0x1f9   : > { %2464 = vrot.lane.b32.xlu1 %v2435_v3, %s4341_s20  ;;  %v2804_v11 = vsel %vm2726_vm14, %v2799_v31, %v2803_v61  ;;  %v2581_v61 = vrot.slane %v2579_v56, 1 }
 0x1fa   : > { %v5496_v38 = vpop.permute.xlu0 %2916 }
 0x1fb   : > { %v5501_v15 = vpop.permute.xlu1 %2688 }
 0x1fc   : > { %2646 = vrot.lane.b32.xlu0 %v2552_v14, %s4346_s25  ;;  %v3039_v14 = vrot.slane %v3037_v21, 7 }
 0x1fd   : > { %2930 = vrot.lane.b32.xlu1 %v2902_v52, %s4351_s24 }
 0x1fe   : > { %v5509_v32 = vpop.permute.xlu0 %3145 }
 0x1ff   : > { %v5516_v26 = vpop.permute.xlu1 %2918 }
 0x200   : > { %2932 = vrot.lane.b32.xlu0 %v2903_v17, %s4351_s24  ;;  %v5532_v17 = vcombine.low %v2093_v2, %v5445_v23  ;;  %v3969_v23 = vcombine.low %v2091_v25, %v5474_v10  ;;  %v3042_v2 = vor.u32 %v3040_v53, %v3039_v14  ;;  %v2318_v10 = vshrl.u32 %v5482_v63, 16 }
 0x201   : > { %3111 = vrot.lane.b32.xlu1 %v3058_v33, %s4352_s26  ;;  %v3048_v63 = vshll.u32 %v5460_v6, 16 }
 0x202   : > { %v5527_v1 = vpop.permute.xlu0 %2450  ;;  %v2324_v12 = vshll.u32 %v5532_v17, 16  ;;  %v2682_v37 = vrot.slane %v3969_v23, 6  ;;  %v2322_v20 = vshrl.u32 %v5532_v17, 16  ;;  %v3043_v21 = vsel %vm2968_vm12, %v5566_v47, %v3042_v2 }
 0x203   : > { %v5534_v8 = vpop.permute.xlu1 %2448  ;;  %v2780_v13 = vshrl.u32 %v3969_v23, 16  ;;  %v2783_v16 = vshll.u32 %v3969_v23, 16  ;;  %v3050_v6 = vor.u32 %v3048_v63, %v5511_v59  ;;  %v5633_v59 = vld [vmem:[#allocation2 + $0x9c] ss:$0 sps:$4 sm:$0x11]  }
 0x204   : > { %3161 = vrot.lane.b32.xlu0 %v4001_v34, %s4350_s16  ;;  %v2326_v52 = vrot.slane %v2324_v12, 1  ;;  %v5568_v34 = vcombine.low %v2114_v45, %v2091_v25  ;;  %v5584_v12 = vcombine.low %v2090_v4, %v2091_v25  ;;  %v5644_v63 = vld [vmem:[#allocation2 + $0x9c] ss:$0 sps:$4 sm:$0x33]  }
 0x205   : > { %2388 = vrot.lane.b32.xlu1 %v2335_v60, %s4342_s21  ;;  %v2316_v60 = vrot.slane %v2314_v39, 1  ;;  %v2782_v30 = vrot.slane %v2780_v13, 6  ;;  %v2785_v23 = vrot.slane %v2783_v16, 7  ;;  %v5623_v16 = vld [vmem:[#allocation2 + $0x94] sm:$0xf] }
 0x206   : > { %v5540_v58 = vpop.permute.xlu0 %2686  ;;  %v2327_v9 = vor.u32 %v2326_v52, %v2322_v20  ;;  %v2788_v20 = vshll.u32 %v5477_v55, 16  ;;  %v2309_v25 = vshll.u32 %v5584_v12, 16 }
 0x207   : > { %v5547_v19 = vpop.permute.xlu1 %2914  ;;  %v2320_v53 = vor.u32 %v2318_v10, %v2316_v60  ;;  %v5602_v5 = vor.u32 %v2785_v23, %v2782_v30  ;;  %v2591_v10 = vshll.u32 %v5514_v41, 16 }
 0x208   : > { %2466 = vrot.lane.b32.xlu0 %v2439_v22, %s4341_s20  ;;  %v2332_v22 = vsel %vm503_vm2, %v2327_v9, %v5519_v42  ;;  %v2311_v2 = vrot.slane %v2309_v25, 1  ;;  %v2588_v9 = vshrl.u32 %v5514_v41, 16 }
 0x209   : > { %2660 = vrot.lane.b32.xlu1 %v5550_v24, %s4346_s25 }
 0x20a   : > { %v5554_v35 = vpop.permute.xlu0 %2912  ;;  %v2590_v41 = vrot.slane %v2588_v9, 1  ;;  %v2574_v9 = vshll.u32 %v5568_v34, 16 }
 0x20b   : > { %v5558_v43 = vpop.permute.xlu1 %3095 }
 0x20c   : > { %2694 = vrot.lane.b32.xlu0 %v2682_v37, %s4348_s27  ;;  %v2584_v37 = vrot.slane %v2582_v54, 2 }
 0x20d   : > { %2853 = vrot.lane.b32.xlu1 %v2804_v11, %s4353_s28  ;;  %v2790_v11 = vrot.slane %v2788_v20, 7  ;;  %v4276_v20 = vld [vmem:[#allocation2 + $0xc] ss:$0 sps:$4 sm:$0x33]  }
 0x20e   : > { %v2371_v33 = vpop.permute.xlu0 %2370  ;;  %v5600_v45 = vor.u32 %v2584_v37, %v2581_v61  ;;  %v2141_v37 = vld [vmem:[#allocation2 + $0x94] sm:$0xe] }
 0x20f   : > { %v5570_v50 = vpop.permute.xlu1 %2372  ;;  %v2791_v54 = vsel %vm2726_vm14, %v5602_v5, %v2790_v11  ;;  %v3183_v30 = vsel %vm1383_vm9, %v5025_v62, %v2371_v33  ;;  %v2571_v33 = vshrl.u32 %v5568_v34, 16 }
 0x210   : > { %2928 = vrot.lane.b32.xlu0 %v2900_v29, %s4351_s24  ;;  %v2434_v29 = vrot.slane %v5568_v34, 1 }
 0x211   : > { %3107 = vrot.lane.b32.xlu1 %v3043_v21, %s4352_s26  ;;  %v5621_v21 = vld [vmem:[#allocation2 + $0x98] ss:$0 sps:$4 sm:$0x77]  }
 0x212   : > { %v5579_v27 = vpop.permute.xlu0 %2446  ;;  %v2436_v42 = vsel %vm640_vm1, %v2434_v29, %v2435_v3  ;;  %v2307_v3 = vshrl.u32 %v5584_v12, 16  ;;  %v2593_v29 = vrot.slane %v2591_v10, 2 }
 0x213   : > { %v5586_v14 = vpop.permute.xlu1 %2644 }
 0x214   : > { %2386 = vrot.lane.b32.xlu0 %v2332_v22, %s4342_s21  ;;  %v2312_v13 = vor.u32 %v2311_v2, %v2307_v3  ;;  %v5625_v22 = vld [vmem:[#allocation2 + $0x98] sm:$0xf]  ;;  %v2594_v25 = vor.u32 %v2593_v29, %v2590_v41  ;;  %v4274_v3 = vld [vmem:[#allocation2 + $0x20] ss:$0 sps:$4 sm:$0x33]  }
 0x215   : > { %2384 = vrot.lane.b32.xlu1 %v2320_v53, %s4342_s21  ;;  %v5631_v61 = vcombine.low %v5623_v16, %v5625_v22  ;;  %v5642_v11 = vcombine.low %v2141_v37, %v5625_v22 }
 0x216   : > { %v5591_v52 = vpop.permute.xlu0 %2835  ;;  %v2603_v34 = vsel %vm705_vm3, %v2594_v25, %v5550_v24 }
 0x217   : > { %v5597_v39 = vpop.permute.xlu1 %2837  ;;  %v2685_v62 = vrot.slane %v5631_v61, 6 }
 0x218   : > { %2462 = vrot.lane.b32.xlu0 %v2436_v42, %s4341_s20  ;;  %v2317_v42 = vsel %vm503_vm2, %v2312_v13, %v2316_v60  ;;  %v3222_v60 = vsel %vm1417_vm11, %v3183_v30, %v5527_v1  ;;  %v3186_v13 = vsel %vm1383_vm9, %v4274_v3, %v5570_v50  ;;  %v3082_v1 = vshrl.u32 %v5644_v63, 16  ;;  %v5669_v50 = vld [vmem:[#allocation2 + $0x84] sm:$0xf] }
 0x219   : > { %2656 = vrot.lane.b32.xlu1 %v5600_v45, %s4346_s25  ;;  %v3224_v3 = vsel %vm1417_vm11, %v3186_v13, %v5487_v49  ;;  %v3033_v49 = vshll.u32 %v5485_v7, 16 }
 0x21a   : > { %v5606_v55 = vpop.permute.xlu0 %3093 }
 0x21b   : > { %v5612_v56 = vpop.permute.xlu1 %3091 }
 0x21c   : > { %2851 = vrot.lane.b32.xlu0 %v2799_v31, %s4353_s28  ;;  %v2444_v31 = vrot.slane %v5621_v21, 1 }
 0x21d   : > { %2849 = vrot.lane.b32.xlu1 %v2791_v54, %s4353_s28  ;;  %v2909_v54 = vrot.slane %v5642_v11, 7 }
 0x21e   : > { %v5618_v4 = vpop.permute.xlu0 %2366 }
 0x21f   : > { %v2369_v53 = vpop.permute.xlu1 %2368 }
 0x220   : > { %3109 = vrot.lane.b32.xlu0 %v3050_v6, %s4352_s26  ;;  %v3181_v10 = vsel %vm1383_vm9, %v4276_v20, %v2369_v53  ;;  %v2910_v6 = vrot.slane %v5633_v59, 7  ;;  %v5663_v53 = vld [vmem:[#allocation2 + $0x88] ss:$0 sps:$4 sm:$0x11]   ;;  %v2573_v20 = vrot.slane %v2571_v33, 1 }
 0x221   : > { %2476 = vrot.lane.b32.xlu1 %v2444_v31, %s4341_s20  ;;  %v3220_v37 = vsel %vm1417_vm11, %v3181_v10, %v5534_v8  ;;  %v2907_v10 = vrot.slane %v5663_v53, 7 }
 0x222   : > { %v2643_v23 = vpop.permute.xlu0 %2642  ;;  %v2911_v8 = vsel %vm2887_vm10, %v2909_v54, %v2910_v6 }
 0x223   : > { %v2641_v2 = vpop.permute.xlu1 %2640  ;;  %v3254_v41 = vsel %vm1451_vm13, %v3222_v60, %v2643_v23  ;;  %v2140_v23 = vld [vmem:[#allocation2 + $0x80] sm:$0xe]  ;;  %v3084_v60 = vrot.slane %v3082_v1, 7 }
 0x224   : > { %2382 = vrot.lane.b32.xlu0 %v2317_v42, %s4342_s21  ;;  %v2576_v42 = vrot.slane %v2574_v9, 2  ;;  %v3285_v24 = vsel %vm1485_vm15, %v3254_v41, %v5501_v15  ;;  %v3252_v25 = vsel %vm1451_vm13, %v3220_v37, %v2641_v2  ;;  %v5684_v9 = vld [vmem:[#allocation2 + $0x84] ss:$0 sps:$4 sm:$0x77]   ;;  %v5688_v2 = vcombine.low %v2140_v23, %v5669_v50 }
 0x225   : > { %2700 = vrot.lane.b32.xlu1 %v2685_v62, %s4348_s27  ;;  %v3256_v62 = vsel %vm1451_vm13, %v3224_v3, %v5586_v14  ;;  %v3311_v14 = vsel %vm3305_vm8, %v3285_v24, %v5591_v52  ;;  %v3283_v6 = vsel %vm1485_vm15, %v3252_v25, %v5540_v58  ;;  %v2441_v7 = vrot.slane %v5684_v9, 1  ;;  %v2099_v3 = vld [vmem:[#allocation2 + $0x90] sm:$0xc] }
 0x226   : > { %v5659_v29 = vpop.permute.xlu0 %2831  ;;  %v2577_v41 = vor.u32 %v2576_v42, %v2573_v20  ;;  %v3286_v37 = vsel %vm1485_vm15, %v3256_v62, %v5501_v15  ;;  %v2906_v23 = vrot.slane %v5688_v2, 7  ;;  %v3085_v52 = vshll.u32 %v5644_v63, 16 }
 0x227   : > { %v2834_v30 = vpop.permute.xlu1 %2833  ;;  %v3313_v24 = vsel %vm3305_vm8, %v3286_v37, %v5597_v39  ;;  %v3035_v20 = vor.u32 %v3033_v49, %v5566_v47  ;;  %v3075_v15 = vshrl.u32 %v5642_v11, 16  ;;  %v3178_v42 = vsel %vm1383_vm9, %v5087_v18, %v5618_v4 }
 0x228   : > { %2658 = vrot.lane.b32.xlu0 %v2603_v34, %s4346_s25  ;;  %v2117_v34 = vld [vmem:[#allocation2 + $0x90] sm:$0x8]  ;;  %v3309_v1 = vsel %vm3305_vm8, %v3283_v6, %v2834_v30  ;;  %v2359_v30 = vshll.u32 %v5621_v21, 16  ;;  %v3344_v39 = vsel %vm3338_vm6, %v3311_v14, %v5496_v38  ;;  %v2586_v47 = vsel %vm705_vm3, %v2577_v41, %v5600_v45 }
 0x229   : > { %2942 = vrot.lane.b32.xlu1 %v2911_v8, %s4351_s24  ;;  %v5721_v25 = vcombine.low %v2117_v34, %v5623_v16  ;;  %v3342_v8 = vsel %vm3338_vm6, %v3309_v1, %v5547_v19  ;;  %v3964_v49 = vcombine.low %v5625_v22, %v5625_v22  ;;  %v5733_v18 = vcombine.low %v2099_v3, %v5623_v16 }
 0x22a   : > { %v5682_v33 = vpop.permute.xlu0 %3089  ;;  %v3346_v38 = vsel %vm3338_vm6, %v3313_v24, %v5516_v26  ;;  %v2908_v19 = vsel %vm2887_vm10, %v2906_v23, %v2907_v10  ;;  %v3087_v4 = vor.u32 %v3085_v52, %v3084_v60  ;;  %v2363_v14 = vshrl.u32 %v5621_v21, 16 }
 0x22b   : > { %v5695_v13 = vpop.permute.xlu1 %2460  ;;  %v3377_v6 = vsel %vm3371_vm4, %v3344_v39, %v5606_v55  ;;  %v3218_v45 = vsel %vm1417_vm11, %v3178_v42, %v5579_v27  ;;  %v5746_v41 = vrot.slane %v3075_v15, 7  ;;  %v5748_v34 = vrot.slane %v2359_v30, 1 }
 0x22c   : > { %2847 = vrot.lane.b32.xlu0 %v5602_v5, %s4353_s28  ;;  %v3375_v26 = vsel %vm3371_vm4, %v3342_v8, %v5612_v56  ;;  %v2819_v60 = vshrl.u32 %v5631_v61, 16  ;;  %v2822_v37 = vshll.u32 %v5631_v61, 16  ;;  %v3379_v55 = vsel %vm3371_vm4, %v3346_v38, %v5558_v43 }
 0x22d   : > { %2472 = vrot.lane.b32.xlu1 %v2441_v7, %s4341_s20  ;;  %v2630_v52 = vshrl.u32 %v3964_v49, 16  ;;  %v2633_v3 = vshll.u32 %v3964_v49, 16  ;;  %v3410_v56 = vsel %vm3404_vm5, %v3377_v6, %v5480_v46  ;;  %v3088_v61 = vsel %vm2968_vm12, %v5746_v41, %v3087_v4 }
 0x22e   : > { %v5710_v5 = vpop.permute.xlu0 %3157  ;;  %v2443_v43 = vrot.slane %v5721_v25, 1  ;;  %v2365_v30 = vor.u32 %v2363_v14, %v5748_v34  ;;  %v3408_v46 = vsel %vm3404_vm5, %v3375_v26, %v5328_v51  ;;  %vm3513_vm10 = vcmask 588800  }
 0x22f   : > { %v5725_v62 = vpop.permute.xlu1 %2692  ;;  %v2821_v39 = vrot.slane %v2819_v60, 6  ;;  %v2824_v8 = vrot.slane %v2822_v37, 7  ;;  %v3456_v49 = vrot.slane %v3410_v56, 2  ;;  %v2632_v51 = vrot.slane %v2630_v52, 1 }
 0x230   : > { %3105 = vrot.lane.b32.xlu0 %v3035_v20, %s4352_s26  ;;  %v5769_v20 = vld [vmem:[#allocation2 + $0x88] ss:$0 sps:$4 sm:$0x33]   ;;  %v2635_v38 = vrot.slane %v2633_v3, 2  ;;  %v3454_v4 = vrot.slane %v3408_v46, 2  ;;  %v2827_v14 = vshll.u32 %v5633_v59, 16 }
 0x231   : > { %2938 = vrot.lane.b32.xlu1 %v2908_v19, %s4351_s24  ;;  %v2354_v26 = vshll.u32 %v5733_v18, 16  ;;  %v2825_v37 = vor.u32 %v2824_v8, %v2821_v39  ;;  %v3060_v3 = vshrl.u32 %v5688_v2, 16  ;;  %v2352_v56 = vshrl.u32 %v5733_v18, 16 }
 0x232   : > { %v2639_v16 = vpop.permute.xlu0 %2638  ;;  %v5806_v60 = vor.u32 %v2635_v38, %v2632_v51  ;;  %v2829_v21 = vrot.slane %v2827_v14, 7  ;;  %v2348_v38 = vshrl.u32 %v5684_v9, 16  ;;  %v2096_v14 = vld [vmem:[#allocation2 + $0x7c] sm:$0xc] }
 0x233   : > { %v3250_v10 = vsel %vm1451_vm13, %v3218_v45, %v2639_v16  ;;  %v5759_v1 = vpop.permute.xlu1 %2926  ;;  %v5826_v39 = vrot.slane %v3060_v3, 7 }
 0x234   : > { %v3282_v27 = vsel %vm1485_vm15, %v3250_v10, %v5540_v58  ;;  %2654 = vrot.lane.b32.xlu0 %v2586_v47, %s4346_s25  ;;  %v2830_v46 = vsel %vm2726_vm14, %v2825_v37, %v2829_v21 }
 0x235   : > { %v3307_v24 = vsel %vm3305_vm8, %v3282_v27, %v5659_v29  ;;  %3119 = vrot.lane.b32.xlu1 %v3088_v61, %s4352_s26  ;;  %v3412_v29 = vsel %vm3404_vm5, %v3379_v55, %v5369_v0  ;;  %v2097_v0 = vld [vmem:[#allocation2 + $0x80] sm:$0xf] }
 0x236   : > { %v3340_v58 = vsel %vm3338_vm6, %v3307_v24, %v5554_v35  ;;  %v5774_v15 = vpop.permute.xlu0 %2924  ;;  %v3457_v6 = vrot.slane %v3412_v29, 2  ;;  %v2356_v24 = vrot.slane %v2354_v26, 1  ;;  %v5844_v26 = vcombine.low %v2096_v14, %v2097_v0 }
 0x237   : > { %v3373_v42 = vsel %vm3371_vm4, %v3340_v58, %v5682_v33  ;;  %v5783_v47 = vpop.permute.xlu1 %2456  ;;  %v3067_v33 = vshrl.u32 %v5769_v20, 16  ;;  %v2116_v58 = vld [vmem:[#allocation2 + $0x7c] sm:$0x8] }
 0x238   : > { %2940 = vrot.lane.b32.xlu0 %v2909_v54, %s4351_s24  ;;  %v3406_v35 = vsel %vm3404_vm5, %v3373_v42, %v5509_v32  ;;  %v3971_v54 = vcombine.low %v2097_v0, %v5669_v50  ;;  %v2445_v32 = vsel %vm640_vm1, %v2443_v43, %v2444_v31  ;;  %v3458_v59 = vsel %vm882_vm0, %v3456_v49, %v3457_v6 }
 0x239   : > { %v3453_v19 = vrot.slane %v3406_v35, 2  ;;  %2396 = vrot.lane.b32.xlu1 %v2365_v30, %s4342_s21  ;;  %v3069_v55 = vrot.slane %v3067_v33, 7  ;;  %v3070_v31 = vshll.u32 %v5769_v20, 16  ;;  %v2344_v43 = vshll.u32 %v5684_v9, 16 }
 0x23a   : > { %v5793_v45 = vpop.permute.xlu0 %3153  ;;  %v2684_v52 = vrot.slane %v3971_v54, 6  ;;  %v3963_v30 = vcombine.low %v5669_v50, %v5669_v50  ;;  %v2357_v8 = vor.u32 %v2356_v24, %v2352_v56  ;;  %v5828_v35 = vcombine.low %v2116_v58, %v2097_v0 }
 0x23b   : > { %v3455_v16 = vsel %vm882_vm0, %v3453_v19, %v3454_v4  ;;  %v5801_v10 = vpop.permute.xlu1 %2922  ;;  %v3072_v29 = vor.u32 %v3070_v31, %v3069_v55  ;;  %v2346_v51 = vrot.slane %v2344_v43, 1  ;;  %v2806_v31 = vshrl.u32 %v3971_v54, 16 }
 0x23c   : > { %2474 = vrot.lane.b32.xlu0 %v2445_v32, %s4341_s20  ;;  %4121 = vmatprep.mubr.msk.bf16.mxu1 %vm3513_vm10, %v3455_v16  ;;  %v2613_v19 = vshrl.u32 %v3963_v30, 16  ;;  %v2616_v4 = vshll.u32 %v3963_v30, 16  ;;  %v2362_v32 = vsel %vm503_vm2, %v2357_v8, %v5748_v34  ;;  %v2440_v16 = vrot.slane %v5828_v35, 1 }
 0x23d   : > { %4122 = vmatmul.mubr.msk.bf16.vlgmr.msra.gmra.mxu1 %vm3513_vm10, %v3458_v59  ;;  %2668 = vrot.lane.b32.xlu1 %v5806_v60, %s4346_s25  ;;  %v3073_v33 = vsel %vm2968_vm12, %v5826_v39, %v3072_v29  ;;  %v2350_v59 = vor.u32 %v2348_v38, %v2346_v51  ;;  %v2339_v56 = vshll.u32 %v5844_v26, 16  ;;  %v2808_v43 = vrot.slane %v2806_v31, 6 }
 0x23e   : > { %v5812_v27 = vpop.permute.xlu0 %2458  ;;  %v2615_v21 = vrot.slane %v2613_v19, 1  ;;  %v2618_v55 = vrot.slane %v2616_v4, 2  ;;  %v2442_v34 = vsel %vm640_vm1, %v2440_v16, %v2441_v7  ;;  %v2814_v30 = vshll.u32 %v5663_v53, 16 }
 0x23f   : > { %v5816_v61 = vpop.permute.xlu1 %3103  ;;  %v2337_v9 = vshrl.u32 %v5844_v26, 16  ;;  %v2341_v7 = vrot.slane %v2339_v56, 1  ;;  %v2622_v29 = vshrl.u32 %v5721_v25, 16  ;;  %v2625_v8 = vshll.u32 %v5721_v25, 16 }
 0x240   : > { %2698 = vrot.lane.b32.xlu0 %v2684_v52, %s4348_s27  ;;  %v2809_v52 = vshll.u32 %v3971_v54, 16  ;;  %v2619_v24 = vor.u32 %v2618_v55, %v2615_v21  ;;  %v2816_v4 = vrot.slane %v2814_v30, 7  ;;  %v2605_v31 = vshrl.u32 %v5828_v35, 16  ;;  %s3796_s27 = sshll.u32 %s3789_s14, 4 }
 0x241   : > { %2861 = vrot.lane.b32.xlu1 %v2830_v46, %s4353_s28  ;;  %v3078_v46 = vshll.u32 %v5642_v11, 16  ;;  %v2342_v11 = vor.u32 %v2341_v7, %v2337_v9  ;;  %p361_p4 = scmp.lt.s32.totalorder %s3796_s27, 31 }
 0x242   : > { %v5824_v42 = vpop.permute.xlu0 %2690  ;;  %v2811_v58 = vrot.slane %v2809_v52, 7  ;;  %v2608_v52 = vshll.u32 %v5828_v35, 16  ;;  %v2607_v30 = vrot.slane %v2605_v31, 1 }
 0x243   : > { %v5830_v49 = vpop.permute.xlu1 %2380  ;;  %v3080_v14 = vor.u32 %v3078_v46, %v5746_v41  ;;  %v4294_v46 = vld [vmem:[#allocation2 + $0x48] ss:$0 sps:$4 sm:$0x33]   ;;  %s6268_s27 = smov (!%p361_p4, %s3796_s27), 31 }
 0x244   : > { %2936 = vrot.lane.b32.xlu0 %v2906_v23, %s4351_s24  ;;  %v2812_v19 = vor.u32 %v2811_v58, %v2808_v43  ;;  %v3063_v43 = vshll.u32 %v5688_v2, 16  ;;  %v4299_v58 = vld [vmem:[#allocation2 + $0x34] ss:$0 sps:$4 sm:$0x33]   ;;  %v3196_v7 = vsel %vm1383_vm9, %v4294_v46, %v5830_v49  ;;  %s3797_s14 = sshll.u32 %s6268_s27, 3 }
 0x245   : > { %3115 = vrot.lane.b32.xlu1 %v3073_v33, %s4352_s26  ;;  %v2624_v33 = vrot.slane %v2622_v29, 1  ;;  %s6171_s17 = scalar_lea.vmem %s6262_s10, %s3797_s14 }
 0x246   : > { %v5839_v6 = vpop.permute.xlu0 %2920  ;;  %v2817_v25 = vsel %vm2726_vm14, %v2812_v19, %v2816_v4  ;;  %v3065_v2 = vor.u32 %v3063_v43, %v5826_v39 }
 0x247   : > { %v5846_v23 = vpop.permute.xlu1 %2652 }
 0x248   : > { %2394 = vrot.lane.b32.xlu0 %v2362_v32, %s4342_s21  ;;  %v2627_v32 = vrot.slane %v2625_v8, 2 }
 0x249   : > { %2392 = vrot.lane.b32.xlu1 %v2350_v59, %s4342_s21 }
 0x24a   : > { %v2379_v3 = vpop.permute.xlu0 %2378  ;;  %v2628_v21 = vor.u32 %v2627_v32, %v2624_v33  ;;  %v2156_v33 = vld [vmem:[#allocation2 + $0x80] sm:$0xc] }
 0x24b   : > { %v5854_v0 = vpop.permute.xlu1 %2845 }
 0x24c   : > { %2470 = vrot.lane.b32.xlu0 %v2442_v34, %s4341_s20 }
 0x24d   : > { %2664 = vrot.lane.b32.xlu1 %v2619_v24, %s4346_s25 }
 0x24e   : > { %v5859_v54 = vpop.permute.xlu0 %2454 }
 0x24f   : > { %v5865_v38 = vpop.permute.xlu1 %3099 }
 0x250   : > { %2859 = vrot.lane.b32.xlu0 %v2825_v37, %s4353_s28  ;;  %v2347_v37 = vsel %vm503_vm2, %v2342_v11, %v2346_v51  ;;  %v3193_v51 = vsel %vm1383_vm9, %v5248_v40, %v2379_v3 }
 0x251   : > { %3171 = vrot.lane.b32.xlu1 %v5769_v20, %s4350_s16  ;;  %v2637_v20 = vsel %vm705_vm3, %v2628_v21, %v5806_v60  ;;  %v3230_v35 = vsel %vm1417_vm11, %v3193_v51, %v5812_v27 }
 0x252   : > { %v2844_v53 = vpop.permute.xlu0 %2843 }
 0x253   : > { %v2377_v16 = vpop.permute.xlu1 %2376 }
 0x254   : > { %3117 = vrot.lane.b32.xlu0 %v3080_v14, %s4352_s26  ;;  %v3191_v60 = vsel %vm1383_vm9, %v4299_v58, %v2377_v16 }
 0x255   : > { %2857 = vrot.lane.b32.xlu1 %v2817_v25, %s4353_s28  ;;  %v3228_v8 = vsel %vm1417_vm11, %v3191_v60, %v5783_v47 }
 0x256   : > { %v3102_v59 = vpop.permute.xlu0 %3101 }
 0x257   : > { %v2649_v55 = vpop.permute.xlu1 %2648 }
 0x258   : > { %2390 = vrot.lane.b32.xlu0 %v2347_v37, %s4342_s21  ;;  %v3260_v27 = vsel %vm1451_vm13, %v3228_v8, %v2649_v55  ;;  %v2157_v55 = vld [vmem:[#allocation2 + $0x94] sm:$0xc]  ;;  %v5983_v8 = vld [vmem:[%s6260_s8] ss:$0 sm:$0xff] }
 0x259   : > { %3175 = vrot.lane.b32.xlu1 %v5644_v63, %s4350_s16  ;;  %v2610_v63 = vrot.slane %v2608_v52, 2  ;;  %v3289_v47 = vsel %vm1485_vm15, %v3260_v27, %v5824_v42 }
 0x25a   : > { %v2375_v41 = vpop.permute.xlu0 %2374 }
 0x25b   : > { %v2842_v34 = vpop.permute.xlu1 %2841  ;;  %v2611_v29 = vor.u32 %v2610_v63, %v2607_v30  ;;  %v3188_v21 = vsel %vm1383_vm9, %v5318_v44, %v2375_v41  ;;  %v4004_v44 = vcombine.low %v2157_v55, %v5625_v22 }
 0x25c   : > { %2666 = vrot.lane.b32.xlu0 %v2637_v20, %s4346_s25  ;;  %v3317_v25 = vsel %vm3305_vm8, %v3289_v47, %v2842_v34 }
 0x25d   : > { %v2620_v11 = vsel %vm705_vm3, %v2611_v29, %v2619_v24  ;;  %v4003_v24 = vcombine.low %v2156_v33, %v5669_v50  ;;  %v3350_v20 = vsel %vm3338_vm6, %v3317_v25, %v5801_v10  ;;  %v3226_v50 = vsel %vm1417_vm11, %v3188_v21, %v5859_v54 }
 0x25e   : > { %v2651_v56 = vpop.permute.xlu0 %2650 }
 0x25f   : > { %v5886_v9 = vpop.permute.xlu1 %2468  ;;  %v3262_v40 = vsel %vm1451_vm13, %v3230_v35, %v2651_v56 }
 0x260   : > { %2855 = vrot.lane.b32.xlu0 %v2812_v19, %s4353_s28  ;;  %v3232_v19 = vsel %vm1417_vm11, %v3196_v7, %v5695_v13  ;;  %v3291_v49 = vsel %vm1485_vm15, %v3262_v40, %v5725_v62 }
 0x261   : > { %v3264_v14 = vsel %vm1451_vm13, %v3232_v19, %v5846_v23  ;;  %v3319_v32 = vsel %vm3305_vm8, %v3291_v49, %v2844_v53 }
 0x262   : > { %v2840_v3 = vpop.permute.xlu0 %2839  ;;  %v3292_v13 = vsel %vm1485_vm15, %v3264_v14, %v5725_v62  ;;  %v3352_v53 = vsel %vm3338_vm6, %v3319_v32, %v5774_v15  ;;  %v3383_v15 = vsel %vm3371_vm4, %v3350_v20, %v5865_v38  ;;  %v5989_v14 = vld [vmem:[%s6261_s9] ss:$0 sm:$0xff] }
 0x263   : > { %v5898_v4 = vpop.permute.xlu1 %2696  ;;  %v3321_v23 = vsel %vm3305_vm8, %v3292_v13, %v5854_v0  ;;  %v3385_v41 = vsel %vm3371_vm4, %v3352_v53, %v3102_v59 }
 0x264   : > { %3113 = vrot.lane.b32.xlu0 %v3065_v2, %s4352_s26  ;;  %v3354_v0 = vsel %vm3338_vm6, %v3321_v23, %v5759_v1  ;;  %v3418_v22 = vsel %vm3404_vm5, %v3385_v41, %v5710_v5 }
 0x265   : > { %v3387_v52 = vsel %vm3371_vm4, %v3354_v0, %v5816_v61  ;;  %v3416_v61 = vsel %vm3404_vm5, %v3383_v15, %v5406_v28  ;;  %v3462_v58 = vrot.slane %v3418_v22, 2  ;;  %v4304_v0 = vld [vmem:[#allocation2 + $0x5c] ss:$0 sps:$4 sm:$0x33]  }
 0x266   : > { %v3098_v39 = vpop.permute.xlu0 %3097  ;;  %v3460_v30 = vrot.slane %v3416_v61, 2 }
 0x267   : > { %v5912_v16 = vpop.permute.xlu1 %2934 }
 0x268   : > { %2662 = vrot.lane.b32.xlu0 %v2620_v11, %s4346_s25 }
 0x26a   : > { %v5920_v37 = vpop.permute.xlu0 %3165 }
 0x26b   : > { %v5929_v62 = vpop.permute.xlu1 %2464 }
 0x26c   : > { %3169 = vrot.lane.b32.xlu0 %v4003_v24, %s4350_s16 }
 0x26e   : > { %v2647_v31 = vpop.permute.xlu0 %2646 }
 0x26f   : > { %v3258_v10 = vsel %vm1451_vm13, %v3226_v50, %v2647_v31  ;;  %v5945_v1 = vpop.permute.xlu1 %2930  ;;  %v4303_v50 = vld [vmem:[#allocation2 + $0x70] ss:$0 sps:$4 sm:$0x33]  }
 0x270   : > { %v3288_v34 = vsel %vm1485_vm15, %v3258_v10, %v5824_v42  ;;  %3173 = vrot.lane.b32.xlu0 %v4004_v44, %s4350_s16  ;;  %v3420_v42 = vsel %vm3404_vm5, %v3387_v52, %v5427_v57 }
 0x271   : > { %v3315_v54 = vsel %vm3305_vm8, %v3288_v34, %v2840_v3 }
 0x272   : > { %v3348_v38 = vsel %vm3338_vm6, %v3315_v54, %v5839_v6  ;;  %v5953_v59 = vpop.permute.xlu0 %2932  ;;  %v3463_v6 = vrot.slane %v3420_v42, 2 }
 0x273   : > { %v3381_v51 = vsel %vm3371_vm4, %v3348_v38, %v3098_v39  ;;  %v5960_v56 = vpop.permute.xlu1 %3111 }
 0x274   : > { %v3414_v43 = vsel %vm3404_vm5, %v3381_v51, %v5793_v45  ;;  %v3464_v28 = vsel %vm882_vm0, %v3462_v58, %v3463_v6 }
 0x275   : > { %v3459_v5 = vrot.slane %v3414_v43, 2 }
 0x276   : > { %v5964_v63 = vpop.permute.xlu0 %3161 }
 0x277   : > { %v3461_v46 = vsel %vm882_vm0, %v3459_v5, %v3460_v30  ;;  %v2389_v60 = vpop.permute.xlu1 %2388 }
 0x278   : > { %4125 = vmatprep.mubr.msk.bf16.mxu1 %vm3513_vm10, %v3461_v46  ;;  %v3206_v41 = vsel %vm1383_vm9, %v4303_v50, %v2389_v60 }
 0x279   : > { %4126 = vmatmul.mubr.msk.bf16.gmra.mxu1 %vm3513_vm10, %v3464_v28  ;;  %v5972_v40 = vpop.f32.mrf.mxu1 }
 0x27a   : > { %v2467_v57 = vpop.permute.xlu0 %2466 }
 0x27b   : > { %v2661_v35 = vpop.permute.xlu1 %2660  ;;  %v5976_v2 = vpop.f32.mrf.mxu1 }
 0x27d   : > { %v4102_v19 = vpop.f32.mrf.mxu1 }
 0x27e   : > { %v5970_v7 = vpop.permute.xlu0 %2694  ;;  %v1924_v49 = vmul.f32 %v4102_v19, %v5983_v8 }
 0x27f   : > { %v2854_v45 = vpop.permute.xlu1 %2853  ;;  %v1866_v39 = vpop.f32.mrf.mxu1 }
 0x280   : > { %v5992_v33 = vadd.f32 %v5989_v14, %v1924_v49  ;;  %v1922_v47 = vmul.f32 %v5983_v8, %v1866_v39 }
 0x282   : > { %v5974_v3 = vpop.permute.xlu0 %2928  ;;  %v5996_v13 = vadd.f32 %v5989_v14, %v1922_v47 }
 0x283   : > { %v5978_v29 = vpop.permute.xlu1 %3107 }
 0x286   : > { %v2387_v27 = vpop.permute.xlu0 %2386 }
 0x287   : > { %v2385_v11 = vpop.permute.xlu1 %2384  ;;  %v3203_v20 = vsel %vm1383_vm9, %v5532_v17, %v2387_v27  ;;  %v3240_v17 = vsel %vm1417_vm11, %v3206_v41, %v5886_v9 }
 0x288   : > { %v3201_v44 = vsel %vm1383_vm9, %v4304_v0, %v2385_v11  ;;  %v3238_v15 = vsel %vm1417_vm11, %v3203_v20, %v2467_v57  ;;  %v3272_v51 = vsel %vm1451_vm13, %v3240_v17, %v2661_v35 }
 0x289   : > { %v3236_v34 = vsel %vm1417_vm11, %v3201_v44, %v5929_v62  ;;  %v3298_v46 = vsel %vm1485_vm15, %v3272_v51, %v5898_v4 }
 0x28a   : > { %v2463_v32 = vpop.permute.xlu0 %2462  ;;  %v3329_v57 = vsel %vm3305_vm8, %v3298_v46, %v2854_v45 }
 0x28b   : > { %v2657_v25 = vpop.permute.xlu1 %2656 }
 0x28c   : > { %v3268_v22 = vsel %vm1451_vm13, %v3236_v34, %v2657_v25 }
 0x28d   : > { %v3295_v62 = vsel %vm1485_vm15, %v3268_v22, %v5970_v7 }
 0x28e   : > { %v2852_v23 = vpop.permute.xlu0 %2851 }
 0x28f   : > { %v2850_v24 = vpop.permute.xlu1 %2849 }
 0x290   : > { %v3325_v60 = vsel %vm3305_vm8, %v3295_v62, %v2850_v24 }
 0x292   : > { %v3110_v21 = vpop.permute.xlu0 %3109 }
 0x293   : > { %v5998_v53 = vpop.permute.xlu1 %2476 }
 0x296   : > { %v2383_v55 = vpop.permute.xlu0 %2382 }
 0x297   : > { %v6002_v31 = vpop.permute.xlu1 %2700  ;;  %v4105_v61 = vpop.f32.mrf.mxu1  ;;  %v3198_v49 = vsel %vm1383_vm9, %v5584_v12, %v2383_v55 }
 0x298   : > { %v1927_v43 = vmul.f32 %v4105_v61, %v5983_v8  ;;  %v3234_v12 = vsel %vm1417_vm11, %v3198_v49, %v2463_v32 }
 0x299   : > { %v1879_v58 = vpop.f32.mrf.mxu1 }
 0x29a   : > { %v2659_v10 = vpop.permute.xlu0 %2658  ;;  %v6025_v9 = vadd.f32 %v5989_v14, %v1927_v43  ;;  %v1925_v6 = vmul.f32 %v5983_v8, %v1879_v58 }
 0x29b   : > { %v3270_v52 = vsel %vm1451_vm13, %v3238_v15, %v2659_v10  ;;  %v6010_v54 = vpop.permute.xlu1 %2942  ;;  %v4106_v28 = vpop.f32.mrf.mxu1 }
 0x29c   : > { %v3297_v38 = vsel %vm1485_vm15, %v3270_v52, %v5898_v4  ;;  %v6033_v19 = vadd.f32 %v5989_v14, %v1925_v6  ;;  %v1928_v27 = vmul.f32 %v4106_v28, %v5983_v8  ;;  %v3358_v4 = vsel %vm3338_vm6, %v3325_v60, %v5945_v1 }
 0x29d   : > { %v3327_v5 = vsel %vm3305_vm8, %v3297_v38, %v2852_v23  ;;  %v1882_v11 = vpop.f32.mrf.mxu1  ;;  %v3362_v23 = vsel %vm3338_vm6, %v3329_v57, %v5912_v16  ;;  %v3391_v0 = vsel %vm3371_vm4, %v3358_v4, %v5978_v29 }
 0x29e   : > { %v2848_v42 = vpop.permute.xlu0 %2847  ;;  %v3360_v39 = vsel %vm3338_vm6, %v3327_v5, %v5953_v59  ;;  %v6045_v45 = vadd.f32 %v5989_v14, %v1928_v27  ;;  %v1926_v25 = vmul.f32 %v5983_v8, %v1882_v11  ;;  %v3395_v16 = vsel %vm3371_vm4, %v3362_v23, %v5960_v56 }
 0x29f   : > { %v6022_v30 = vpop.permute.xlu1 %2472  ;;  %v4109_v24 = vpop.f32.mrf.mxu1  ;;  %v3393_v59 = vsel %vm3371_vm4, %v3360_v39, %v3110_v21  ;;  %v3428_v61 = vsel %vm3404_vm5, %v3395_v16, %v5470_v36 }
 0x2a0   : > { %v6053_v20 = vadd.f32 %v5989_v14, %v1926_v25  ;;  %v1931_v1 = vmul.f32 %v4109_v24, %v5983_v8  ;;  %v3426_v29 = vsel %vm3404_vm5, %v3393_v59, %v5920_v37  ;;  %v3469_v6 = vrot.slane %v3428_v61, 2 }
 0x2a1   : > { %v1895_v44 = vpop.f32.mrf.mxu1 }
 0x2a2   : > { %v3106_v35 = vpop.permute.xlu0 %3105  ;;  %v6066_v21 = vadd.f32 %v5989_v14, %v1931_v1  ;;  %v1929_v15 = vmul.f32 %v5983_v8, %v1895_v44 }
 0x2a3   : > { %v6042_v47 = vpop.permute.xlu1 %2938  ;;  %v4110_v52 = vpop.f32.mrf.mxu1 }
 0x2a4   : > { %v6079_v17 = vadd.f32 %v5989_v14, %v1929_v15  ;;  %v1932_v22 = vmul.f32 %v4110_v52, %v5983_v8 }
 0x2a5   : > { %v1898_v37 = vpop.f32.mrf.mxu1 }
 0x2a6   : > { %v2655_v55 = vpop.permute.xlu0 %2654  ;;  %v6088_v43 = vadd.f32 %v5989_v14, %v1932_v22 }
 0x2a7   : > { %v3266_v50 = vsel %vm1451_vm13, %v3234_v12, %v2655_v55  ;;  %v6063_v41 = vpop.permute.xlu1 %3119  ;;  %v4306_v12 = vld [vmem:[#allocation2 + $0x84] ss:$0 sps:$4 sm:$0x33]  }
 0x2a8   : > { %v3294_v32 = vsel %vm1485_vm15, %v3266_v50, %v5970_v7  ;;  %v3424_v7 = vsel %vm3404_vm5, %v3391_v0, %v5450_v48  ;;  %v1930_v48 = vmul.f32 %v5983_v8, %v1898_v37  ;;  %v4305_v0 = vld [vmem:[#allocation2 + $0x98] ss:$0 sps:$4 sm:$0x33]  }
 0x2a9   : > { %v3323_v10 = vsel %vm3305_vm8, %v3294_v32, %v2848_v42  ;;  %v3468_v42 = vrot.slane %v3426_v29, 2  ;;  %v3466_v62 = vrot.slane %v3424_v7, 2 }
 0x2aa   : > { %v3356_v34 = vsel %vm3338_vm6, %v3323_v10, %v5974_v3  ;;  %v6074_v56 = vpop.permute.xlu0 %2940  ;;  %v6092_v46 = vadd.f32 %v5989_v14, %v1930_v48 }
 0x2ab   : > { %v3389_v38 = vsel %vm3371_vm4, %v3356_v34, %v3106_v35  ;;  %v2397_v51 = vpop.permute.xlu1 %2396 }
 0x2ac   : > { %v3422_v3 = vsel %vm3404_vm5, %v3389_v38, %v5964_v63  ;;  %v3470_v63 = vsel %vm882_vm0, %v3468_v42, %v3469_v6  ;;  %v3216_v16 = vsel %vm1383_vm9, %v4305_v0, %v2397_v51 }
 0x2ad   : > { %v3465_v58 = vrot.slane %v3422_v3, 2  ;;  %v3248_v52 = vsel %vm1417_vm11, %v3216_v16, %v5998_v53  ;;  %v6156_v16 = vld [vmem:[%s6259_s7] ss:$0 sm:$0xff] }
 0x2ae   : > { %v2475_v5 = vpop.permute.xlu0 %2474 }
 0x2af   : > { %v3467_v36 = vsel %vm882_vm0, %v3465_v58, %v3466_v62  ;;  %v2669_v60 = vpop.permute.xlu1 %2668 }
 0x2b0   : > { %4129 = vmatprep.mubr.msk.bf16.mxu1 %vm3513_vm10, %v3467_v36 }
 0x2b1   : > { %4130 = vmatmul.mubr.msk.bf16.gmra.mxu1 %vm3513_vm10, %v3470_v63 }
 0x2b2   : > { %v2699_v28 = vpop.permute.xlu0 %2698 }
 0x2b3   : > { %v2862_v57 = vpop.permute.xlu1 %2861 }
 0x2b6   : > { %v2937_v35 = vpop.permute.xlu0 %2936 }
 0x2b7   : > { %v3116_v27 = vpop.permute.xlu1 %3115 }
 0x2ba   : > { %v2395_v49 = vpop.permute.xlu0 %2394 }
 0x2bb   : > { %v2393_v11 = vpop.permute.xlu1 %2392  ;;  %v3213_v32 = vsel %vm1383_vm9, %v5733_v18, %v2395_v49 }
 0x2bc   : > { %v3211_v59 = vsel %vm1383_vm9, %v4306_v12, %v2393_v11  ;;  %v3246_v7 = vsel %vm1417_vm11, %v3213_v32, %v2475_v5 }
 0x2bd   : > { %v3244_v50 = vsel %vm1417_vm11, %v3211_v59, %v6022_v30  ;;  %v3280_v30 = vsel %vm1451_vm13, %v3248_v52, %v2669_v60 }
 0x2be   : > { %v2471_v39 = vpop.permute.xlu0 %2470  ;;  %v3304_v37 = vsel %vm1485_vm15, %v3280_v30, %v6002_v31 }
 0x2bf   : > { %v2665_v25 = vpop.permute.xlu1 %2664  ;;  %v3337_v51 = vsel %vm3305_vm8, %v3304_v37, %v2862_v57 }
 0x2c0   : > { %v3276_v44 = vsel %vm1451_vm13, %v3244_v50, %v2665_v25 }
 0x2c1   : > { %v3301_v29 = vsel %vm1485_vm15, %v3276_v44, %v2699_v28 }
 0x2c2   : > { %v2860_v4 = vpop.permute.xlu0 %2859 }
 0x2c3   : > { %v3172_v55 = vpop.permute.xlu1 %3171 }
 0x2c6   : > { %v3118_v23 = vpop.permute.xlu0 %3117 }
 0x2c7   : > { %v2858_v15 = vpop.permute.xlu1 %2857 }
 0x2c8   : > { %v3333_v34 = vsel %vm3305_vm8, %v3301_v29, %v2858_v15 }
 0x2c9   : > { %v3366_v18 = vsel %vm3338_vm6, %v3333_v34, %v6042_v47  ;;  %v3370_v47 = vsel %vm3338_vm6, %v3337_v51, %v6010_v54 }
 0x2ca   : > { %v2391_v24 = vpop.permute.xlu0 %2390  ;;  %v3399_v48 = vsel %vm3371_vm4, %v3366_v18, %v3116_v27  ;;  %v3403_v27 = vsel %vm3371_vm4, %v3370_v47, %v6063_v41 }
 0x2cb   : > { %v3208_v61 = vsel %vm1383_vm9, %v5844_v26, %v2391_v24  ;;  %v3176_v6 = vpop.permute.xlu1 %3175  ;;  %v3432_v60 = vsel %vm3404_vm5, %v3399_v48, %v3172_v55 }
 0x2cc   : > { %v3242_v3 = vsel %vm1417_vm11, %v3208_v61, %v2471_v39  ;;  %v3436_v54 = vsel %vm3404_vm5, %v3403_v27, %v3176_v6  ;;  %v3472_v39 = vrot.slane %v3432_v60, 2  ;;  %v1921_v60 = vmul.f32 %v5983_v8, %v5976_v2 }
 0x2cd   : > { %v3475_v24 = vrot.slane %v3436_v54, 2 }
 0x2ce   : > { %v2667_v1 = vpop.permute.xlu0 %2666  ;;  %v1944_v54 = vadd.f32 %v5989_v14, %v1921_v60 }
 0x2cf   : > { %v3278_v22 = vsel %vm1451_vm13, %v3246_v7, %v2667_v1  ;;  %v6150_v1 = vld [vmem:[%s6258_s6] ss:$0 sm:$0xff] }
 0x2d0   : > { %v3303_v53 = vsel %vm1485_vm15, %v3278_v22, %v6002_v31 }
 0x2d1   : > { %v3335_v26 = vsel %vm3305_vm8, %v3303_v53, %v2860_v4 }
 0x2d2   : > { %v2856_v10 = vpop.permute.xlu0 %2855  ;;  %v3368_v57 = vsel %vm3338_vm6, %v3335_v26, %v6074_v56  ;;  %v4097_v56 = vpop.f32.mrf.mxu0 }
 0x2d4   : > { %v1847_v55 = vpop.f32.mrf.mxu0 }
 0x2d5   : > { %v1917_v0 = vmul.f32 %v5983_v8, %v1847_v55 }
 0x2d6   : > { %v3114_v38 = vpop.permute.xlu0 %3113  ;;  %v4098_v59 = vpop.f32.mrf.mxu0 }
 0x2d7   : > { %v1940_v7 = vadd.f32 %v5989_v14, %v1917_v0 }
 0x2d8   : > { %v1850_v50 = vpop.f32.mrf.mxu0 }
 0x2d9   : > { %v1918_v52 = vmul.f32 %v5983_v8, %v1850_v50 }
 0x2da   : > { %v2663_v42 = vpop.permute.xlu0 %2662 }
 0x2db   : > { %v3274_v58 = vsel %vm1451_vm13, %v3242_v3, %v2663_v42  ;;  %v1941_v53 = vadd.f32 %v5989_v14, %v1918_v52 }
 0x2dc   : > { %v3300_v62 = vsel %vm1485_vm15, %v3274_v58, %v2699_v28 }
 0x2dd   : > { %v3331_v5 = vsel %vm3305_vm8, %v3300_v62, %v2856_v10  ;;  %v1920_v10 = vmul.f32 %v4098_v59, %v5983_v8 }
 0x2de   : > { %v3364_v31 = vsel %vm3338_vm6, %v3331_v5, %v2937_v35  ;;  %v3170_v36 = vpop.permute.xlu0 %3169  ;;  %v3401_v35 = vsel %vm3371_vm4, %v3368_v57, %v3118_v23  ;;  %v1919_v23 = vmul.f32 %v4097_v56, %v5983_v8 }
 0x2df   : > { %v3397_v63 = vsel %vm3371_vm4, %v3364_v31, %v3114_v38  ;;  %v1943_v18 = vadd.f32 %v5989_v14, %v1920_v10 }
 0x2e0   : > { %v3430_v28 = vsel %vm3404_vm5, %v3397_v63, %v3170_v36  ;;  %v1942_v32 = vadd.f32 %v5989_v14, %v1919_v23  ;;  %v1923_v36 = vmul.f32 %v5972_v40, %v5983_v8 }
 0x2e1   : > { %v3471_v49 = vrot.slane %v3430_v28, 2 }
 0x2e2   : > { %v3174_v11 = vpop.permute.xlu0 %3173  ;;  %v1946_v57 = vadd.f32 %v5989_v14, %v1923_v36 }
 0x2e3   : > { %v3434_v4 = vsel %vm3404_vm5, %v3401_v35, %v3174_v11  ;;  %v3473_v25 = vsel %vm882_vm0, %v3471_v49, %v3472_v39 }
 0x2e4   : > { %v3474_v12 = vrot.slane %v3434_v4, 2  ;;  %4133 = vmatprep.mubr.msk.bf16.mxu1 %vm3513_vm10, %v3473_v25 }
 0x2e6   : > { %v3476_v41 = vsel %vm882_vm0, %v3474_v12, %v3475_v24 }
 0x2e7   : > { %4134 = vmatmul.mubr.msk.bf16.gmra.mxu1 %vm3513_vm10, %v3476_v41 }
 0x2fd   : > { %v4123_v44 = vpop.f32.mrf.mxu1 }
 0x2fe   : > { %v3648_v15 = vmul.f32 %v4123_v44, %v6150_v1 }
 0x2ff   : > { %v3576_v29 = vpop.f32.mrf.mxu1 }
 0x300   : > { %v3671_v34 = vadd.f32 %v6156_v16, %v3648_v15  ;;  %v3646_v30 = vmul.f32 %v6150_v1, %v3576_v29 }
 0x301   : > { %v4124_v22 = vpop.f32.mrf.mxu1 }
 0x302   : > { %v3687_v38 = vadd.f32 %v3671_v34, %v1942_v32  ;;  %v3669_v61 = vadd.f32 %v6156_v16, %v3646_v30  ;;  %v3649_v37 = vmul.f32 %v4124_v22, %v6150_v1 }
 0x303   : > { %v3579_v51 = vpop.f32.mrf.mxu1 }
 0x304   : > { %v3703_v3 = vmax.f32 %v3687_v38, 0.0  ;;  %v3685_v42 = vadd.f32 %v3669_v61, %v1940_v7  ;;  %v3672_v48 = vadd.f32 %v6156_v16, %v3649_v37  ;;  %v3647_v58 = vmul.f32 %v6150_v1, %v3579_v51 }
 0x306   : > { %3719 = vst.msk [vmem:[%s6171_s17 + $0x10] sm:$0xff] %vm1383_vm9, %v3703_v3  ;;  %v3701_v26 = vmax.f32 %v3685_v42, 0.0  ;;  %v3688_v62 = vadd.f32 %v3672_v48, %v1943_v18  ;;  %v3670_v47 = vadd.f32 %v6156_v16, %v3647_v58 }
 0x308   : > { %3717 = vst.msk [vmem:[%s6171_s17] sm:$0xff] %vm1383_vm9, %v3701_v26  ;;  %v3704_v5 = vmax.f32 %v3688_v62, 0.0  ;;  %v3686_v6 = vadd.f32 %v3670_v47, %v1941_v53 }
 0x30a   : > { %3720 = vst.msk [vmem:[%s6171_s17 + $0x18] sm:$0xff] %vm1383_vm9, %v3704_v5  ;;  %v3702_v31 = vmax.f32 %v3686_v6, 0.0 }
 0x30c   : > { %3718 = vst.msk [vmem:[%s6171_s17 + $0x8] sm:$0xff] %vm1383_vm9, %v3702_v31 }
 0x339   : > { %v4127_v63 = vpop.f32.mrf.mxu1 }
 0x33a   : > { %v3652_v27 = vmul.f32 %v4127_v63, %v6150_v1 }
 0x33b   : > { %v3592_v28 = vpop.f32.mrf.mxu1 }
 0x33c   : > { %v3675_v49 = vadd.f32 %v6156_v16, %v3652_v27  ;;  %v3650_v39 = vmul.f32 %v6150_v1, %v3592_v28 }
 0x33d   : > { %v4128_v35 = vpop.f32.mrf.mxu1 }
 0x33e   : > { %v3691_v40 = vadd.f32 %v3675_v49, %v1946_v57  ;;  %v3673_v11 = vadd.f32 %v6156_v16, %v3650_v39  ;;  %v3653_v2 = vmul.f32 %v4128_v35, %v6150_v1 }
 0x33f   : > { %v3595_v8 = vpop.f32.mrf.mxu1 }
 0x340   : > { %v3707_v4 = vmax.f32 %v3691_v40, 0.0  ;;  %v3689_v25 = vadd.f32 %v3673_v11, %v1944_v54  ;;  %v3676_v24 = vadd.f32 %v6156_v16, %v3653_v2  ;;  %v3651_v14 = vmul.f32 %v6150_v1, %v3595_v8 }
 0x342   : > { %3723 = vst.msk [vmem:[%s6171_s17 + $0x30] sm:$0xff] %vm1383_vm9, %v3707_v4  ;;  %v3705_v12 = vmax.f32 %v3689_v25, 0.0  ;;  %v3692_v41 = vadd.f32 %v3676_v24, %v5992_v33  ;;  %v3674_v56 = vadd.f32 %v6156_v16, %v3651_v14 }
 0x344   : > { %3721 = vst.msk [vmem:[%s6171_s17 + $0x20] sm:$0xff] %vm1383_vm9, %v3705_v12  ;;  %v3708_v55 = vmax.f32 %v3692_v41, 0.0  ;;  %v3690_v59 = vadd.f32 %v3674_v56, %v5996_v13 }
 0x346   : > { %3724 = vst.msk [vmem:[%s6171_s17 + $0x38] sm:$0xff] %vm1383_vm9, %v3708_v55  ;;  %v3706_v23 = vmax.f32 %v3690_v59, 0.0 }
 0x348   : > { %3722 = vst.msk [vmem:[%s6171_s17 + $0x28] sm:$0xff] %vm1383_vm9, %v3706_v23 }
 0x371   : > { %v4131_v0 = vpop.f32.mrf.mxu1 }
 0x372   : > { %v3656_v50 = vmul.f32 %v4131_v0, %v6150_v1 }
 0x373   : > { %v3608_v44 = vpop.f32.mrf.mxu1 }
 0x374   : > { %v3679_v33 = vadd.f32 %v6156_v16, %v3656_v50  ;;  %v3654_v32 = vmul.f32 %v6150_v1, %v3608_v44 }
 0x375   : > { %v4132_v15 = vpop.f32.mrf.mxu1 }
 0x376   : > { %v3695_v10 = vadd.f32 %v3679_v33, %v6025_v9  ;;  %v3677_v13 = vadd.f32 %v6156_v16, %v3654_v32  ;;  %v3657_v29 = vmul.f32 %v4132_v15, %v6150_v1 }
 0x377   : > { %v3611_v52 = vpop.f32.mrf.mxu1 }
 0x378   : > { %v3711_v34 = vmax.f32 %v3695_v10, 0.0  ;;  %v3693_v7 = vadd.f32 %v3677_v13, %v6033_v19  ;;  %v3680_v30 = vadd.f32 %v6156_v16, %v3657_v29  ;;  %v3655_v22 = vmul.f32 %v6150_v1, %v3611_v52 }
 0x37a   : > { %3727 = vst.msk [vmem:[%s6171_s17 + $0x50] sm:$0xff] %vm1383_vm9, %v3711_v34  ;;  %v3709_v38 = vmax.f32 %v3693_v7, 0.0  ;;  %v3696_v61 = vadd.f32 %v3680_v30, %v6045_v45  ;;  %v3678_v9 = vadd.f32 %v6156_v16, %v3655_v22 }
 0x37c   : > { %3725 = vst.msk [vmem:[%s6171_s17 + $0x40] sm:$0xff] %vm1383_vm9, %v3709_v38  ;;  %v3712_v18 = vmax.f32 %v3696_v61, 0.0  ;;  %v3694_v37 = vadd.f32 %v3678_v9, %v6053_v20 }
 0x37e   : > { %3728 = vst.msk [vmem:[%s6171_s17 + $0x58] sm:$0xff] %vm1383_vm9, %v3712_v18  ;;  %v3710_v53 = vmax.f32 %v3694_v37, 0.0 }
 0x380   : > { %3726 = vst.msk [vmem:[%s6171_s17 + $0x48] sm:$0xff] %vm1383_vm9, %v3710_v53 }
 0x3a7   : > { %v4135_v19 = vpop.f32.mrf.mxu1 }
 0x3a8   : > { %v3660_v51 = vmul.f32 %v4135_v19, %v6150_v1 }
 0x3a9   : > { %v3624_v3 = vpop.f32.mrf.mxu1 }
 0x3aa   : > { %v3683_v45 = vadd.f32 %v6156_v16, %v3660_v51  ;;  %v3658_v42 = vmul.f32 %v6150_v1, %v3624_v3 }
 0x3ab   : > { %v4136_v48 = vpop.f32.mrf.mxu1 }
 0x3ac   : > { %v3699_v58 = vadd.f32 %v3683_v45, %v6066_v21  ;;  %v3681_v20 = vadd.f32 %v6156_v16, %v3658_v42  ;;  %v3661_v26 = vmul.f32 %v4136_v48, %v6150_v1 }
 0x3ad   : > { %v3627_v62 = vpop.f32.mrf.mxu1 }
 0x3ae   : > { %v3715_v47 = vmax.f32 %v3699_v58, 0.0  ;;  %v3697_v5 = vadd.f32 %v3681_v20, %v6079_v17  ;;  %v3684_v6 = vadd.f32 %v6156_v16, %v3661_v26  ;;  %v3659_v31 = vmul.f32 %v6150_v1, %v3627_v62 }
 0x3b0   : > { %3731 = vst.msk [vmem:[%s6171_s17 + $0x70] sm:$0xff] %vm1383_vm9, %v3715_v47  ;;  %v3713_v36 = vmax.f32 %v3697_v5, 0.0  ;;  %v3700_v60 = vadd.f32 %v3684_v6, %v6088_v43  ;;  %v3682_v21 = vadd.f32 %v6156_v16, %v3659_v31 }
 0x3b2   : > { %3729 = vst.msk [vmem:[%s6171_s17 + $0x60] sm:$0xff] %vm1383_vm9, %v3713_v36  ;;  %v3716_v63 = vmax.f32 %v3700_v60, 0.0  ;;  %v3698_v57 = vadd.f32 %v3682_v21, %v6092_v46 }
 0x3b4   : > { %3732 = vst.msk [vmem:[%s6171_s17 + $0x78] sm:$0xff] %vm1383_vm9, %v3716_v63  ;;  %v3714_v27 = vmax.f32 %v3698_v57, 0.0 }
 0x3b6   : > { %3730 = vst.msk [vmem:[%s6171_s17 + $0x68] sm:$0xff] %vm1383_vm9, %v3714_v27 }
 0x3b7 PF: > { %s20_s13 = sadd.s32 1, %s4339_s13  }
 0x3b8   : > { %p17_p5 = scmp.ge.s32.totalorder %s20_s13, 4  }
 0x3ba   :  { %19 = sbr.rel (!%p17_p5) target bundleno = 1 (0x1), region = 90 }

</bundles_post_ra>
